<compile_context>
chip_gen: v5e
topology: v5e:2x2
jax: 0.10.0
libtpu: 0.0.40
codegen_flags: <defaults>
</compile_context>

<pallas_src>
import functools

import jax
import jax.numpy as jnp
from jax.experimental import pallas as pl
from jax.experimental.pallas import tpu as pltpu


# ----------------------------- Pallas kernel ------------------------------ #
def _metadata_encoder_kernel(x_ref, wh_ref, bh_ref, ws_ref, wo_ref, wg_ref,
                             wv_ref, pk_ref, a_ref, out_ref):
    """All GRN encoders fused along the lane axis; single grid step."""
    x = x_ref[...]                                   # [B, Din] f32
    xb = x.astype(jnp.bfloat16)
    pk = pk_ref[...]                                 # [6, Osum] f32: bo,bg,bv,bs,gamma,beta

    # hidden projection + ELU (all encoders fused along lanes)
    h = jnp.dot(xb, wh_ref[...],
                preferred_element_type=jnp.float32) + bh_ref[...]   # [B, Hsum]
    # TODO(synk): expm1 would be marginally more accurate near 0; exp-1 is used
    #             for guaranteed Mosaic lowering (clamped to avoid overflow).
    h = jnp.where(h > 0.0, h, jnp.exp(jnp.minimum(h, 0.0)) - 1.0)   # ELU (EUP)

    # inter -> out projection (block-diagonal across encoders)
    h2 = jnp.dot(h.astype(jnp.bfloat16), wo_ref[...],
                 preferred_element_type=jnp.float32) + pk[0:1]      # [B, Osum]

    # GLU gating (block-diagonal)
    h2b = h2.astype(jnp.bfloat16)
    gate = jax.nn.sigmoid(
        jnp.dot(h2b, wg_ref[...], preferred_element_type=jnp.float32) + pk[1:2])
    val = jnp.dot(h2b, wv_ref[...], preferred_element_type=jnp.float32) + pk[2:3]
    glu = gate * val

    # residual (skip) projection
    skip = jnp.dot(xb, ws_ref[...],
                   preferred_element_type=jnp.float32) + pk[3:4]

    # per-encoder LayerNorm via segment-averaging matmuls (A = block-diag 1/len)
    y = skip + glu
    mean = jnp.dot(y, a_ref[...], preferred_element_type=jnp.float32)
    dev = y - mean
    var = jnp.dot(dev * dev, a_ref[...], preferred_element_type=jnp.float32)
    y_n = dev * jax.lax.rsqrt(var + 1e-5)
    out_ref[...] = (y_n * pk[4:5] + pk[5:6]).astype(out_ref.dtype)


# ------------------------------ Host wrapper ------------------------------ #
def metadata_encoder_fused(x, fp):
    """x: [B, Din] -> lane-dense [B, Osum] slab (all encoders concatenated)."""
    b = x.shape[0]
    osum = fp["a"].shape[0]

    def full2d(arr):
        return pl.BlockSpec(arr.shape, lambda i: (0, 0))

    # VMEM footprint is ~1.5 MiB total (weights + activations), far below the
    # scoped default on v5e/v6e/v7x; re-derive block sizes if B or dims grow
    # (v7x has only 64 MiB physical VMEM).
    return pl.pallas_call(
        _metadata_encoder_kernel,
        out_shape=jax.ShapeDtypeStruct((b, osum), x.dtype),
        grid=(1,),
        in_specs=[full2d(x), full2d(fp["wh"]), full2d(fp["bh"]), full2d(fp["ws"]),
                  full2d(fp["wo"]), full2d(fp["wg"]), full2d(fp["wv"]),
                  full2d(fp["pk"]), full2d(fp["a"])],
        out_specs=pl.BlockSpec((b, osum), lambda i: (0, 0)),
        compiler_params=pltpu.CompilerParams(
            dimension_semantics=("arbitrary",)),
    )(x, fp["wh"], fp["bh"], fp["ws"], fp["wo"], fp["wg"], fp["wv"],
      fp["pk"], fp["a"])


# -------------------------- Parameter construction ------------------------ #
def _init_single_grn(key, d_in, d_h, d_out, scale=0.02):
    ks = jax.random.split(key, 11)

    def w(k, shape):
        return (scale * jax.random.normal(k, shape)).astype(jnp.float32)

    return {
        "wh": w(ks[0], (d_in, d_h)),   "bh": w(ks[1], (d_h,)),
        "wo": w(ks[2], (d_h, d_out)),  "bo": w(ks[3], (d_out,)),
        "wg": w(ks[4], (d_out, d_out)), "bg": w(ks[5], (d_out,)),
        "wv": w(ks[6], (d_out, d_out)), "bv": w(ks[7], (d_out,)),
        "ws": w(ks[8], (d_in, d_out)), "bs": w(ks[9], (d_out,)),
        "gamma": (1.0 + w(ks[10], (d_out,))).astype(jnp.float32),
        "beta": jnp.zeros((d_out,), jnp.float32),
    }


def _block_diag(blocks):
    rows = sum(b.shape[0] for b in blocks)
    cols = sum(b.shape[1] for b in blocks)
    out = jnp.zeros((rows, cols), blocks[0].dtype)
    r = c = 0
    for b in blocks:
        out = out.at[r:r + b.shape[0], c:c + b.shape[1]].set(b)
        r += b.shape[0]
        c += b.shape[1]
    return out


def _fuse_grn_params(grns):
    """Fuse a list of per-encoder GRN params into lane-stacked kernel tensors."""
    wh = jnp.concatenate([g["wh"] for g in grns], axis=1)            # [Din, Hsum]
    bh = jnp.concatenate([g["bh"] for g in grns])[None, :]           # [1, Hsum]
    ws = jnp.concatenate([g["ws"] for g in grns], axis=1)            # [Din, Osum]
    wo = _block_diag([g["wo"] for g in grns])                        # [Hsum, Osum]
    wg = _block_diag([g["wg"] for g in grns])                        # [Osum, Osum]
    wv = _block_diag([g["wv"] for g in grns])                        # [Osum, Osum]
    pk = jnp.stack([jnp.concatenate([g[k] for g in grns])
                    for k in ("bo", "bg", "bv", "bs", "gamma", "beta")])
    a = _block_diag([jnp.full((g["gamma"].shape[0], g["gamma"].shape[0]),
                              1.0 / g["gamma"].shape[0], jnp.float32)
                     for g in grns])                                 # [Osum, Osum]
    return {
        "wh": wh.astype(jnp.bfloat16), "ws": ws.astype(jnp.bfloat16),
        "wo": wo.astype(jnp.bfloat16), "wg": wg.astype(jnp.bfloat16),
        "wv": wv.astype(jnp.bfloat16),
        "bh": bh, "pk": pk, "a": a,
    }


# ------------------------------- Module port ------------------------------ #
class MetadataEncoderPallas:
    """Pallas port of MetadataEncoder.forward (all encoders in one kernel launch)."""

    def __init__(self, key, metadata_dim, inter_dim, out_state,
                 num_state_layers, state_bidirectional, out_trans):
        directions = 2 if state_bidirectional else 1
        self.n_state = num_state_layers * directions
        self.out_state = out_state
        self.out_trans = out_trans

        n_total = 2 * self.n_state + 1
        keys = jax.random.split(key, n_total)
        # lane-axis encoder order: [hidden_0..hidden_{n-1} | context_0..context_{n-1} | trans]
        grns = [_init_single_grn(keys[i], metadata_dim, inter_dim, out_state)
                for i in range(2 * self.n_state)]
        grns.append(_init_single_grn(keys[-1], metadata_dim, inter_dim, out_trans))
        self._grns = grns                       # kept for the pure-JAX reference
        self._fused = _fuse_grn_params(grns)

    @functools.partial(jax.jit, static_argnums=0)
    def __call__(self, x):
        out = metadata_encoder_fused(x, self._fused)        # [B, Osum]
        b = x.shape[0]
        nh = self.n_state * self.out_state
        hidden = jnp.transpose(
            out[:, :nh].reshape(b, self.n_state, self.out_state), (1, 0, 2))
        context = jnp.transpose(
            out[:, nh:2 * nh].reshape(b, self.n_state, self.out_state), (1, 0, 2))
        trans = out[:, 2 * nh:2 * nh + self.out_trans]
        return hidden, context, trans


# --------------------------- Pure-JAX reference ---------------------------- #
def _grn_reference(x, g):
    """Single-encoder GRN, mimicking the kernel's bf16-into-MXU numerics."""
    f32 = jnp.float32

    def mm(a, w):
        return jnp.dot(a.astype(jnp.bfloat16).astype(f32),
                       w.astype(jnp.bfloat16).astype(f32),
                       precision=jax.lax.Precision.HIGHEST)

    h = mm(x, g["wh"]) + g["bh"]
    h = jnp.where(h > 0.0, h, jnp.exp(jnp.minimum(h, 0.0)) - 1.0)
    h = mm(h, g["wo"]) + g["bo"]
    gate = jax.nn.sigmoid(mm(h, g["wg"]) + g["bg"])
    val = mm(h, g["wv"]) + g["bv"]
    skip = mm(x, g["ws"]) + g["bs"]
    y = skip + gate * val
    mean = jnp.mean(y, axis=-1, keepdims=True)
    var = jnp.mean((y - mean) ** 2, axis=-1, keepdims=True)
    return (y - mean) * jax.lax.rsqrt(var + 1e-5) * g["gamma"] + g["beta"]


# --------------------------------- Demo ------------------------------------ #
if __name__ == "__main__":
    metadata_dim = 32
    inter_dim = 64
    out_state = 32
    out_trans = 48
    num_state_layers = 2
    state_bidirectional = True
    batch = 8

    key = jax.random.PRNGKey(0)
    k_x, k_params = jax.random.split(key)
    x = jax.random.normal(k_x, (batch, metadata_dim), dtype=jnp.float32)

    enc = MetadataEncoderPallas(k_params, metadata_dim, inter_dim, out_state,
                                num_state_layers, state_bidirectional, out_trans)

    hidden, context, trans = enc(x)
    jax.block_until_ready((hidden, context, trans))

    n_enc = num_state_layers * (2 if state_bidirectional else 1)
    assert hidden.shape == (n_enc, batch, out_state)
    assert context.shape == (n_enc, batch, out_state)
    assert trans.shape == (batch, out_trans)
    assert bool(jnp.all(jnp.isfinite(hidden)))
    assert bool(jnp.all(jnp.isfinite(context)))
    assert bool(jnp.all(jnp.isfinite(trans)))

    # correctness check against a per-encoder pure-JAX reference
    ref_outs = [_grn_reference(x, g) for g in enc._grns]
    ref_hidden = jnp.stack(ref_outs[:n_enc])
    ref_context = jnp.stack(ref_outs[n_enc:2 * n_enc])
    ref_trans = ref_outs[-1]
    max_diff = max(
        float(jnp.max(jnp.abs(hidden - ref_hidden))),
        float(jnp.max(jnp.abs(context - ref_context))),
        float(jnp.max(jnp.abs(trans - ref_trans))))
    assert max_diff < 5e-2, f"mismatch vs reference: {max_diff}"

    print("KERNEL_OK")
</pallas_src>

<mosaic_0001>
module attributes {stable_mosaic.version = 11 : i64} {
  func.func @_metadata_encoder_kernel(%arg0: i32, %arg1: memref<8x32xf32, #tpu.memory_space<vmem>>, %arg2: memref<32x576xbf16, #tpu.memory_space<vmem>>, %arg3: memref<1x576xf32, #tpu.memory_space<vmem>>, %arg4: memref<32x304xbf16, #tpu.memory_space<vmem>>, %arg5: memref<576x304xbf16, #tpu.memory_space<vmem>>, %arg6: memref<304x304xbf16, #tpu.memory_space<vmem>>, %arg7: memref<304x304xbf16, #tpu.memory_space<vmem>>, %arg8: memref<6x304xf32, #tpu.memory_space<vmem>>, %arg9: memref<304x304xf32, #tpu.memory_space<vmem>>, %arg10: memref<8x304xf32, #tpu.memory_space<vmem>>) attributes {dimension_semantics = [#tpu.dimension_semantics<arbitrary>], iteration_bounds = array<i64: 1>, scalar_prefetch = 0 : i64, scratch_operands = 0 : i64, tpu.core_type = #tpu.core_type<tc>, window_params = [{pipeline_mode = #tpu.pipeline_mode<synchronous>, transform_indices = @transform_0, window_bounds = array<i64: 8, 32>}, {pipeline_mode = #tpu.pipeline_mode<synchronous>, transform_indices = @transform_1, window_bounds = array<i64: 32, 576>}, {pipeline_mode = #tpu.pipeline_mode<synchronous>, transform_indices = @transform_2, window_bounds = array<i64: 1, 576>}, {pipeline_mode = #tpu.pipeline_mode<synchronous>, transform_indices = @transform_3, window_bounds = array<i64: 32, 304>}, {pipeline_mode = #tpu.pipeline_mode<synchronous>, transform_indices = @transform_4, window_bounds = array<i64: 576, 304>}, {pipeline_mode = #tpu.pipeline_mode<synchronous>, transform_indices = @transform_5, window_bounds = array<i64: 304, 304>}, {pipeline_mode = #tpu.pipeline_mode<synchronous>, transform_indices = @transform_6, window_bounds = array<i64: 304, 304>}, {pipeline_mode = #tpu.pipeline_mode<synchronous>, transform_indices = @transform_7, window_bounds = array<i64: 6, 304>}, {pipeline_mode = #tpu.pipeline_mode<synchronous>, transform_indices = @transform_8, window_bounds = array<i64: 304, 304>}, {pipeline_mode = #tpu.pipeline_mode<synchronous>, transform_indices = @transform_9, window_bounds = array<i64: 8, 304>}]} {
    %c0 = arith.constant 0 : index
    %c0_0 = arith.constant 0 : index
    %0 = vector.load %arg1[%c0, %c0_0] : memref<8x32xf32, #tpu.memory_space<vmem>>, vector<8x32xf32>
    %1 = arith.truncf %0 : vector<8x32xf32> to vector<8x32xbf16>
    %c0_1 = arith.constant 0 : index
    %c0_2 = arith.constant 0 : index
    %2 = vector.load %arg8[%c0_1, %c0_2] : memref<6x304xf32, #tpu.memory_space<vmem>>, vector<6x304xf32>
    %c0_3 = arith.constant 0 : index
    %c0_4 = arith.constant 0 : index
    %3 = vector.load %arg2[%c0_3, %c0_4] : memref<32x576xbf16, #tpu.memory_space<vmem>>, vector<32x576xbf16>
    %cst = arith.constant dense<0.000000e+00> : vector<8x576xf32>
    %4 = tpu.matmul %1, %3, %cst {dimension_numbers = #tpu.dot_dimension_numbers<[1], [0], [0], [1], [0, 0, 1, 1], [], []>} : vector<8x32xbf16>, vector<32x576xbf16>, vector<8x576xf32> -> vector<8x576xf32>
    %c0_5 = arith.constant 0 : index
    %c0_6 = arith.constant 0 : index
    %5 = vector.load %arg3[%c0_5, %c0_6] : memref<1x576xf32, #tpu.memory_space<vmem>>, vector<1x576xf32>
    %6 = vector.broadcast %5 : vector<1x576xf32> to vector<8x576xf32>
    %7 = arith.addf %4, %6 : vector<8x576xf32>
    %cst_7 = arith.constant 0.000000e+00 : f32
    %8 = vector.broadcast %cst_7 : f32 to vector<8x576xf32>
    %9 = arith.cmpf ogt, %7, %8 : vector<8x576xf32>
    %cst_8 = arith.constant 0.000000e+00 : f32
    %10 = vector.broadcast %cst_8 : f32 to vector<8x576xf32>
    %11 = arith.minimumf %7, %10 : vector<8x576xf32>
    %12 = math.exp %11 : vector<8x576xf32>
    %cst_9 = arith.constant 1.000000e+00 : f32
    %13 = vector.broadcast %cst_9 : f32 to vector<8x576xf32>
    %14 = arith.subf %12, %13 : vector<8x576xf32>
    %15 = arith.select %9, %7, %14 : vector<8x576xi1>, vector<8x576xf32>
    %16 = arith.truncf %15 : vector<8x576xf32> to vector<8x576xbf16>
    %c0_10 = arith.constant 0 : index
    %c0_11 = arith.constant 0 : index
    %17 = vector.load %arg5[%c0_10, %c0_11] : memref<576x304xbf16, #tpu.memory_space<vmem>>, vector<576x304xbf16>
    %cst_12 = arith.constant dense<0.000000e+00> : vector<8x304xf32>
    %18 = tpu.matmul %16, %17, %cst_12 {dimension_numbers = #tpu.dot_dimension_numbers<[1], [0], [0], [1], [0, 0, 1, 1], [], []>} : vector<8x576xbf16>, vector<576x304xbf16>, vector<8x304xf32> -> vector<8x304xf32>
    %19 = vector.extract_strided_slice %2 {offsets = [0, 0], sizes = [1, 304], strides = [1, 1]} : vector<6x304xf32> to vector<1x304xf32>
    %20 = vector.broadcast %19 : vector<1x304xf32> to vector<8x304xf32>
    %21 = arith.addf %18, %20 : vector<8x304xf32>
    %22 = arith.truncf %21 : vector<8x304xf32> to vector<8x304xbf16>
    %c0_13 = arith.constant 0 : index
    %c0_14 = arith.constant 0 : index
    %23 = vector.load %arg6[%c0_13, %c0_14] : memref<304x304xbf16, #tpu.memory_space<vmem>>, vector<304x304xbf16>
    %cst_15 = arith.constant dense<0.000000e+00> : vector<8x304xf32>
    %24 = tpu.matmul %22, %23, %cst_15 {dimension_numbers = #tpu.dot_dimension_numbers<[1], [0], [0], [1], [0, 0, 1, 1], [], []>} : vector<8x304xbf16>, vector<304x304xbf16>, vector<8x304xf32> -> vector<8x304xf32>
    %25 = vector.extract_strided_slice %2 {offsets = [1, 0], sizes = [1, 304], strides = [1, 1]} : vector<6x304xf32> to vector<1x304xf32>
    %26 = vector.broadcast %25 : vector<1x304xf32> to vector<8x304xf32>
    %27 = arith.addf %24, %26 : vector<8x304xf32>
    %28 = arith.negf %27 : vector<8x304xf32>
    %29 = math.exp %28 : vector<8x304xf32>
    %cst_16 = arith.constant 1.000000e+00 : f32
    %30 = vector.broadcast %cst_16 : f32 to vector<8x304xf32>
    %31 = arith.addf %30, %29 : vector<8x304xf32>
    %32 = arith.divf %30, %31 : vector<8x304xf32>
    %c0_17 = arith.constant 0 : index
    %c0_18 = arith.constant 0 : index
    %33 = vector.load %arg7[%c0_17, %c0_18] : memref<304x304xbf16, #tpu.memory_space<vmem>>, vector<304x304xbf16>
    %cst_19 = arith.constant dense<0.000000e+00> : vector<8x304xf32>
    %34 = tpu.matmul %22, %33, %cst_19 {dimension_numbers = #tpu.dot_dimension_numbers<[1], [0], [0], [1], [0, 0, 1, 1], [], []>} : vector<8x304xbf16>, vector<304x304xbf16>, vector<8x304xf32> -> vector<8x304xf32>
    %35 = vector.extract_strided_slice %2 {offsets = [2, 0], sizes = [1, 304], strides = [1, 1]} : vector<6x304xf32> to vector<1x304xf32>
    %36 = vector.broadcast %35 : vector<1x304xf32> to vector<8x304xf32>
    %37 = arith.addf %34, %36 : vector<8x304xf32>
    %38 = arith.mulf %32, %37 : vector<8x304xf32>
    %c0_20 = arith.constant 0 : index
    %c0_21 = arith.constant 0 : index
    %39 = vector.load %arg4[%c0_20, %c0_21] : memref<32x304xbf16, #tpu.memory_space<vmem>>, vector<32x304xbf16>
    %cst_22 = arith.constant dense<0.000000e+00> : vector<8x304xf32>
    %40 = tpu.matmul %1, %39, %cst_22 {dimension_numbers = #tpu.dot_dimension_numbers<[1], [0], [0], [1], [0, 0, 1, 1], [], []>} : vector<8x32xbf16>, vector<32x304xbf16>, vector<8x304xf32> -> vector<8x304xf32>
    %41 = vector.extract_strided_slice %2 {offsets = [3, 0], sizes = [1, 304], strides = [1, 1]} : vector<6x304xf32> to vector<1x304xf32>
    %42 = vector.broadcast %41 : vector<1x304xf32> to vector<8x304xf32>
    %43 = arith.addf %40, %42 : vector<8x304xf32>
    %44 = arith.addf %43, %38 : vector<8x304xf32>
    %c0_23 = arith.constant 0 : index
    %c0_24 = arith.constant 0 : index
    %45 = vector.load %arg9[%c0_23, %c0_24] : memref<304x304xf32, #tpu.memory_space<vmem>>, vector<304x304xf32>
    %cst_25 = arith.constant dense<0.000000e+00> : vector<8x304xf32>
    %46 = tpu.matmul %44, %45, %cst_25 {dimension_numbers = #tpu.dot_dimension_numbers<[1], [0], [0], [1], [0, 0, 1, 1], [], []>} : vector<8x304xf32>, vector<304x304xf32>, vector<8x304xf32> -> vector<8x304xf32>
    %47 = arith.subf %44, %46 : vector<8x304xf32>
    %48 = arith.mulf %47, %47 : vector<8x304xf32>
    %c0_26 = arith.constant 0 : index
    %c0_27 = arith.constant 0 : index
    %49 = vector.load %arg9[%c0_26, %c0_27] : memref<304x304xf32, #tpu.memory_space<vmem>>, vector<304x304xf32>
    %cst_28 = arith.constant dense<0.000000e+00> : vector<8x304xf32>
    %50 = tpu.matmul %48, %49, %cst_28 {dimension_numbers = #tpu.dot_dimension_numbers<[1], [0], [0], [1], [0, 0, 1, 1], [], []>} : vector<8x304xf32>, vector<304x304xf32>, vector<8x304xf32> -> vector<8x304xf32>
    %cst_29 = arith.constant 9.99999974E-6 : f32
    %51 = vector.broadcast %cst_29 : f32 to vector<8x304xf32>
    %52 = arith.addf %50, %51 : vector<8x304xf32>
    %53 = math.rsqrt %52 : vector<8x304xf32>
    %54 = arith.mulf %47, %53 : vector<8x304xf32>
    %55 = vector.extract_strided_slice %2 {offsets = [4, 0], sizes = [1, 304], strides = [1, 1]} : vector<6x304xf32> to vector<1x304xf32>
    %56 = vector.broadcast %55 : vector<1x304xf32> to vector<8x304xf32>
    %57 = arith.mulf %54, %56 : vector<8x304xf32>
    %58 = vector.extract_strided_slice %2 {offsets = [5, 0], sizes = [1, 304], strides = [1, 1]} : vector<6x304xf32> to vector<1x304xf32>
    %59 = vector.broadcast %58 : vector<1x304xf32> to vector<8x304xf32>
    %60 = arith.addf %57, %59 : vector<8x304xf32>
    %c0_30 = arith.constant 0 : index
    %c0_31 = arith.constant 0 : index
    %61 = vector.load %arg10[%c0_30, %c0_31] : memref<8x304xf32, #tpu.memory_space<vmem>>, vector<8x304xf32>
    tpu.vector_store %arg10[%c0_30, %c0_31], %60 {strides = array<i32>} : memref<8x304xf32, #tpu.memory_space<vmem>>, vector<8x304xf32>,
    return
  }
  func.func @transform_0(%arg0: i32) -> (i32, i32) {
    %c0_i32 = arith.constant 0 : i32
    %c0_i32_0 = arith.constant 0 : i32
    %c0_i32_1 = arith.constant 0 : i32
    return %c0_i32, %c0_i32_0 : i32, i32
  }
  func.func @transform_1(%arg0: i32) -> (i32, i32) {
    %c0_i32 = arith.constant 0 : i32
    %c0_i32_0 = arith.constant 0 : i32
    %c0_i32_1 = arith.constant 0 : i32
    return %c0_i32, %c0_i32_0 : i32, i32
  }
  func.func @transform_2(%arg0: i32) -> (i32, i32) {
    %c0_i32 = arith.constant 0 : i32
    %c0_i32_0 = arith.constant 0 : i32
    %c0_i32_1 = arith.constant 0 : i32
    return %c0_i32, %c0_i32_0 : i32, i32
  }
  func.func @transform_3(%arg0: i32) -> (i32, i32) {
    %c0_i32 = arith.constant 0 : i32
    %c0_i32_0 = arith.constant 0 : i32
    %c0_i32_1 = arith.constant 0 : i32
    return %c0_i32, %c0_i32_0 : i32, i32
  }
  func.func @transform_4(%arg0: i32) -> (i32, i32) {
    %c0_i32 = arith.constant 0 : i32
    %c0_i32_0 = arith.constant 0 : i32
    %c0_i32_1 = arith.constant 0 : i32
    return %c0_i32, %c0_i32_0 : i32, i32
  }
  func.func @transform_5(%arg0: i32) -> (i32, i32) {
    %c0_i32 = arith.constant 0 : i32
    %c0_i32_0 = arith.constant 0 : i32
    %c0_i32_1 = arith.constant 0 : i32
    return %c0_i32, %c0_i32_0 : i32, i32
  }
  func.func @transform_6(%arg0: i32) -> (i32, i32) {
    %c0_i32 = arith.constant 0 : i32
    %c0_i32_0 = arith.constant 0 : i32
    %c0_i32_1 = arith.constant 0 : i32
    return %c0_i32, %c0_i32_0 : i32, i32
  }
  func.func @transform_7(%arg0: i32) -> (i32, i32) {
    %c0_i32 = arith.constant 0 : i32
    %c0_i32_0 = arith.constant 0 : i32
    %c0_i32_1 = arith.constant 0 : i32
    return %c0_i32, %c0_i32_0 : i32, i32
  }
  func.func @transform_8(%arg0: i32) -> (i32, i32) {
    %c0_i32 = arith.constant 0 : i32
    %c0_i32_0 = arith.constant 0 : i32
    %c0_i32_1 = arith.constant 0 : i32
    return %c0_i32, %c0_i32_0 : i32, i32
  }
  func.func @transform_9(%arg0: i32) -> (i32, i32) {
    %c0_i32 = arith.constant 0 : i32
    %c0_i32_0 = arith.constant 0 : i32
    %c0_i32_1 = arith.constant 0 : i32
    return %c0_i32, %c0_i32_0 : i32, i32
  }
}

</mosaic_0001>

<bundles_post_ra>
// kernel: a_call__.1
= control target key start
LH: loop header
LB: loop body
LE: loop exit
PB: predicated region body
PF: predicated region fallthrough
CT: control target
= control target key end

     0   :  { %14 = vsyncpa [#allocation3], 0  ;;  %s5268_s0 = inlined_call_operand.hbm [shape: f32[8,32], index: 0, kind: input, shape index: {}]   ;;  %s5269_s1 = inlined_call_operand.hbm [shape: bf16[32,576], index: 1, kind: input, shape index: {}]   ;;  %s5270_s2 = inlined_call_operand.hbm [shape: f32[1,576], index: 2, kind: input, shape index: {}]   ;;  %s5271_s3 = inlined_call_operand.hbm [shape: bf16[32,304], index: 3, kind: input, shape index: {}]   ;;  %s5272_s4 = inlined_call_operand.hbm [shape: bf16[576,304], index: 4, kind: input, shape index: {}]   ;;  %s5273_s5 = inlined_call_operand.hbm [shape: bf16[304,304], index: 5, kind: input, shape index: {}]   ;;  %s5274_s6 = inlined_call_operand.hbm [shape: bf16[304,304], index: 6, kind: input, shape index: {}]   ;;  %s5275_s7 = inlined_call_operand.hbm [shape: f32[6,304], index: 7, kind: input, shape index: {}]   ;;  %s5276_s8 = inlined_call_operand.hbm [shape: f32[304,304], index: 8, kind: input, shape index: {}]   ;;  %s5277_s9 = inlined_call_operand.vmem [shape: f32[8,304], index: 9, kind: output, shape index: {}]  }
   0x1   :  { %15 = vsyncpa [#allocation5], 0 }
   0x2   :  { %16 = vsyncpa [#allocation8], 0 }
   0x3   :  { %17 = vsyncpa [#allocation11], 0  ;;  %s34_s11 = sshll.u32 %s5269_s1, 4  ;;  %s35_s11 = int_to_ptr.hbm [resolvable:$true] %s34_s11 }
   0x4   :  { %18 = vsyncpa [#allocation14], 0  ;;  %s4462_s12 = smov [#allocation4]   ;;  %s58_s16 = sshll.u32 %s5271_s3, 4  ;;  %s59_s16 = int_to_ptr.hbm [resolvable:$true] %s58_s16 }
   0x5   :  { %s36_s13 = sshll.u32 %s4462_s12, 4  ;;  %s4463_s17 = smov 320   ;;  %s37_s13 = int_to_ptr.vmem [resolvable:$true] %s36_s13 }
   0x6   :  { %s4464_s18 = smov 20   ;;  %s4465_s19 = smov [#allocation7]  }
   0x7   :  { %42 = dma.hbm_to_vmem [thread:$0]  %s35_s11, 1280, %s37_s13, [#allocation5], %s4463_s17, %s4463_s17, %s4464_s18  }
   0x8   :  { %s60_s20 = sshll.u32 %s4465_s19, 4  ;;  %s4466_s21 = smov 192   ;;  %s61_s20 = int_to_ptr.vmem [resolvable:$true] %s60_s20 }
   0x9   :  { %s4467_s22 = smov 12   ;;  %s84_s24 = sshll.u32 %s5273_s5, 4  ;;  %s85_s24 = int_to_ptr.hbm [resolvable:$true] %s84_s24 }
   0xa   :  { %66 = dma.hbm_to_vmem [thread:$0]  %s59_s16, 768, %s61_s20, [#allocation8], %s4466_s21, %s4466_s21, %s4467_s22  }
   0xb   :  { %s4468_s25 = smov [#allocation10]   ;;  %s111_s28 = sshll.u32 %s5275_s7, 4  ;;  %s112_s28 = int_to_ptr.hbm [resolvable:$true] %s111_s28 }
   0xc   :  { %s86_s3 = sshll.u32 %s4468_s25, 4  ;;  %s4469_s29 = smov [#allocation13]   ;;  %s87_s3 = int_to_ptr.vmem [resolvable:$true] %s86_s3 }
   0xd   :  { %92 = dma.hbm_to_vmem [thread:$0]  %s85_s24, 7296, %s87_s3, [#allocation11], %s4466_s21, %s4466_s21, %s4467_s22  }
   0xe   :  { %s113_s30 = sshll.u32 %s4469_s29, 4  ;;  %s24_s12 = sshll.u32 %s5268_s0, 4  ;;  %s114_s30 = int_to_ptr.vmem [resolvable:$true] %s113_s30  ;;  %s25_s12 = int_to_ptr.hbm [resolvable:$true] %s24_s12 }
   0xf   :  { %116 = dma.hbm_to_vmem [thread:$0]  %s112_s28, 384, %s114_s30, [#allocation14]  }
  0x10   :  { %s48_s14 = sshll.u32 %s5270_s2, 4  ;;  %s4470_s15 = smov [#allocation2]   ;;  %s49_s14 = int_to_ptr.hbm [resolvable:$true] %s48_s14 }
  0x11   :  { %s26_s7 = sshll.u32 %s4470_s15, 4  ;;  %s4471_s16 = smov [#allocation6]   ;;  %s27_s7 = int_to_ptr.vmem [resolvable:$true] %s26_s7 }
  0x12   :  { %29 = dma.hbm_to_vmem [thread:$0]  %s25_s12, 128, %s27_s7, [#allocation3]  }
  0x13   :  { %s50_s17 = sshll.u32 %s4471_s16, 4  ;;  %s71_s20 = sshll.u32 %s5272_s4, 4  ;;  %s51_s17 = int_to_ptr.vmem [resolvable:$true] %s50_s17  ;;  %s72_s20 = int_to_ptr.hbm [resolvable:$true] %s71_s20 }
  0x14   :  { %53 = dma.hbm_to_vmem [thread:$0]  %s49_s14, 80, %s51_s17, [#allocation5]  }
  0x15   :  { %s97_s23 = sshll.u32 %s5274_s6, 4  ;;  %s4472_s24 = smov [#allocation9]   ;;  %s98_s23 = int_to_ptr.hbm [resolvable:$true] %s97_s23 }
  0x16   :  { %s73_s2 = sshll.u32 %s4472_s24, 4  ;;  %s4473_s25 = smov [#allocation12]   ;;  %s74_s2 = int_to_ptr.vmem [resolvable:$true] %s73_s2 }
  0x17   :  { %79 = dma.hbm_to_vmem [thread:$0]  %s72_s20, 13824, %s74_s2, [#allocation8], %s4466_s21, %s4466_s21, %s4467_s22  }
  0x18   :  { %s99_s3 = sshll.u32 %s4473_s25, 4  ;;  %s121_s4 = sshll.u32 %s5276_s8, 4  ;;  %s100_s3 = int_to_ptr.vmem [resolvable:$true] %s99_s3  ;;  %s122_s4 = int_to_ptr.hbm [resolvable:$true] %s121_s4 }
  0x19   :  { %105 = dma.hbm_to_vmem [thread:$0]  %s98_s23, 7296, %s100_s3, [#allocation11], %s4466_s21, %s4466_s21, %s4467_s22  }
  0x1a   :  { %s4474_s6 = smov [#allocation15]   ;;  %s4475_s29 = smov 384  }
  0x1b   :  { %s123_s28 = sshll.u32 %s4474_s6, 4  ;;  %s4476_s30 = smov 24   ;;  %s124_s28 = int_to_ptr.vmem [resolvable:$true] %s123_s28 }
  0x1c   :  { %129 = dma.hbm_to_vmem [thread:$0]  %s122_s4, 14592, %s124_s28, [#allocation14], %s4475_s29, %s4475_s29, %s4476_s30  }
  0x1d   :  { %4452 = dma.done.wait [#allocation3], 128  }
  0x1e   :  { %4453 = vsyncadd [#allocation3], 4294967168 }
  0x1f   :  { %4454 = dma.done.wait [#allocation5], 1360  }
  0x20   :  { %4455 = vsyncadd [#allocation5], 4294965936 }
  0x21   :  { %4456 = dma.done.wait [#allocation8], 14592  }
  0x22   :  { %4457 = vsyncadd [#allocation8], 4294952704 }
  0x23   :  { %4458 = dma.done.wait [#allocation11], 14592  }
  0x24   :  { %4459 = vsyncadd [#allocation11], 4294952704 }
  0x25   :  { %4460 = dma.done.wait [#allocation14], 14976  }
  0x26   :  { %4461 = vsyncadd [#allocation14], 4294952320  ;;  %v2991_v0 = vld [vmem:[#allocation4 + $0x28] sm:$0xf]  ;;  %v3959_v1 = vld [vmem:[#allocation4 + $0x38] sm:$0xf0] }
  0x27   :  { %v3957_v2 = vld [vmem:[#allocation4 + $0x2c] sm:$0xf]  ;;  %v2992_v3 = vor.u32 %v3959_v1, %v2991_v0  ;;  %v2993_v4 = vld [vmem:[#allocation4 + $0x3c] sm:$0xf0]  ;;  %v2999_v5 = vld [vmem:[#allocation4 + $0x30] sm:$0xf] }
  0x28   :  { %v3960_v6 = vld [vmem:[#allocation4 + $0x40] sm:$0xf0]  ;;  %v2996_v7 = vor.u32 %v3957_v2, %v2993_v4  ;;  %v3958_v9 = vld [vmem:[#allocation4 + $0x34] sm:$0xf]  ;;  %v3001_v10 = vld [vmem:[#allocation4 + $0x44] sm:$0xf0] }
  0x29   :  { %v3000_v8 = vor.u32 %v3960_v6, %v2999_v5  ;;  %v2971_v11 = vld [vmem:[#allocation4] sm:$0xf]  ;;  %258 = vmatpush.bf16.msra.mxu0 %v2992_v3  ;;  %v3004_v12 = vor.u32 %v3958_v9, %v3001_v10  ;;  %v3954_v13 = vld [vmem:[#allocation4 + $0x10] sm:$0xf0]  ;;  %v3952_v14 = vld [vmem:[#allocation4 + $0x4] sm:$0xf] }
  0x2a   :  { %v2973_v15 = vld [vmem:[#allocation4 + $0x14] sm:$0xf0]  ;;  %271 = vmatpush.bf16.msra.mxu1 %v2996_v7  ;;  %v2972_v16 = vor.u32 %v3954_v13, %v2971_v11  ;;  %v2979_v18 = vld [vmem:[#allocation4 + $0x8] sm:$0xf]  ;;  %v3955_v19 = vld [vmem:[#allocation4 + $0x18] sm:$0xf0] }
  0x2b   :  { %284 = vmatpush.bf16.msra.mxu2 %v3000_v8  ;;  %v2976_v17 = vor.u32 %v3952_v14, %v2973_v15  ;;  %v3953_v20 = vld [vmem:[#allocation4 + $0xc] sm:$0xf]  ;;  %297 = vmatpush.bf16.msra.mxu3 %v3004_v12  ;;  %v2980_v21 = vor.u32 %v3955_v19, %v2979_v18  ;;  %v2981_v22 = vld [vmem:[#allocation4 + $0x1c] sm:$0xf0]  ;;  %v167_v23 = vld [vmem:[#allocation2] sm:$0xff]  ;;  %vm248_vm0 = vcmask 261120  }
  0x2c   :  { %v3007_v24 = vld [vmem:[#allocation4 + $0x38] sm:$0xf]  ;;  %v2984_v25 = vor.u32 %v3953_v20, %v2981_v22  ;;  %v4566_v26 = vpack.c.bf16 %v167_v23, %v167_v23  ;;  %v3961_v27 = vld [vmem:[#allocation4 + $0x48] sm:$0xf0]  ;;  %v2987_v28 = vld [vmem:[#allocation4 + $0x10] sm:$0xf] }
  0x2d   :  { %v3956_v29 = vld [vmem:[#allocation4 + $0x20] sm:$0xf0]  ;;  %259 = vmatpush.bf16.msra.mxu0 %v2972_v16  ;;  %v3008_v30 = vor.u32 %v3961_v27, %v3007_v24  ;;  %v3201_v31 = vld [vmem:[#allocation9 + $0x168] sm:$0xf]  ;;  %v4008_v32 = vld [vmem:[#allocation9 + $0x170] sm:$0xf0] }
  0x2e   :  { %v3297_v33 = vld [vmem:[#allocation9 + $0x228] sm:$0xf]  ;;  %272 = vmatpush.bf16.msra.mxu1 %v2976_v17  ;;  %v3202_v34 = vor.u32 %v4008_v32, %v3201_v31  ;;  %v4032_v35 = vld [vmem:[#allocation9 + $0x230] sm:$0xf0]  ;;  %v2988_v38 = vor.u32 %v3956_v29, %v2987_v28  ;;  %v3189_v40 = vld [vmem:[#allocation9 + $0x150] sm:$0xf] }
  0x2f   :  { %285 = vmatpush.bf16.msra.mxu2 %v2980_v21  ;;  %v3393_v36 = vld [vmem:[#allocation9 + $0x2e8] sm:$0xf]  ;;  %v4056_v37 = vld [vmem:[#allocation9 + $0x2f0] sm:$0xf0]  ;;  %298 = vmatpush.bf16.msra.mxu3 %v2984_v25  ;;  %v3298_v39 = vor.u32 %v4032_v35, %v3297_v33  ;;  %v4005_v41 = vld [vmem:[#allocation9 + $0x158] sm:$0xf0] }
  0x30   :  { %3009 = vmatmul.msk.bf16.vlgmr.msra.gmra.mxu0 %vm248_vm0, %v4566_v26  ;;  %v3394_v42 = vor.u32 %v4056_v37, %v3393_v36  ;;  %v3190_v43 = vor.u32 %v4005_v41, %v3189_v40  ;;  %v3285_v44 = vld [vmem:[#allocation9 + $0x210] sm:$0xf]  ;;  %v4029_v45 = vld [vmem:[#allocation9 + $0x218] sm:$0xf0]  ;;  %v3177_v48 = vld [vmem:[#allocation9 + $0x138] sm:$0xf] }
  0x31   :  { %310 = vmatpush.bf16.msrb.mxu0 %v3008_v30  ;;  %v3381_v46 = vld [vmem:[#allocation9 + $0x2d0] sm:$0xf]  ;;  %3010 = vmatmul.msk.bf16.vlgmr.msra.gmra.mxu1 %vm248_vm0, %v4566_v26  ;;  %v4053_v47 = vld [vmem:[#allocation9 + $0x2d8] sm:$0xf0]  ;;  %v4002_v49 = vld [vmem:[#allocation9 + $0x140] sm:$0xf0]  ;;  %v3286_v50 = vor.u32 %v4029_v45, %v3285_v44 }
  0x32   :  { %3011 = vmatmul.msk.bf16.vlgmr.msra.gmra.mxu2 %vm248_vm0, %v4566_v26  ;;  %3012 = vmatmul.msk.bf16.vlgmr.msra.gmra.mxu3 %vm248_vm0, %v4566_v26  ;;  %v3273_v51 = vld [vmem:[#allocation9 + $0x1f8] sm:$0xf]  ;;  %v3105_v52 = vld [vmem:[#allocation9 + $0xa8] sm:$0xf]  ;;  %v3984_v53 = vld [vmem:[#allocation9 + $0xb0] sm:$0xf0]  ;;  %v3382_v54 = vor.u32 %v4053_v47, %v3381_v46  ;;  %v3178_v55 = vor.u32 %v4002_v49, %v3177_v48 }
  0x33   :  { %1092 = vmatpush.bf16.msrb.mxu2 %v3202_v34  ;;  %1105 = vmatpush.bf16.msrb.mxu3 %v3298_v39  ;;  %v4026_v56 = vld [vmem:[#allocation9 + $0x200] sm:$0xf0]  ;;  %v3369_v57 = vld [vmem:[#allocation9 + $0x2b8] sm:$0xf]  ;;  %v3106_v59 = vor.u32 %v3984_v53, %v3105_v52  ;;  %v3165_v60 = vld [vmem:[#allocation9 + $0x120] sm:$0xf] }
  0x34   :  { %v4050_v58 = vld [vmem:[#allocation9 + $0x2c0] sm:$0xf0]  ;;  %v3999_v61 = vld [vmem:[#allocation9 + $0x128] sm:$0xf0]  ;;  %v3093_v62 = vld [vmem:[#allocation9 + $0x90] sm:$0xf]  ;;  %v3274_v0 = vor.u32 %v4026_v56, %v3273_v51 }
  0x35   :  { %311 = vmatpush.bf16.msrb.mxu0 %v2988_v38  ;;  %1079 = vmatpush.bf16.msrb.mxu1 %v3106_v59  ;;  %v3981_v63 = vld [vmem:[#allocation9 + $0x98] sm:$0xf0]  ;;  %v3261_v1 = vld [vmem:[#allocation9 + $0x1e0] sm:$0xf]  ;;  %v3370_v3 = vor.u32 %v4050_v58, %v3369_v57  ;;  %v3166_v4 = vor.u32 %v3999_v61, %v3165_v60  ;;  %v4023_v5 = vld [vmem:[#allocation9 + $0x1e8] sm:$0xf0] }
  0x36   :  { %v3094_v2 = vor.u32 %v3981_v63, %v3093_v62  ;;  %v3081_v6 = vld [vmem:[#allocation9 + $0x78] sm:$0xf]  ;;  %v3978_v7 = vld [vmem:[#allocation9 + $0x80] sm:$0xf0]  ;;  %v3153_v8 = vld [vmem:[#allocation9 + $0x108] sm:$0xf]  ;;  %v3262_v13 = vor.u32 %v4023_v5, %v3261_v1 }
  0x37   :  { %1093 = vmatpush.bf16.msrb.mxu2 %v3190_v43  ;;  %1106 = vmatpush.bf16.msrb.mxu3 %v3286_v50  ;;  %v3996_v9 = vld [vmem:[#allocation9 + $0x110] sm:$0xf0]  ;;  %v3357_v10 = vld [vmem:[#allocation9 + $0x2a0] sm:$0xf]  ;;  %v4047_v11 = vld [vmem:[#allocation9 + $0x2a8] sm:$0xf0]  ;;  %v3082_v12 = vor.u32 %v3978_v7, %v3081_v6 }
  0x38   :  { %v3069_v14 = vld [vmem:[#allocation9 + $0x60] sm:$0xf]  ;;  %v3975_v15 = vld [vmem:[#allocation9 + $0x68] sm:$0xf0]  ;;  %v3154_v16 = vor.u32 %v3996_v9, %v3153_v8  ;;  %v3249_v17 = vld [vmem:[#allocation9 + $0x1c8] sm:$0xf]  ;;  %v3358_v19 = vor.u32 %v4047_v11, %v3357_v10 }
  0x39   :  { %1118 = vmatpush.bf16.msra.mxu0 %v3394_v42  ;;  %1080 = vmatpush.bf16.msrb.mxu1 %v3094_v2  ;;  %v4020_v18 = vld [vmem:[#allocation9 + $0x1d0] sm:$0xf0]  ;;  %v3141_v20 = vld [vmem:[#allocation9 + $0xf0] sm:$0xf]  ;;  %v3993_v21 = vld [vmem:[#allocation9 + $0xf8] sm:$0xf0]  ;;  %v3070_v24 = vor.u32 %v3975_v15, %v3069_v14 }
  0x3a   :  { %v3345_v22 = vld [vmem:[#allocation9 + $0x288] sm:$0xf]  ;;  %v4044_v23 = vld [vmem:[#allocation9 + $0x290] sm:$0xf0]  ;;  %v3250_v25 = vor.u32 %v4020_v18, %v3249_v17  ;;  %v3142_v29 = vor.u32 %v3993_v21, %v3141_v20  ;;  %v3237_v30 = vld [vmem:[#allocation9 + $0x1b0] sm:$0xf] }
  0x3b   :  { %1094 = vmatpush.bf16.msrb.mxu2 %v3178_v55  ;;  %1107 = vmatpush.bf16.msrb.mxu3 %v3274_v0  ;;  %v3057_v27 = vld [vmem:[#allocation9 + $0x48] sm:$0xf]  ;;  %v3972_v28 = vld [vmem:[#allocation9 + $0x50] sm:$0xf0]  ;;  %v4017_v31 = vld [vmem:[#allocation9 + $0x1b8] sm:$0xf0]  ;;  %v3346_v32 = vor.u32 %v4044_v23, %v3345_v22 }
  0x3c   :  { %v3129_v33 = vld [vmem:[#allocation9 + $0xd8] sm:$0xf]  ;;  %v3990_v34 = vld [vmem:[#allocation9 + $0xe0] sm:$0xf0]  ;;  %v3333_v35 = vld [vmem:[#allocation9 + $0x270] sm:$0xf]  ;;  %v3058_v37 = vor.u32 %v3972_v28, %v3057_v27  ;;  %v3238_v38 = vor.u32 %v4017_v31, %v3237_v30 }
  0x3d   :  { %1119 = vmatpush.bf16.msra.mxu0 %v3382_v54  ;;  %1081 = vmatpush.bf16.msrb.mxu1 %v3082_v12  ;;  %v4041_v36 = vld [vmem:[#allocation9 + $0x278] sm:$0xf0]  ;;  %v3045_v39 = vld [vmem:[#allocation9 + $0x30] sm:$0xf]  ;;  %v3130_v41 = vor.u32 %v3990_v34, %v3129_v33  ;;  %v3225_v42 = vld [vmem:[#allocation9 + $0x198] sm:$0xf] }
  0x3e   :  { %v3969_v40 = vld [vmem:[#allocation9 + $0x38] sm:$0xf0]  ;;  %v4014_v43 = vld [vmem:[#allocation9 + $0x1a0] sm:$0xf0]  ;;  %v3334_v44 = vor.u32 %v4041_v36, %v3333_v35  ;;  %v3321_v45 = vld [vmem:[#allocation9 + $0x258] sm:$0xf] }
  0x3f   :  { %1095 = vmatpush.bf16.msrb.mxu2 %v3166_v4  ;;  %1108 = vmatpush.bf16.msrb.mxu3 %v3262_v13  ;;  %v3117_v46 = vld [vmem:[#allocation9 + $0xc0] sm:$0xf]  ;;  %v3987_v47 = vld [vmem:[#allocation9 + $0xc8] sm:$0xf0]  ;;  %v4038_v48 = vld [vmem:[#allocation9 + $0x260] sm:$0xf0]  ;;  %v3046_v51 = vor.u32 %v3969_v40, %v3045_v39  ;;  %v3226_v52 = vor.u32 %v4014_v43, %v3225_v42 }
  0x40   :  { %3013 = vmatmul.msk.bf16.vlgmr.msrb.gmra.mxu0 %vm248_vm0, %v4566_v26  ;;  %v3983_v49 = vld [vmem:[#allocation9 + $0xac] sm:$0xf]  ;;  %v3107_v50 = vld [vmem:[#allocation9 + $0xb4] sm:$0xf0]  ;;  %v3118_v53 = vor.u32 %v3987_v47, %v3117_v46  ;;  %v3213_v54 = vld [vmem:[#allocation9 + $0x180] sm:$0xf]  ;;  %v3322_v56 = vor.u32 %v4038_v48, %v3321_v45 }
  0x41   :  { %1120 = vmatpush.bf16.msra.mxu0 %v3370_v3  ;;  %1082 = vmatpush.bf16.msrb.mxu1 %v3070_v24  ;;  %v4011_v55 = vld [vmem:[#allocation9 + $0x188] sm:$0xf0]  ;;  %v3110_v57 = vor.u32 %v3983_v49, %v3107_v50  ;;  %v3309_v58 = vld [vmem:[#allocation9 + $0x240] sm:$0xf]  ;;  %v3203_v60 = vld [vmem:[#allocation9 + $0x174] sm:$0xf0] }
  0x42   :  { %v4007_v59 = vld [vmem:[#allocation9 + $0x16c] sm:$0xf]  ;;  %v3980_v62 = vld [vmem:[#allocation9 + $0x94] sm:$0xf]  ;;  %v3095_v63 = vld [vmem:[#allocation9 + $0x9c] sm:$0xf0]  ;;  %v3214_v0 = vor.u32 %v4011_v55, %v3213_v54 }
  0x43   :  { %1096 = vmatpush.bf16.msrb.mxu2 %v3154_v16  ;;  %1109 = vmatpush.bf16.msrb.mxu3 %v3250_v25  ;;  %v4035_v61 = vld [vmem:[#allocation9 + $0x248] sm:$0xf0]  ;;  %v3299_v2 = vld [vmem:[#allocation9 + $0x234] sm:$0xf0]  ;;  %v3206_v3 = vor.u32 %v4007_v59, %v3203_v60  ;;  %v3098_v5 = vor.u32 %v3980_v62, %v3095_v63  ;;  %v3966_v8 = vld [vmem:[#allocation9 + $0x20] sm:$0xf0] }
  0x44   :  { %v4031_v1 = vld [vmem:[#allocation9 + $0x22c] sm:$0xf]  ;;  %v3310_v4 = vor.u32 %v4035_v61, %v3309_v58  ;;  %v3033_v7 = vld [vmem:[#allocation9 + $0x18] sm:$0xf]  ;;  %v4004_v9 = vld [vmem:[#allocation9 + $0x154] sm:$0xf] }
  0x45   :  { %1121 = vmatpush.bf16.msra.mxu0 %v3358_v19  ;;  %1083 = vmatpush.bf16.msrb.mxu1 %v3058_v37  ;;  %v3302_v6 = vor.u32 %v4031_v1, %v3299_v2  ;;  %v3034_v10 = vor.u32 %v3966_v8, %v3033_v7  ;;  %v3191_v11 = vld [vmem:[#allocation9 + $0x15c] sm:$0xf0]  ;;  %v4028_v12 = vld [vmem:[#allocation9 + $0x214] sm:$0xf]  ;;  %v3977_v15 = vld [vmem:[#allocation9 + $0x7c] sm:$0xf] }
  0x46   :  { %v3194_v13 = vor.u32 %v4004_v9, %v3191_v11  ;;  %v3287_v14 = vld [vmem:[#allocation9 + $0x21c] sm:$0xf0]  ;;  %v3083_v16 = vld [vmem:[#allocation9 + $0x84] sm:$0xf0]  ;;  %v3963_v20 = vld [vmem:[#allocation9 + $0x8] sm:$0xf0] }
  0x47   :  { %1097 = vmatpush.bf16.msrb.mxu2 %v3142_v29  ;;  %1110 = vmatpush.bf16.msrb.mxu3 %v3238_v38  ;;  %v3290_v17 = vor.u32 %v4028_v12, %v3287_v14  ;;  %v3086_v18 = vor.u32 %v3977_v15, %v3083_v16  ;;  %v3021_v19 = vld [vmem:[#allocation9] sm:$0xf]  ;;  %v4001_v21 = vld [vmem:[#allocation9 + $0x13c] sm:$0xf]  ;;  %v3179_v23 = vld [vmem:[#allocation9 + $0x144] sm:$0xf0] }
  0x48   :  { %v3022_v22 = vor.u32 %v3963_v20, %v3021_v19  ;;  %v4025_v24 = vld [vmem:[#allocation9 + $0x1fc] sm:$0xf]  ;;  %v3275_v25 = vld [vmem:[#allocation9 + $0x204] sm:$0xf0]  ;;  %v3182_v27 = vor.u32 %v4001_v21, %v3179_v23  ;;  %v4068_v30 = vld [vmem:[#allocation9 + $0x350] sm:$0xf0] }
  0x49   :  { %1122 = vmatpush.bf16.msra.mxu0 %v3346_v32  ;;  %1084 = vmatpush.bf16.msrb.mxu1 %v3046_v51  ;;  %v3278_v28 = vor.u32 %v4025_v24, %v3275_v25  ;;  %v3441_v29 = vld [vmem:[#allocation9 + $0x348] sm:$0xf]  ;;  %v3974_v31 = vld [vmem:[#allocation9 + $0x64] sm:$0xf]  ;;  %v3071_v33 = vld [vmem:[#allocation9 + $0x6c] sm:$0xf0] }
  0x4a   :  { %v3442_v32 = vor.u32 %v4068_v30, %v3441_v29  ;;  %v3074_v34 = vor.u32 %v3974_v31, %v3071_v33  ;;  %v3998_v35 = vld [vmem:[#allocation9 + $0x124] sm:$0xf]  ;;  %v3167_v36 = vld [vmem:[#allocation9 + $0x12c] sm:$0xf0]  ;;  %v3059_v45 = vld [vmem:[#allocation9 + $0x54] sm:$0xf0] }
  0x4b   :  { %1098 = vmatpush.bf16.msrb.mxu2 %v3130_v41  ;;  %1111 = vmatpush.bf16.msrb.mxu3 %v3226_v52  ;;  %v4022_v37 = vld [vmem:[#allocation9 + $0x1e4] sm:$0xf]  ;;  %v3170_v38 = vor.u32 %v3998_v35, %v3167_v36  ;;  %v3263_v39 = vld [vmem:[#allocation9 + $0x1ec] sm:$0xf0]  ;;  %v4065_v41 = vld [vmem:[#allocation9 + $0x338] sm:$0xf0] }
  0x4c   :  { %v3429_v40 = vld [vmem:[#allocation9 + $0x330] sm:$0xf]  ;;  %v3266_v42 = vor.u32 %v4022_v37, %v3263_v39  ;;  %v3995_v47 = vld [vmem:[#allocation9 + $0x10c] sm:$0xf]  ;;  %v3155_v48 = vld [vmem:[#allocation9 + $0x114] sm:$0xf0] }
  0x4d   :  { %1123 = vmatpush.bf16.msra.mxu0 %v3334_v44  ;;  %1085 = vmatpush.bf16.msrb.mxu1 %v3034_v10  ;;  %v3430_v43 = vor.u32 %v4065_v41, %v3429_v40  ;;  %v3971_v44 = vld [vmem:[#allocation9 + $0x4c] sm:$0xf]  ;;  %v3158_v50 = vor.u32 %v3995_v47, %v3155_v48  ;;  %v3251_v51 = vld [vmem:[#allocation9 + $0x1d4] sm:$0xf0]  ;;  %v3992_v59 = vld [vmem:[#allocation9 + $0xf4] sm:$0xf] }
  0x4e   :  { %v3062_v46 = vor.u32 %v3971_v44, %v3059_v45  ;;  %v4019_v49 = vld [vmem:[#allocation9 + $0x1cc] sm:$0xf]  ;;  %v3417_v52 = vld [vmem:[#allocation9 + $0x318] sm:$0xf]  ;;  %v3143_v60 = vld [vmem:[#allocation9 + $0xfc] sm:$0xf0] }
  0x4f   :  { %1099 = vmatpush.bf16.msrb.mxu2 %v3118_v53  ;;  %1112 = vmatpush.bf16.msrb.mxu3 %v3214_v0  ;;  %v4062_v53 = vld [vmem:[#allocation9 + $0x320] sm:$0xf0]  ;;  %v3254_v54 = vor.u32 %v4019_v49, %v3251_v51  ;;  %v4016_v61 = vld [vmem:[#allocation9 + $0x1b4] sm:$0xf]  ;;  %v3146_v62 = vor.u32 %v3992_v59, %v3143_v60  ;;  %v3239_v63 = vld [vmem:[#allocation9 + $0x1bc] sm:$0xf0] }
  0x50   :  { %v3418_v55 = vor.u32 %v4062_v53, %v3417_v52  ;;  %v3405_v0 = vld [vmem:[#allocation9 + $0x300] sm:$0xf]  ;;  %v3242_v1 = vor.u32 %v4016_v61, %v3239_v63  ;;  %v4059_v2 = vld [vmem:[#allocation9 + $0x308] sm:$0xf0]  ;;  %v3989_v7 = vld [vmem:[#allocation9 + $0xdc] sm:$0xf] }
  0x51   :  { %1124 = vmatpush.bf16.msra.mxu0 %v3322_v56  ;;  %1086 = vmatpush.bf16.msrb.mxu1 %v3022_v22  ;;  %v3968_v56 = vld [vmem:[#allocation9 + $0x34] sm:$0xf]  ;;  %v3131_v8 = vld [vmem:[#allocation9 + $0xe4] sm:$0xf0]  ;;  %v4013_v9 = vld [vmem:[#allocation9 + $0x19c] sm:$0xf] }
  0x52   :  { %v3134_v10 = vor.u32 %v3989_v7, %v3131_v8  ;;  %v3227_v11 = vld [vmem:[#allocation9 + $0x1a4] sm:$0xf0]  ;;  %v3962_v12 = vld [vmem:[#allocation9 + $0x4] sm:$0xf]  ;;  %v3215_v20 = vld [vmem:[#allocation9 + $0x18c] sm:$0xf0] }
  0x53   :  { %1144 = vmatpush.bf16.msra.mxu2 %v3110_v57  ;;  %1157 = vmatpush.bf16.msra.mxu3 %v3206_v3  ;;  %v3047_v57 = vld [vmem:[#allocation9 + $0x3c] sm:$0xf0]  ;;  %v3965_v3 = vld [vmem:[#allocation9 + $0x1c] sm:$0xf]  ;;  %v3230_v14 = vor.u32 %v4013_v9, %v3227_v11  ;;  %v3986_v16 = vld [vmem:[#allocation9 + $0xc4] sm:$0xf] }
  0x54   :  { %v3050_v58 = vor.u32 %v3968_v56, %v3047_v57  ;;  %v184_v21 = vld [vmem:[#allocation6] sm:$0x1f]  ;;  %v3395_v49 = vld [vmem:[#allocation9 + $0x2f4] sm:$0xf0]  ;;  %v4052_v63 = vld [vmem:[#allocation9 + $0x2d4] sm:$0xf] }
  0x55   :  { %1125 = vmatpush.bf16.msra.mxu0 %v3310_v4  ;;  %1135 = vmatpush.bf16.msra.mxu1 %v3442_v32  ;;  %v3035_v4 = vld [vmem:[#allocation9 + $0x24] sm:$0xf0]  ;;  %v186_v23 = vperm.slane %v184_v21, 0  ;;  %v187_v24 = vperm.slane %v184_v21, 1  ;;  %v188_v32 = vperm.slane %v184_v21, 2  ;;  %v190_v45 = vperm.slane %v184_v21, 4 }
  0x56   :  { %v4055_v48 = vld [vmem:[#allocation9 + $0x2ec] sm:$0xf]  ;;  %v3443_v53 = vld [vmem:[#allocation9 + $0x354] sm:$0xf0]  ;;  %v3985_v7 = vld [vmem:[#allocation9 + $0xb8] sm:$0xf0] }
  0x57   :  { %1145 = vmatpush.bf16.msra.mxu2 %v3098_v5  ;;  %1158 = vmatpush.bf16.msra.mxu3 %v3194_v13  ;;  %v3406_v5 = vor.u32 %v4059_v2, %v3405_v0  ;;  %v3023_v13 = vld [vmem:[#allocation9 + $0xc] sm:$0xf0]  ;;  %v4067_v52 = vld [vmem:[#allocation9 + $0x34c] sm:$0xf]  ;;  %v3383_v0 = vld [vmem:[#allocation9 + $0x2dc] sm:$0xf0] }
  0x58   :  { %v3026_v15 = vor.u32 %v3962_v12, %v3023_v13  ;;  %v3386_v9 = vor.u32 %v4052_v63, %v3383_v0  ;;  %v4009_v11 = vld [vmem:[#allocation9 + $0x178] sm:$0xf0]  ;;  %vm1075_vm6 = vcmask 523264   ;;  %v3173_v63 = vld [vmem:[#allocation9 + $0x128] sm:$0xf]  ;;  %vm1660_vm7 = vcmask 392192  }
  0x59   :  { %1170 = vmatpush.bf16.msrb.mxu0 %v3302_v6  ;;  %1136 = vmatpush.bf16.msra.mxu1 %v3430_v43  ;;  %v3038_v6 = vor.u32 %v3965_v3, %v3035_v4  ;;  %v4064_v3 = vld [vmem:[#allocation9 + $0x334] sm:$0xf]  ;;  %v3431_v4 = vld [vmem:[#allocation9 + $0x33c] sm:$0xf0]  ;;  %v4049_v12 = vld [vmem:[#allocation9 + $0x2bc] sm:$0xf] }
  0x5a   :  { %v4000_v0 = vld [vmem:[#allocation9 + $0x130] sm:$0xf0] }
  0x5b   :  { %1146 = vmatpush.bf16.msra.mxu2 %v3086_v18  ;;  %1159 = vmatpush.bf16.msra.mxu3 %v3182_v27  ;;  %v4010_v18 = vld [vmem:[#allocation9 + $0x184] sm:$0xf] }
  0x5c   :  { %v3218_v22 = vor.u32 %v4010_v18, %v3215_v20  ;;  %v3419_v20 = vld [vmem:[#allocation9 + $0x324] sm:$0xf0] }
  0x5d   :  { %1171 = vmatpush.bf16.msrb.mxu0 %v3290_v17  ;;  %1137 = vmatpush.bf16.msra.mxu1 %v3418_v55  ;;  %v3119_v17 = vld [vmem:[#allocation9 + $0xcc] sm:$0xf0] }
  0x5e   :  { %v3122_v19 = vor.u32 %v3986_v16, %v3119_v17  ;;  %v3371_v16 = vld [vmem:[#allocation9 + $0x2c4] sm:$0xf0]  ;;  %v3434_v17 = vor.u32 %v4064_v3, %v3431_v4  ;;  %v3335_v3 = vld [vmem:[#allocation9 + $0x27c] sm:$0xf0]  ;;  %v3389_v4 = vld [vmem:[#allocation9 + $0x2d8] sm:$0xf] }
  0x5f   :  { %1147 = vmatpush.bf16.msra.mxu2 %v3074_v34  ;;  %1160 = vmatpush.bf16.msra.mxu3 %v3170_v38  ;;  %v189_v34 = vperm.slane %v184_v21, 3 }
  0x61   :  { %1172 = vmatpush.bf16.msrb.mxu0 %v3278_v28  ;;  %1138 = vmatpush.bf16.msra.mxu1 %v3406_v5 }
  0x63   :  { %1148 = vmatpush.bf16.msra.mxu2 %v3062_v46  ;;  %1161 = vmatpush.bf16.msra.mxu3 %v3158_v50 }
  0x65   :  { %1173 = vmatpush.bf16.msrb.mxu0 %v3266_v42 }
  0x67   :  { %1149 = vmatpush.bf16.msra.mxu2 %v3050_v58  ;;  %1162 = vmatpush.bf16.msra.mxu3 %v3146_v62  ;;  %v3398_v58 = vor.u32 %v4055_v48, %v3395_v49  ;;  %v3347_v48 = vld [vmem:[#allocation9 + $0x294] sm:$0xf0] }
  0x69   :  { %1174 = vmatpush.bf16.msrb.mxu0 %v3254_v54 }
  0x6b   :  { %1150 = vmatpush.bf16.msra.mxu2 %v3038_v6  ;;  %1163 = vmatpush.bf16.msra.mxu3 %v3134_v10  ;;  %v3113_v6 = vld [vmem:[#allocation9 + $0xb0] sm:$0xf] }
  0x6c   :  { %v3209_v10 = vld [vmem:[#allocation9 + $0x170] sm:$0xf] }
  0x6d   :  { %1175 = vmatpush.bf16.msrb.mxu0 %v3242_v1  ;;  %v3446_v1 = vor.u32 %v4067_v52, %v3443_v53  ;;  %v4057_v52 = vld [vmem:[#allocation9 + $0x2f8] sm:$0xf0] }
  0x6f   :  { %1151 = vmatpush.bf16.msra.mxu2 %v3026_v15  ;;  %1164 = vmatpush.bf16.msra.mxu3 %v3122_v19  ;;  %v4061_v19 = vld [vmem:[#allocation9 + $0x31c] sm:$0xf] }
  0x71   :  { %1176 = vmatpush.bf16.msrb.mxu0 %v3230_v14 }
  0x75   :  { %1177 = vmatpush.bf16.msrb.mxu0 %v3218_v22  ;;  %v3114_v22 = vor.u32 %v3985_v7, %v3113_v6  ;;  %v3174_v6 = vor.u32 %v4000_v0, %v3173_v63  ;;  %v3065_v7 = vld [vmem:[#allocation9 + $0x50] sm:$0xf]  ;;  %v3341_v63 = vld [vmem:[#allocation9 + $0x278] sm:$0xf]  ;;  %v4042_v0 = vld [vmem:[#allocation9 + $0x280] sm:$0xf0] }
  0xad   :  { %v261_v25 = vpop.f32.mrf.mxu0 }
  0xae   :  { %v262_v27 = vadd.f32 %v261_v25, %v186_v23  ;;  %v274_v28 = vpop.f32.mrf.mxu1  ;;  %v3210_v25 = vor.u32 %v4009_v11, %v3209_v10  ;;  %v3161_v11 = vld [vmem:[#allocation9 + $0x110] sm:$0xf] }
  0xaf   :  { %v275_v29 = vadd.f32 %v274_v28, %v187_v24 }
  0xb0   :  { %v322_v30 = vmin.f32 %v262_v27, 0.0  ;;  %vm317_vm1 = vcmp.gt.f32.partialorder %v262_v27, 0.0 }
  0xb1   :  { %v323_v31 = vmin.f32 %v275_v29, 0.0  ;;  %vm318_vm2 = vcmp.gt.f32.partialorder %v275_v29, 0.0 }
  0xb2   :  { %v327_v33 = vmul.f32 1.442695, %v322_v30  ;;  %v3982_v30 = vld [vmem:[#allocation9 + $0xa0] sm:$0xf0] }
  0xb3   :  { %v329_v35 = vmul.f32 1.442695, %v323_v31  ;;  %v3197_v31 = vld [vmem:[#allocation9 + $0x158] sm:$0xf] }
  0xb4   :  { %4205 = vpow2.f32 %v327_v33  ;;  %v4006_v33 = vld [vmem:[#allocation9 + $0x160] sm:$0xf0] }
  0xb5   :  { %v287_v36 = vpop.f32.mrf.mxu2  ;;  %4207 = vpow2.f32 %v329_v35  ;;  %v300_v38 = vpop.f32.mrf.mxu3  ;;  %v3359_v35 = vld [vmem:[#allocation9 + $0x2ac] sm:$0xf0] }
  0xb6   :  { %v288_v37 = vadd.f32 %v287_v36, %v188_v32  ;;  %v263_v39 = vpop.f32.mrf.mxu0  ;;  %v301_v40 = vadd.f32 %v300_v38, %v189_v34  ;;  %v276_v41 = vpop.f32.mrf.mxu1  ;;  %v4046_v34 = vld [vmem:[#allocation9 + $0x2a4] sm:$0xf]  ;;  %v3422_v36 = vor.u32 %v4061_v19, %v3419_v20  ;;  %v3407_v38 = vld [vmem:[#allocation9 + $0x30c] sm:$0xf0]  ;;  %v3053_v19 = vld [vmem:[#allocation9 + $0x38] sm:$0xf] }
  0xb7   :  { %v3198_v41 = vor.u32 %v4006_v33, %v3197_v31  ;;  %v3970_v20 = vld [vmem:[#allocation9 + $0x40] sm:$0xf0]  ;;  %v3305_v33 = vld [vmem:[#allocation9 + $0x230] sm:$0xf] }
  0xb8   :  { %v324_v42 = vmin.f32 %v288_v37, 0.0  ;;  %v325_v43 = vmin.f32 %v301_v40, 0.0  ;;  %vm320_vm3 = vcmp.gt.f32.partialorder %v301_v40, 0.0  ;;  %vm319_vm4 = vcmp.gt.f32.partialorder %v288_v37, 0.0 }
  0xb9   :  { %v3054_v31 = vor.u32 %v3970_v20, %v3053_v19  ;;  %v3257_v20 = vld [vmem:[#allocation9 + $0x1d0] sm:$0xf] }
  0xba   :  { %v331_v44 = vmul.f32 1.442695, %v324_v42  ;;  %v4206_v46 = vpop.eup %4205  ;;  %v333_v47 = vmul.f32 1.442695, %v325_v43  ;;  %v3362_v42 = vor.u32 %v4046_v34, %v3359_v35  ;;  %v3979_v43 = vld [vmem:[#allocation9 + $0x88] sm:$0xf0] }
  0xbb   :  { %v4208_v50 = vpop.eup %4207  ;;  %v3014_v51 = vadd.f32 -1.0, %v4206_v46  ;;  %v4033_v34 = vld [vmem:[#allocation9 + $0x238] sm:$0xf0] }
  0xbc   :  { %4209 = vpow2.f32 %v331_v44  ;;  %v3015_v55 = vadd.f32 -1.0, %v4208_v50  ;;  %v3185_v44 = vld [vmem:[#allocation9 + $0x140] sm:$0xf] }
  0xbd   :  { %4211 = vpow2.f32 %v333_v47  ;;  %v289_v54 = vpop.f32.mrf.mxu2  ;;  %v342_v57 = vsel %vm317_vm1, %v262_v27, %v3014_v51  ;;  %v302_v59 = vpop.f32.mrf.mxu3  ;;  %v3374_v27 = vor.u32 %v4049_v12, %v3371_v16  ;;  %v4043_v47 = vld [vmem:[#allocation9 + $0x28c] sm:$0xf]  ;;  %v3401_v51 = vld [vmem:[#allocation9 + $0x2f0] sm:$0xf]  ;;  %v3997_v12 = vld [vmem:[#allocation9 + $0x118] sm:$0xf0] }
  0xbe   :  { %v313_v56 = vpop.f32.mrf.mxu0  ;;  %v4580_v61 = vpack.c.bf16 %v342_v57, %v342_v57  ;;  %v343_v62 = vsel %vm318_vm2, %v275_v29, %v3015_v55  ;;  %v3101_v29 = vld [vmem:[#allocation9 + $0x98] sm:$0xf]  ;;  %v3976_v57 = vld [vmem:[#allocation9 + $0x70] sm:$0xf0]  ;;  %v3350_v59 = vor.u32 %v4043_v47, %v3347_v48  ;;  %v4051_v16 = vld [vmem:[#allocation9 + $0x2c8] sm:$0xf0] }
  0xbf   :  { %v4578_v60 = vadd.f32 %v313_v56, %v190_v45  ;;  %v4582_v2 = vpack.c.bf16 %v343_v62, %v343_v62  ;;  %v3102_v39 = vor.u32 %v3982_v30, %v3101_v29  ;;  %v4003_v45 = vld [vmem:[#allocation9 + $0x148] sm:$0xf0]  ;;  %v3077_v56 = vld [vmem:[#allocation9 + $0x68] sm:$0xf]  ;;  %v3402_v62 = vor.u32 %v4057_v52, %v3401_v51  ;;  %v4048_v30 = vld [vmem:[#allocation9 + $0x2b0] sm:$0xf0] }
  0xc0   :  { %1087 = vmatmul.bf16.vlgmr.msrb.gmra.mxu1 %v4580_v61  ;;  %v3186_v55 = vor.u32 %v4003_v45, %v3185_v44  ;;  %v3365_v29 = vld [vmem:[#allocation9 + $0x2a8] sm:$0xf]  ;;  %v4030_v45 = vld [vmem:[#allocation9 + $0x220] sm:$0xf0]  ;;  %v4045_v47 = vld [vmem:[#allocation9 + $0x298] sm:$0xf0] }
  0xc1   :  { %v326_v5 = vmin.f32 %v4578_v60, 0.0  ;;  %1100 = vmatmul.bf16.vlgmr.msrb.gmra.mxu2 %v4582_v2  ;;  %1183 = vmatpush.bf16.msrb.mxu1 %v3398_v58  ;;  %vm321_vm5 = vcmp.gt.f32.partialorder %v4578_v60, 0.0  ;;  %v3125_v51 = vld [vmem:[#allocation9 + $0xc8] sm:$0xf]  ;;  %v3988_v52 = vld [vmem:[#allocation9 + $0xd0] sm:$0xf0] }
  0xc2   :  { %v4210_v8 = vpop.eup %4209  ;;  %1200 = vmatpush.bf16.msrb.mxu2 %v3446_v1  ;;  %v4040_v1 = vld [vmem:[#allocation9 + $0x274] sm:$0xf] }
  0xc3   :  { %v4212_v13 = vpop.eup %4211  ;;  %v335_v14 = vmul.f32 1.442695, %v326_v5  ;;  %v3016_v15 = vadd.f32 -1.0, %v4210_v8  ;;  %v4054_v5 = vld [vmem:[#allocation9 + $0x2e0] sm:$0xf0] }
  0xc4   :  { %v3017_v18 = vadd.f32 -1.0, %v4212_v13  ;;  %v3973_v8 = vld [vmem:[#allocation9 + $0x58] sm:$0xf0]  ;;  %v3390_v10 = vor.u32 %v4054_v5, %v3389_v4  ;;  %v3437_v4 = vld [vmem:[#allocation9 + $0x338] sm:$0xf] }
  0xc5   :  { %4213 = vpow2.f32 %v335_v14  ;;  %v344_v21 = vsel %vm319_vm4, %v288_v37, %v3016_v15  ;;  %1184 = vmatpush.bf16.msrb.mxu1 %v3386_v9  ;;  %v4058_v37 = vld [vmem:[#allocation9 + $0x304] sm:$0xf]  ;;  %v3338_v9 = vor.u32 %v4040_v1, %v3335_v3  ;;  %v4037_v13 = vld [vmem:[#allocation9 + $0x25c] sm:$0xf]  ;;  %v3323_v14 = vld [vmem:[#allocation9 + $0x264] sm:$0xf0]  ;;  %v3126_v1 = vor.u32 %v3988_v52, %v3125_v51 }
  0xc6   :  { %v345_v23 = vsel %vm320_vm3, %v301_v40, %v3017_v18  ;;  %v4587_v24 = vpack.c.bf16 %v344_v21, %v344_v21  ;;  %v315_v28 = vpop.f32.mrf.mxu0  ;;  %1201 = vmatpush.bf16.msrb.mxu2 %v3434_v17  ;;  %v3089_v40 = vld [vmem:[#allocation9 + $0x80] sm:$0xf]  ;;  %v3410_v49 = vor.u32 %v4058_v37, %v3407_v38  ;;  %v3066_v17 = vor.u32 %v3973_v8, %v3065_v7  ;;  %v3967_v37 = vld [vmem:[#allocation9 + $0x28] sm:$0xf0]  ;;  %v4066_v5 = vld [vmem:[#allocation9 + $0x340] sm:$0xf0] }
  0xc7   :  { %v4589_v32 = vpack.c.bf16 %v345_v23, %v345_v23  ;;  %v3090_v53 = vor.u32 %v3979_v43, %v3089_v40  ;;  %v3377_v15 = vld [vmem:[#allocation9 + $0x2c0] sm:$0xf]  ;;  %v3162_v18 = vor.u32 %v3997_v12, %v3161_v11  ;;  %v3326_v21 = vor.u32 %v4037_v13, %v3323_v14  ;;  %v3149_v23 = vld [vmem:[#allocation9 + $0xf8] sm:$0xf]  ;;  %v3311_v28 = vld [vmem:[#allocation9 + $0x24c] sm:$0xf0] }
  0xc8   :  { %1113 = vmatmul.bf16.vlgmr.msrb.gmra.mxu3 %v4587_v24  ;;  %v3137_v40 = vld [vmem:[#allocation9 + $0xe0] sm:$0xf]  ;;  %v3293_v43 = vld [vmem:[#allocation9 + $0x218] sm:$0xf]  ;;  %v3342_v8 = vor.u32 %v4042_v0, %v3341_v63  ;;  %v4024_v11 = vld [vmem:[#allocation9 + $0x1f0] sm:$0xf0]  ;;  %v3438_v14 = vor.u32 %v4066_v5, %v3437_v4 }
  0xc9   :  { %1126 = vmatmul.bf16.vlgmr.msra.gmra.mxu0 %v4589_v32  ;;  %1209 = vmatpush.bf16.msrb.mxu3 %v3114_v22  ;;  %v3378_v22 = vor.u32 %v4051_v16, %v3377_v15  ;;  %v3329_v12 = vld [vmem:[#allocation9 + $0x260] sm:$0xf]  ;;  %v4039_v13 = vld [vmem:[#allocation9 + $0x268] sm:$0xf0]  ;;  %v4012_v51 = vld [vmem:[#allocation9 + $0x190] sm:$0xf0] }
  0xca   :  { %1222 = vmatpush.bf16.msra.mxu0 %v3210_v25  ;;  %1185 = vmatpush.bf16.msrb.mxu1 %v3374_v27  ;;  %v3994_v25 = vld [vmem:[#allocation9 + $0x100] sm:$0xf0]  ;;  %v3425_v15 = vld [vmem:[#allocation9 + $0x320] sm:$0xf]  ;;  %v4063_v16 = vld [vmem:[#allocation9 + $0x328] sm:$0xf0]  ;;  %v3330_v19 = vor.u32 %v4039_v13, %v3329_v12 }
  0xcb   :  { %v4214_v46 = vpop.eup %4213  ;;  %1202 = vmatpush.bf16.msrb.mxu2 %v3422_v36  ;;  %v4034_v27 = vld [vmem:[#allocation9 + $0x244] sm:$0xf]  ;;  %v3150_v35 = vor.u32 %v3994_v25, %v3149_v23  ;;  %v3041_v36 = vld [vmem:[#allocation9 + $0x20] sm:$0xf]  ;;  %v3317_v23 = vld [vmem:[#allocation9 + $0x248] sm:$0xf] }
  0xcc   :  { %v3018_v50 = vadd.f32 -1.0, %v4214_v46  ;;  %v3314_v38 = vor.u32 %v4034_v27, %v3311_v28  ;;  %v3042_v44 = vor.u32 %v3967_v37, %v3041_v36  ;;  %v3353_v46 = vld [vmem:[#allocation9 + $0x290] sm:$0xf]  ;;  %v4036_v25 = vld [vmem:[#allocation9 + $0x250] sm:$0xf0]  ;;  %v3426_v28 = vor.u32 %v4063_v16, %v3425_v15 }
  0xcd   :  { %1210 = vmatpush.bf16.msrb.mxu3 %v3102_v39  ;;  %v3366_v39 = vor.u32 %v4048_v30, %v3365_v29  ;;  %v3413_v29 = vld [vmem:[#allocation9 + $0x308] sm:$0xf]  ;;  %v4060_v30 = vld [vmem:[#allocation9 + $0x310] sm:$0xf0]  ;;  %v3542_v36 = vld [vmem:[#allocation10 + $0xb4] sm:$0xf0] }
  0xce   :  { %v346_v54 = vsel %vm321_vm5, %v4578_v60, %v3018_v50  ;;  %1223 = vmatpush.bf16.msra.mxu0 %v3198_v41  ;;  %1186 = vmatpush.bf16.msrb.mxu1 %v3362_v42  ;;  %v3078_v60 = vor.u32 %v3976_v57, %v3077_v56  ;;  %v3991_v41 = vld [vmem:[#allocation9 + $0xe8] sm:$0xf0]  ;;  %v3306_v42 = vor.u32 %v4033_v34, %v3305_v33  ;;  %v3964_v50 = vld [vmem:[#allocation9 + $0x10] sm:$0xf0]  ;;  %v3281_v57 = vld [vmem:[#allocation9 + $0x200] sm:$0xf] }
  0xcf   :  { %v4595_v58 = vpack.c.bf16 %v346_v54, %v346_v54  ;;  %1203 = vmatpush.bf16.msrb.mxu2 %v3410_v49  ;;  %v3138_v48 = vor.u32 %v3991_v41, %v3137_v40  ;;  %v3029_v49 = vld [vmem:[#allocation9 + $0x8] sm:$0xf]  ;;  %v4069_v54 = vld [vmem:[#allocation9 + $0x358] sm:$0xf0]  ;;  %v3354_v56 = vor.u32 %v4045_v47, %v3353_v46  ;;  %v3318_v34 = vor.u32 %v4036_v25, %v3317_v23  ;;  %v4086_v37 = vld [vmem:[#allocation10 + $0x80] sm:$0xf0] }
  0xd0   :  { %v3636_v52 = vld [vmem:[#allocation10 + $0x168] sm:$0xf]  ;;  %v4079_v0 = vld [vmem:[#allocation10 + $0x4c] sm:$0xf]  ;;  %v4076_v5 = vld [vmem:[#allocation10 + $0x34] sm:$0xf] }
  0xd1   :  { %1211 = vmatpush.bf16.msrb.mxu3 %v3090_v53  ;;  %3451 = vmatmul.msk.bf16.vlgmr.msra.gmra.mxu1 %vm1075_vm6, %v4595_v58  ;;  %v3449_v53 = vld [vmem:[#allocation9 + $0x350] sm:$0xf]  ;;  %v4117_v12 = vld [vmem:[#allocation10 + $0x178] sm:$0xf0]  ;;  %v4110_v15 = vld [vmem:[#allocation10 + $0x140] sm:$0xf0] }
  0xd2   :  { %1224 = vmatpush.bf16.msra.mxu0 %v3186_v55  ;;  %1152 = vmatmul.bf16.vlgmr.msra.gmra.mxu2 %v4580_v61  ;;  %v3294_v55 = vor.u32 %v4030_v45, %v3293_v43  ;;  %v3450_v3 = vor.u32 %v4069_v54, %v3449_v53  ;;  %v3530_v43 = vld [vmem:[#allocation10 + $0x9c] sm:$0xf0]  ;;  %v4015_v45 = vld [vmem:[#allocation9 + $0x1a8] sm:$0xf0]  ;;  %v4116_v53 = vld [vmem:[#allocation10 + $0x170] sm:$0xf0] }
  0xd3   :  { %1187 = vmatpush.bf16.msrb.mxu1 %v3350_v59  ;;  %1248 = vmatpush.bf16.msra.mxu2 %v3402_v62  ;;  %v3030_v59 = vor.u32 %v3964_v50, %v3029_v49  ;;  %v4027_v62 = vld [vmem:[#allocation9 + $0x208] sm:$0xf0]  ;;  %v3518_v49 = vld [vmem:[#allocation10 + $0x84] sm:$0xf0] }
  0xd4   :  { %v3282_v7 = vor.u32 %v4027_v62, %v3281_v57  ;;  %v3221_v50 = vld [vmem:[#allocation9 + $0x188] sm:$0xf]  ;;  %v3506_v57 = vld [vmem:[#allocation10 + $0x6c] sm:$0xf0]  ;;  %v4113_v62 = vld [vmem:[#allocation10 + $0x158] sm:$0xf0] }
  0xd5   :  { %1212 = vmatpush.bf16.msrb.mxu3 %v3078_v60  ;;  %v3540_v60 = vld [vmem:[#allocation10 + $0xa8] sm:$0xf]  ;;  %v4107_v23 = vld [vmem:[#allocation10 + $0x128] sm:$0xf0] }
  0xd6   :  { %1225 = vmatpush.bf16.msra.mxu0 %v3174_v6  ;;  %v4092_v6 = vld [vmem:[#allocation10 + $0xb0] sm:$0xf0] }
  0xd7   :  { %1188 = vmatpush.bf16.msrb.mxu1 %v3338_v9  ;;  %1249 = vmatpush.bf16.msra.mxu2 %v3390_v10  ;;  %v3269_v9 = vld [vmem:[#allocation9 + $0x1e8] sm:$0xf]  ;;  %v3541_v10 = vor.u32 %v4092_v6, %v3540_v60  ;;  %v3482_v60 = vld [vmem:[#allocation10 + $0x3c] sm:$0xf0] }
  0xd8   :  { %1165 = vmatmul.bf16.vlgmr.msra.gmra.mxu3 %v4582_v2  ;;  %v3485_v6 = vor.u32 %v4076_v5, %v3482_v60  ;;  %v3572_v5 = vld [vmem:[#allocation10 + $0xe0] sm:$0xf]  ;;  %v4099_v60 = vld [vmem:[#allocation10 + $0xe8] sm:$0xf0] }
  0xd9   :  { %1178 = vmatmul.bf16.vlgmr.msrb.gmra.mxu0 %v4587_v24  ;;  %1213 = vmatpush.bf16.msrb.mxu3 %v3066_v17  ;;  %v3528_v17 = vld [vmem:[#allocation10 + $0x90] sm:$0xf] }
  0xda   :  { %1226 = vmatpush.bf16.msra.mxu0 %v3162_v18  ;;  %v3270_v18 = vor.u32 %v4024_v11, %v3269_v9  ;;  %v4070_v9 = vld [vmem:[#allocation10 + $0x4] sm:$0xf]  ;;  %v3644_v11 = vld [vmem:[#allocation10 + $0x170] sm:$0xf] }
  0xdb   :  { %1189 = vmatpush.bf16.msrb.mxu1 %v3326_v21  ;;  %1250 = vmatpush.bf16.msra.mxu2 %v3378_v22  ;;  %v4089_v21 = vld [vmem:[#allocation10 + $0x98] sm:$0xf0] }
  0xdc   :  { %v4021_v22 = vld [vmem:[#allocation9 + $0x1d8] sm:$0xf0]  ;;  %v3529_v27 = vor.u32 %v4089_v21, %v3528_v17  ;;  %v3504_v17 = vld [vmem:[#allocation10 + $0x60] sm:$0xf]  ;;  %v4114_v21 = vld [vmem:[#allocation10 + $0x160] sm:$0xf0] }
  0xdd   :  { %1214 = vmatpush.bf16.msrb.mxu3 %v3054_v31  ;;  %v3516_v31 = vld [vmem:[#allocation10 + $0x78] sm:$0xf]  ;;  %v3258_v33 = vor.u32 %v4021_v22, %v3257_v20  ;;  %v3600_v22 = vld [vmem:[#allocation10 + $0x120] sm:$0xf] }
  0xde   :  { %1227 = vmatpush.bf16.msra.mxu0 %v3150_v35  ;;  %v4091_v35 = vld [vmem:[#allocation10 + $0xac] sm:$0xf] }
  0xdf   :  { %1190 = vmatpush.bf16.msrb.mxu1 %v3314_v38  ;;  %1251 = vmatpush.bf16.msra.mxu2 %v3366_v39  ;;  %v4018_v38 = vld [vmem:[#allocation9 + $0x1c0] sm:$0xf0]  ;;  %v3414_v39 = vor.u32 %v4060_v30, %v3413_v29  ;;  %v3545_v40 = vor.u32 %v4091_v35, %v3542_v36  ;;  %v4080_v29 = vld [vmem:[#allocation10 + $0x50] sm:$0xf0]  ;;  %v3588_v35 = vld [vmem:[#allocation10 + $0x108] sm:$0xf] }
  0xe0   :  { %v4104_v36 = vld [vmem:[#allocation10 + $0x110] sm:$0xf0] }
  0xe1   :  { %1215 = vmatpush.bf16.msrb.mxu3 %v3042_v44  ;;  %v3233_v44 = vld [vmem:[#allocation9 + $0x1a0] sm:$0xf] }
  0xe2   :  { %1228 = vmatpush.bf16.msra.mxu0 %v3138_v48  ;;  %1191 = vmatmul.bf16.vlgmr.msrb.gmra.mxu1 %v4589_v32  ;;  %v3234_v47 = vor.u32 %v4015_v45, %v3233_v44  ;;  %v4085_v48 = vld [vmem:[#allocation10 + $0x7c] sm:$0xf]  ;;  %v3468_v45 = vld [vmem:[#allocation10 + $0x18] sm:$0xf] }
  0xe3   :  { %1235 = vmatpush.bf16.msra.mxu1 %v3306_v42  ;;  %3452 = vmatmul.msk.bf16.vlgmr.msrb.gmra.mxu2 %vm1075_vm6, %v4595_v58  ;;  %v4088_v42 = vld [vmem:[#allocation10 + $0x94] sm:$0xf]  ;;  %v3521_v54 = vor.u32 %v4085_v48, %v3518_v49  ;;  %v3596_v48 = vld [vmem:[#allocation10 + $0x110] sm:$0xf]  ;;  %v4105_v49 = vld [vmem:[#allocation10 + $0x118] sm:$0xf0] }
  0xe4   :  { %1252 = vmatpush.bf16.msra.mxu2 %v3354_v56  ;;  %v3533_v46 = vor.u32 %v4088_v42, %v3530_v43  ;;  %v4082_v56 = vld [vmem:[#allocation10 + $0x64] sm:$0xf]  ;;  %v3576_v42 = vld [vmem:[#allocation10 + $0xf0] sm:$0xf]  ;;  %v4101_v43 = vld [vmem:[#allocation10 + $0xf8] sm:$0xf0] }
  0xe5   :  { %1216 = vmatpush.bf16.msrb.mxu3 %v3030_v59  ;;  %v3624_v59 = vld [vmem:[#allocation10 + $0x150] sm:$0xf]  ;;  %v3509_v63 = vor.u32 %v4082_v56, %v3506_v57  ;;  %v3577_v44 = vor.u32 %v4101_v43, %v3576_v42  ;;  %v3584_v57 = vld [vmem:[#allocation10 + $0xf8] sm:$0xf]  ;;  %v4112_v43 = vld [vmem:[#allocation10 + $0x154] sm:$0xf] }
  0xe6   :  { %1229 = vmatpush.bf16.msra.mxu0 %v3126_v1  ;;  %v3494_v1 = vld [vmem:[#allocation10 + $0x54] sm:$0xf0] }
  0xe7   :  { %1236 = vmatpush.bf16.msra.mxu1 %v3294_v55  ;;  %v3222_v55 = vor.u32 %v4012_v51, %v3221_v50  ;;  %v3497_v4 = vor.u32 %v4079_v0, %v3494_v1  ;;  %v3597_v50 = vor.u32 %v4105_v49, %v3596_v48  ;;  %v3564_v51 = vld [vmem:[#allocation10 + $0xd8] sm:$0xf]  ;;  %v3548_v1 = vld [vmem:[#allocation10 + $0xb0] sm:$0xf]  ;;  %v3476_v48 = vld [vmem:[#allocation10 + $0x20] sm:$0xf] }
  0xe8   :  { %1253 = vmatpush.bf16.msra.mxu2 %v3342_v8  ;;  %1217 = vmatmul.bf16.vlgmr.msrb.gmra.mxu3 %v4580_v61  ;;  %v3245_v61 = vld [vmem:[#allocation9 + $0x1b8] sm:$0xf]  ;;  %v4075_v49 = vld [vmem:[#allocation10 + $0x28] sm:$0xf0] }
  0xe9   :  { %1265 = vmatpush.bf16.msra.mxu3 %v3450_v3  ;;  %1230 = vmatmul.bf16.vlgmr.msra.gmra.mxu0 %v4582_v2  ;;  %v3517_v2 = vor.u32 %v4086_v37, %v3516_v31  ;;  %v3246_v41 = vor.u32 %v4018_v38, %v3245_v61  ;;  %v3625_v3 = vor.u32 %v4113_v62, %v3624_v59  ;;  %v3620_v31 = vld [vmem:[#allocation10 + $0x140] sm:$0xf]  ;;  %v3480_v37 = vld [vmem:[#allocation10 + $0x30] sm:$0xf]  ;;  %v4077_v38 = vld [vmem:[#allocation10 + $0x38] sm:$0xf0] }
  0xea   :  { %1664 = vmatpush.bf16.msrb.mxu0 %v3541_v10  ;;  %v3458_v10 = vld [vmem:[#allocation10 + $0xc] sm:$0xf0]  ;;  %v3589_v61 = vor.u32 %v4104_v36, %v3588_v35  ;;  %v3552_v62 = vld [vmem:[#allocation10 + $0xc0] sm:$0xf]  ;;  %v4115_v36 = vld [vmem:[#allocation10 + $0x16c] sm:$0xf] }
  0xeb   :  { %1237 = vmatpush.bf16.msra.mxu1 %v3282_v7  ;;  %v3470_v7 = vld [vmem:[#allocation10 + $0x24] sm:$0xf0]  ;;  %v3461_v13 = vor.u32 %v4070_v9, %v3458_v10  ;;  %v4096_v10 = vld [vmem:[#allocation10 + $0xd0] sm:$0xf0] }
  0xec   :  { %1254 = vmatpush.bf16.msra.mxu2 %v3330_v19  ;;  %v3632_v19 = vld [vmem:[#allocation10 + $0x158] sm:$0xf] }
  0xed   :  { %1266 = vmatpush.bf16.msra.mxu3 %v3438_v14  ;;  %v3645_v14 = vor.u32 %v4117_v12, %v3644_v11  ;;  %v3633_v25 = vor.u32 %v4114_v21, %v3632_v19  ;;  %v3524_v12 = vld [vmem:[#allocation10 + $0x80] sm:$0xf]  ;;  %v4084_v19 = vld [vmem:[#allocation10 + $0x70] sm:$0xf0]  ;;  %v3660_v21 = vld [vmem:[#allocation10 + $0x198] sm:$0xf] }
  0xee   :  { %1665 = vmatpush.bf16.msrb.mxu0 %v3529_v27  ;;  %v3601_v27 = vor.u32 %v4107_v23, %v3600_v22  ;;  %v4122_v22 = vld [vmem:[#allocation10 + $0x1a0] sm:$0xf0]  ;;  %v4611_v23 = vld [vmem:[#allocation13] sm:$0x3f] }
  0xef   :  { %1238 = vmatpush.bf16.msra.mxu1 %v3270_v18  ;;  %v4083_v18 = vld [vmem:[#allocation10 + $0x68] sm:$0xf0] }
  0xf0   :  { %1255 = vmatpush.bf16.msra.mxu2 %v3318_v34  ;;  %v3505_v20 = vor.u32 %v4083_v18, %v3504_v17  ;;  %v3512_v18 = vld [vmem:[#allocation10 + $0x68] sm:$0xf] }
  0xf1   :  { %1267 = vmatpush.bf16.msra.mxu3 %v3426_v28  ;;  %v3492_v28 = vld [vmem:[#allocation10 + $0x48] sm:$0xf] }
  0xf2   :  { %1666 = vmatpush.bf16.msrb.mxu0 %v3517_v2  ;;  %v3493_v30 = vor.u32 %v4080_v29, %v3492_v28  ;;  %v3608_v2 = vld [vmem:[#allocation10 + $0x128] sm:$0xf]  ;;  %v4081_v28 = vld [vmem:[#allocation10 + $0x58] sm:$0xf0]  ;;  %v496_v29 = vperm.slane %v4611_v23, 0 }
  0xf3   :  { %1239 = vmatpush.bf16.msra.mxu1 %v3258_v33  ;;  %1256 = vmatmul.bf16.vlgmr.msra.gmra.mxu2 %v4589_v32  ;;  %v3637_v32 = vor.u32 %v4116_v53, %v3636_v52  ;;  %v4111_v33 = vld [vmem:[#allocation10 + $0x148] sm:$0xf0]  ;;  %v4098_v52 = vld [vmem:[#allocation10 + $0xe0] sm:$0xf0] }
  0xf4   :  { %v3621_v34 = vor.u32 %v4111_v33, %v3620_v31  ;;  %v3565_v53 = vor.u32 %v4098_v52, %v3564_v51  ;;  %v3648_v31 = vld [vmem:[#allocation10 + $0x180] sm:$0xf]  ;;  %v4119_v33 = vld [vmem:[#allocation10 + $0x188] sm:$0xf0]  ;;  %v3477_v51 = vor.u32 %v4075_v49, %v3476_v48  ;;  %v4136_v49 = vld [vmem:[#allocation12 + $0x4c] sm:$0xf] }
  0xf5   :  { %1268 = vmatpush.bf16.msra.mxu3 %v3414_v39  ;;  %v4108_v39 = vld [vmem:[#allocation10 + $0x130] sm:$0xf0]  ;;  %v3649_v35 = vor.u32 %v4119_v33, %v3648_v31 }
  0xf6   :  { %1667 = vmatpush.bf16.msrb.mxu0 %v3505_v20  ;;  %v3513_v20 = vor.u32 %v4084_v19, %v3512_v18  ;;  %v4103_v18 = vld [vmem:[#allocation10 + $0x10c] sm:$0xf]  ;;  %v3590_v19 = vld [vmem:[#allocation10 + $0x114] sm:$0xf0] }
  0xf7   :  { %1240 = vmatpush.bf16.msra.mxu1 %v3246_v41  ;;  %v3609_v41 = vor.u32 %v4108_v39, %v3608_v2  ;;  %v3488_v39 = vld [vmem:[#allocation10 + $0x38] sm:$0xf] }
  0xf8   :  { %3453 = vmatmul.msk.bf16.vlgmr.msra.gmra.mxu3 %vm1075_vm6, %v4595_v58  ;;  %v4073_v58 = vld [vmem:[#allocation10 + $0x1c] sm:$0xf] }
  0xf9   :  { %1703 = vmatpush.bf16.msrb.mxu3 %v3545_v40  ;;  %v3473_v8 = vor.u32 %v4073_v58, %v3470_v7  ;;  %v3481_v40 = vor.u32 %v4077_v38, %v3480_v37  ;;  %v3536_v58 = vld [vmem:[#allocation10 + $0x98] sm:$0xf]  ;;  %v4090_v7 = vld [vmem:[#allocation10 + $0xa0] sm:$0xf0] }
  0xfa   :  { %1668 = vmatpush.bf16.msrb.mxu0 %v3493_v30  ;;  %v3537_v9 = vor.u32 %v4090_v7, %v3536_v58  ;;  %v3638_v37 = vld [vmem:[#allocation10 + $0x174] sm:$0xf0]  ;;  %v4106_v58 = vld [vmem:[#allocation10 + $0x124] sm:$0xf]  ;;  %v3602_v7 = vld [vmem:[#allocation10 + $0x12c] sm:$0xf0] }
  0xfb   :  { %1241 = vmatpush.bf16.msra.mxu1 %v3234_v47  ;;  %v3641_v2 = vor.u32 %v4115_v36, %v3638_v37  ;;  %v3680_v36 = vld [vmem:[#allocation10 + $0x1b8] sm:$0xf]  ;;  %v4139_v37 = vld [vmem:[#allocation12 + $0x64] sm:$0xf] }
  0xfd   :  { %1704 = vmatpush.bf16.msrb.mxu3 %v3533_v46  ;;  %v4074_v46 = vld [vmem:[#allocation10 + $0x20] sm:$0xf0] }
  0xfe   :  { %1669 = vmatpush.bf16.msrb.mxu0 %v3481_v40  ;;  %v3469_v47 = vor.u32 %v4074_v46, %v3468_v45  ;;  %v4078_v40 = vld [vmem:[#allocation10 + $0x40] sm:$0xf0] }
  0xff   :  { %1242 = vmatpush.bf16.msra.mxu1 %v3222_v55  ;;  %v4071_v55 = vld [vmem:[#allocation10 + $0x8] sm:$0xf0]  ;;  %v3489_v42 = vor.u32 %v4078_v40, %v3488_v39 }
 0x101   :  { %1705 = vmatpush.bf16.msrb.mxu3 %v3521_v54  ;;  %v3456_v54 = vld [vmem:[#allocation10] sm:$0xf] }
 0x102   :  { %1243 = vmatmul.bf16.vlgmr.msra.gmra.mxu1 %v4587_v24  ;;  %v3612_v24 = vld [vmem:[#allocation10 + $0x138] sm:$0xf]  ;;  %1670 = vmatpush.bf16.msrb.mxu0 %v3469_v47  ;;  %v3457_v56 = vor.u32 %v4071_v55, %v3456_v54  ;;  %v4109_v54 = vld [vmem:[#allocation10 + $0x13c] sm:$0xf]  ;;  %v3614_v55 = vld [vmem:[#allocation10 + $0x144] sm:$0xf0] }
 0x103   :  { %1677 = vmatpush.bf16.msrb.mxu1 %v3637_v32  ;;  %v3613_v16 = vor.u32 %v4110_v15, %v3612_v24  ;;  %v4102_v32 = vld [vmem:[#allocation10 + $0x100] sm:$0xf0]  ;;  %v3672_v24 = vld [vmem:[#allocation10 + $0x1b0] sm:$0xf]  ;;  %v4125_v15 = vld [vmem:[#allocation10 + $0x1b8] sm:$0xf0] }
 0x104   :  { %v3585_v59 = vor.u32 %v4102_v32, %v3584_v57 }
 0x105   :  { %1706 = vmatpush.bf16.msrb.mxu3 %v3509_v63  ;;  %v4095_v63 = vld [vmem:[#allocation10 + $0xc8] sm:$0xf0] }
 0x106   :  { %1671 = vmatpush.bf16.msrb.mxu0 %v3457_v56  ;;  %v3553_v0 = vor.u32 %v4095_v63, %v3552_v62  ;;  %v3617_v62 = vor.u32 %v4109_v54, %v3614_v55  ;;  %v3464_v63 = vld [vmem:[#allocation10 + $0x8] sm:$0xf] }
 0x107   :  { %1678 = vmatpush.bf16.msrb.mxu1 %v3625_v3  ;;  %v4093_v3 = vld [vmem:[#allocation10 + $0xb8] sm:$0xf0] }
 0x109   :  { %1707 = vmatpush.bf16.msrb.mxu3 %v3497_v4  ;;  %v3549_v4 = vor.u32 %v4093_v3, %v3548_v1  ;;  %v4124_v3 = vld [vmem:[#allocation10 + $0x1b4] sm:$0xf] }
 0x10b   :  { %1679 = vmatpush.bf16.msrb.mxu1 %v3613_v16  ;;  %v3673_v16 = vor.u32 %v4125_v15, %v3672_v24  ;;  %v3662_v24 = vld [vmem:[#allocation10 + $0x1a4] sm:$0xf0] }
 0x10d   :  { %1708 = vmatpush.bf16.msrb.mxu3 %v3485_v6  ;;  %v3573_v6 = vor.u32 %v4099_v60, %v3572_v5  ;;  %1695 = vmatpush.bf16.msrb.mxu2 %v3673_v16 }
 0x10f   :  { %1680 = vmatpush.bf16.msrb.mxu1 %v3601_v27  ;;  %v3500_v27 = vld [vmem:[#allocation10 + $0x50] sm:$0xf] }
 0x110   :  { %v3501_v30 = vor.u32 %v4081_v28, %v3500_v27  ;;  %v3593_v27 = vor.u32 %v4103_v18, %v3590_v19  ;;  %v4118_v28 = vld [vmem:[#allocation10 + $0x184] sm:$0xf]  ;;  %v4179_v18 = vld [vmem:[#allocation12 + $0x1a0] sm:$0xf0] }
 0x111   :  { %1709 = vmatpush.bf16.msrb.mxu3 %v3473_v8  ;;  %v3560_v8 = vld [vmem:[#allocation10 + $0xc8] sm:$0xf]  ;;  %v4127_v19 = vld [vmem:[#allocation12 + $0x4] sm:$0xf] }
 0x112   :  { %v3561_v11 = vor.u32 %v4096_v10, %v3560_v8  ;;  %v3764_v10 = vld [vmem:[#allocation12 + $0x9c] sm:$0xf0] }
 0x113   :  { %1681 = vmatpush.bf16.msrb.mxu1 %v3589_v61 }
 0x115   :  { %1710 = vmatpush.bf16.msrb.mxu3 %v3461_v13  ;;  %v4087_v13 = vld [vmem:[#allocation10 + $0x88] sm:$0xf0] }
 0x117   :  { %1682 = vmatpush.bf16.msrb.mxu1 %v3577_v44  ;;  %v3626_v44 = vld [vmem:[#allocation10 + $0x15c] sm:$0xf0] }
 0x118   :  { %v3629_v46 = vor.u32 %v4112_v43, %v3626_v44 }
 0x119   :  { %1755 = vmatpush.bf16.msra.mxu3 %v3645_v14  ;;  %v3525_v14 = vor.u32 %v4087_v13, %v3524_v12  ;;  %v4618_v13 = vld [vmem:[#allocation13 + $0x8] sm:$0x3f] }
 0x11b   :  { %1683 = vmatpush.bf16.msrb.mxu1 %v3565_v53  ;;  %v4148_v53 = vld [vmem:[#allocation12 + $0xac] sm:$0xf] }
 0x11d   :  { %1756 = vmatpush.bf16.msra.mxu3 %v3633_v25  ;;  %v3661_v25 = vor.u32 %v4122_v22, %v3660_v21  ;;  %v4142_v22 = vld [vmem:[#allocation12 + $0x7c] sm:$0xf] }
 0x11f   :  { %1684 = vmatpush.bf16.msrb.mxu1 %v3553_v0  ;;  %1696 = vmatpush.bf16.msrb.mxu2 %v3661_v25  ;;  %v4072_v0 = vld [vmem:[#allocation10 + $0x10] sm:$0xf0]  ;;  %v3752_v25 = vld [vmem:[#allocation12 + $0x84] sm:$0xf0] }
 0x120   :  { %v3465_v1 = vor.u32 %v4072_v0, %v3464_v63  ;;  %v3755_v33 = vor.u32 %v4142_v22, %v3752_v25  ;;  %v3716_v63 = vld [vmem:[#allocation12 + $0x3c] sm:$0xf0]  ;;  %v4183_v22 = vld [vmem:[#allocation12 + $0x1c0] sm:$0xf0] }
 0x121   :  { %1757 = vmatpush.bf16.msra.mxu3 %v3621_v34 }
 0x123   :  { %1742 = vmatpush.bf16.msra.mxu1 %v3549_v4  ;;  %1697 = vmatpush.bf16.msrb.mxu2 %v3649_v35  ;;  %v3674_v4 = vld [vmem:[#allocation10 + $0x1bc] sm:$0xf0] }
 0x124   :  { %v3677_v60 = vor.u32 %v4124_v3, %v3674_v4  ;;  %v3578_v35 = vld [vmem:[#allocation10 + $0xfc] sm:$0xf0] }
 0x125   :  { %1758 = vmatpush.bf16.msra.mxu3 %v3609_v41 }
 0x126   :  { %1734 = vmatpush.bf16.msra.mxu0 %v3677_v60 }
 0x127   :  { %1743 = vmatpush.bf16.msra.mxu1 %v3537_v9  ;;  %1716 = vmatpush.bf16.msra.mxu2 %v3641_v2  ;;  %v4145_v9 = vld [vmem:[#allocation12 + $0x94] sm:$0xf]  ;;  %v4126_v2 = vld [vmem:[#allocation10 + $0x1c0] sm:$0xf0] }
 0x128   :  { %v3767_v16 = vor.u32 %v4145_v9, %v3764_v10  ;;  %v4130_v10 = vld [vmem:[#allocation12 + $0x1c] sm:$0xf] }
 0x129   :  { %1759 = vmatpush.bf16.msra.mxu3 %v3597_v50 }
 0x12b   :  { %1744 = vmatpush.bf16.msra.mxu1 %v3525_v14  ;;  %1717 = vmatpush.bf16.msra.mxu2 %v3629_v46  ;;  %v4121_v14 = vld [vmem:[#allocation10 + $0x19c] sm:$0xf]  ;;  %v3566_v46 = vld [vmem:[#allocation10 + $0xe4] sm:$0xf0] }
 0x12d   :  { %1760 = vmatpush.bf16.msra.mxu3 %v3585_v59  ;;  %v3776_v59 = vld [vmem:[#allocation12 + $0xb4] sm:$0xf0] }
 0x12f   :  { %1745 = vmatpush.bf16.msra.mxu1 %v3513_v20  ;;  %1718 = vmatpush.bf16.msra.mxu2 %v3617_v62  ;;  %v4133_v62 = vld [vmem:[#allocation12 + $0x34] sm:$0xf] }
 0x130   :  { %v3719_v60 = vor.u32 %v4133_v62, %v3716_v63  ;;  %v4149_v62 = vld [vmem:[#allocation12 + $0xb0] sm:$0xf0]  ;;  %v3870_v63 = vld [vmem:[#allocation12 + $0x168] sm:$0xf] }
 0x131   :  { %1761 = vmatpush.bf16.msra.mxu3 %v3573_v6  ;;  %v3779_v6 = vor.u32 %v4148_v53, %v3776_v59  ;;  %v3656_v59 = vld [vmem:[#allocation10 + $0x188] sm:$0xf] }
 0x133   :  { %1746 = vmatpush.bf16.msra.mxu1 %v3501_v30  ;;  %v3650_v30 = vld [vmem:[#allocation10 + $0x18c] sm:$0xf0] }
 0x134   :  { %v3653_v31 = vor.u32 %v4118_v28, %v3650_v30  ;;  %v4176_v30 = vld [vmem:[#allocation12 + $0x188] sm:$0xf0] }
 0x135   :  { %1762 = vmatpush.bf16.msra.mxu3 %v3561_v11  ;;  %v3605_v11 = vor.u32 %v4106_v58, %v3602_v7  ;;  %v4182_v58 = vld [vmem:[#allocation12 + $0x1b8] sm:$0xf0] }
 0x137   :  { %1747 = vmatpush.bf16.msra.mxu1 %v3489_v42  ;;  %1719 = vmatpush.bf16.msra.mxu2 %v3605_v11  ;;  %v3704_v11 = vld [vmem:[#allocation12 + $0x24] sm:$0xf0] }
 0x13b   :  { %1748 = vmatpush.bf16.msra.mxu1 %v3477_v51  ;;  %1720 = vmatpush.bf16.msra.mxu2 %v3593_v27 }
 0x13d   :  { %v1088_v17 = vpop.f32.mrf.mxu1 }
 0x13e   :  { %v1089_v41 = vadd.f32 %v1088_v17, %v496_v29  ;;  %v3665_v17 = vor.u32 %v4121_v14, %v3662_v24  ;;  %v497_v29 = vperm.slane %v4618_v13, 0 }
 0x13f   :  { %1749 = vmatpush.bf16.msra.mxu1 %v3465_v1  ;;  %v4120_v1 = vld [vmem:[#allocation10 + $0x190] sm:$0xf0] }
 0x140   :  { %1735 = vmatpush.bf16.msra.mxu0 %v3665_v17  ;;  %v3657_v4 = vor.u32 %v4120_v1, %v3656_v59  ;;  %v3894_v17 = vld [vmem:[#allocation12 + $0x198] sm:$0xf] }
 0x141   :  { %v3895_v27 = vor.u32 %v4179_v18, %v3894_v17  ;;  %v3824_v17 = vld [vmem:[#allocation12 + $0x114] sm:$0xf0] }
 0x144   :  { %v1101_v34 = vpop.f32.mrf.mxu2  ;;  %1736 = vmatpush.bf16.msra.mxu0 %v3653_v31 }
 0x145   :  { %v1090_v38 = vpop.f32.mrf.mxu1  ;;  %v1102_v45 = vadd.f32 %v1101_v34, %v1089_v41  ;;  %v4100_v34 = vld [vmem:[#allocation10 + $0xf4] sm:$0xf]  ;;  %v3681_v41 = vor.u32 %v4126_v2, %v3680_v36 }
 0x146   :  { %v1127_v61 = vpop.f32.mrf.mxu0  ;;  %v3581_v38 = vor.u32 %v4100_v34, %v3578_v35  ;;  %v3902_v35 = vld [vmem:[#allocation12 + $0x1a0] sm:$0xf]  ;;  %v4180_v36 = vld [vmem:[#allocation12 + $0x1a8] sm:$0xf0] }
 0x148   :  { %1721 = vmatpush.bf16.msra.mxu2 %v3581_v38  ;;  %v3903_v38 = vor.u32 %v4180_v36, %v3902_v35  ;;  %v3834_v35 = vld [vmem:[#allocation12 + $0x120] sm:$0xf]  ;;  %v4164_v36 = vld [vmem:[#allocation12 + $0x128] sm:$0xf0] }
 0x14b   :  { %v1114_v47 = vpop.f32.mrf.mxu3 }
 0x14c   :  { %v1115_v50 = vadd.f32 %v1114_v47, %v1102_v45  ;;  %v1103_v52 = vpop.f32.mrf.mxu2  ;;  %v4097_v45 = vld [vmem:[#allocation10 + $0xdc] sm:$0xf]  ;;  %v3668_v47 = vld [vmem:[#allocation10 + $0x1a0] sm:$0xf] }
 0x14d   :  { %v3569_v51 = vor.u32 %v4097_v45, %v3566_v46  ;;  %v4123_v52 = vld [vmem:[#allocation10 + $0x1a8] sm:$0xf0] }
 0x14e   :  { %v1129_v56 = vpop.f32.mrf.mxu0  ;;  %v1128_v57 = vadd.f32 %v1127_v61, %v1115_v50  ;;  %v1140_v32 = vpop.f32.mrf.mxu1  ;;  %v3740_v61 = vld [vmem:[#allocation12 + $0x6c] sm:$0xf0]  ;;  %v3728_v50 = vld [vmem:[#allocation12 + $0x54] sm:$0xf0]  ;;  %v3669_v54 = vor.u32 %v4123_v52, %v3668_v47 }
 0x14f   :  { %v3743_v44 = vor.u32 %v4139_v37, %v3740_v61  ;;  %v3731_v56 = vor.u32 %v4136_v49, %v3728_v50  ;;  %1722 = vmatpush.bf16.msra.mxu2 %v3569_v51  ;;  %v4625_v37 = vld [vmem:[#allocation13 + $0x10] sm:$0x3f]  ;;  %v3860_v49 = vld [vmem:[#allocation12 + $0x15c] sm:$0xf0] }
 0x150   :  { %v1141_v5 = vadd.f32 %v1140_v32, %v1128_v57  ;;  %v4094_v57 = vld [vmem:[#allocation10 + $0xc4] sm:$0xf]  ;;  %v3554_v32 = vld [vmem:[#allocation10 + $0xcc] sm:$0xf0]  ;;  %v498_v2 = vperm.slane %v4625_v37, 0 }
 0x151   :  { %v3557_v0 = vor.u32 %v4094_v57, %v3554_v32  ;;  %v3774_v32 = vld [vmem:[#allocation12 + $0xa8] sm:$0xf] }
 0x152   :  { %v4614_v8 = vpack.c.bf16 %v1141_v5, %v1141_v5 }
 0x153   :  { %v1116_v12 = vpop.f32.mrf.mxu3  ;;  %1723 = vmatpush.bf16.msra.mxu2 %v3557_v0  ;;  %v4173_v0 = vld [vmem:[#allocation12 + $0x170] sm:$0xf0] }
 0x154   :  { %1672 = vmatmul.bf16.vlgmr.msrb.gmra.mxu0 %v4614_v8  ;;  %1711 = vmatmul.bf16.vlgmr.msrb.gmra.mxu3 %v4614_v8 }
 0x155   :  { %v1153_v15 = vpop.f32.mrf.mxu2  ;;  %2260 = vmatpush.bf16.msrb.mxu3 %v3779_v6  ;;  %1773 = vmatpush.bf16.msrb.mxu0 %v3681_v41  ;;  %v3906_v6 = vld [vmem:[#allocation12 + $0x1b0] sm:$0xf] }
 0x156   :  { %v1179_v20 = vpop.f32.mrf.mxu0  ;;  %v1142_v21 = vpop.f32.mrf.mxu1  ;;  %v1154_v39 = vadd.f32 %v1153_v15, %v497_v29  ;;  %v3907_v24 = vor.u32 %v4182_v58, %v3906_v6  ;;  %v3882_v29 = vld [vmem:[#allocation12 + $0x180] sm:$0xf]  ;;  %v3871_v6 = vor.u32 %v4173_v0, %v3870_v63  ;;  %v3762_v58 = vld [vmem:[#allocation12 + $0x90] sm:$0xf] }
 0x157   :  { %v3914_v21 = vld [vmem:[#allocation12 + $0x1b8] sm:$0xf]  ;;  %v3883_v61 = vor.u32 %v4176_v30, %v3882_v29  ;;  %v3812_v29 = vld [vmem:[#allocation12 + $0xfc] sm:$0xf0] }
 0x158   :  { %v3915_v34 = vor.u32 %v4183_v22, %v3914_v21  ;;  %v4143_v21 = vld [vmem:[#allocation12 + $0x80] sm:$0xf0]  ;;  %v3846_v22 = vld [vmem:[#allocation12 + $0x138] sm:$0xf] }
 0x159   :  { %2261 = vmatpush.bf16.msrb.mxu3 %v3767_v16  ;;  %1774 = vmatpush.bf16.msrb.mxu0 %v3669_v54  ;;  %v3707_v16 = vor.u32 %v4130_v10, %v3704_v11  ;;  %v3858_v10 = vld [vmem:[#allocation12 + $0x150] sm:$0xf]  ;;  %v4170_v11 = vld [vmem:[#allocation12 + $0x158] sm:$0xf0] }
 0x15b   :  { %v1166_v40 = vpop.f32.mrf.mxu3 }
 0x15c   :  { %v1167_v42 = vadd.f32 %v1166_v40, %v1154_v39  ;;  %v3890_v39 = vld [vmem:[#allocation12 + $0x188] sm:$0xf]  ;;  %v4177_v40 = vld [vmem:[#allocation12 + $0x190] sm:$0xf0] }
 0x15d   :  { %v1155_v43 = vpop.f32.mrf.mxu2  ;;  %2262 = vmatpush.bf16.msrb.mxu3 %v3755_v33  ;;  %1775 = vmatpush.bf16.msrb.mxu0 %v3657_v4  ;;  %v3891_v45 = vor.u32 %v4177_v40, %v3890_v39  ;;  %v4163_v4 = vld [vmem:[#allocation12 + $0x124] sm:$0xf]  ;;  %v3835_v40 = vor.u32 %v4164_v36, %v3834_v35 }
 0x15e   :  { %v1181_v48 = vpop.f32.mrf.mxu0  ;;  %v1180_v55 = vadd.f32 %v1179_v20, %v1167_v42  ;;  %v3692_v20 = vld [vmem:[#allocation12 + $0xc] sm:$0xf0]  ;;  %v4172_v42 = vld [vmem:[#allocation12 + $0x16c] sm:$0xf]  ;;  %v3872_v43 = vld [vmem:[#allocation12 + $0x174] sm:$0xf0] }
 0x15f   :  { %v1192_v53 = vpop.f32.mrf.mxu1  ;;  %v3695_v28 = vor.u32 %v4127_v19, %v3692_v20  ;;  %v3875_v47 = vor.u32 %v4172_v42, %v3872_v43  ;;  %v4169_v48 = vld [vmem:[#allocation12 + $0x154] sm:$0xf]  ;;  %v3859_v19 = vor.u32 %v4170_v11, %v3858_v10  ;;  %v3750_v20 = vld [vmem:[#allocation12 + $0x78] sm:$0xf]  ;;  %v4187_v42 = vld [vmem:[#allocation7 + $0x1c] sm:$0xf] }
 0x160   :  { %v1193_v5 = vadd.f32 %v1192_v53, %v1180_v55  ;;  %v3863_v53 = vor.u32 %v4169_v48, %v3860_v49  ;;  %v4166_v55 = vld [vmem:[#allocation12 + $0x13c] sm:$0xf]  ;;  %v3751_v30 = vor.u32 %v4143_v21, %v3750_v20  ;;  %v3935_v43 = vld [vmem:[#allocation7 + $0x24] sm:$0xf0]  ;;  %v4151_v49 = vld [vmem:[#allocation12 + $0xc4] sm:$0xf] }
 0x161   :  { %2263 = vmatpush.bf16.msrb.mxu3 %v3743_v44  ;;  %v4155_v10 = vld [vmem:[#allocation12 + $0xe0] sm:$0xf0]  ;;  %v3908_v20 = vld [vmem:[#allocation12 + $0x1bc] sm:$0xf0]  ;;  %v3782_v21 = vld [vmem:[#allocation12 + $0xb0] sm:$0xf] }
 0x163   :  { %v1168_v3 = vpop.f32.mrf.mxu3 }
 0x165   :  { %2264 = vmatpush.bf16.msrb.mxu3 %v3731_v56  ;;  %v3848_v56 = vld [vmem:[#allocation12 + $0x144] sm:$0xf0] }
 0x166   :  { %v1205_v7 = vpop.f32.mrf.mxu2  ;;  %v1231_v9 = vpop.f32.mrf.mxu0  ;;  %v3851_v1 = vor.u32 %v4166_v55, %v3848_v56  ;;  %v4188_v55 = vld [vmem:[#allocation7 + $0x20] sm:$0xf0] }
 0x167   :  { %v1206_v12 = vadd.f32 %v1205_v7, %v1193_v5  ;;  %v1194_v14 = vpop.f32.mrf.mxu1  ;;  %v3836_v5 = vld [vmem:[#allocation12 + $0x12c] sm:$0xf0]  ;;  %v4184_v56 = vld [vmem:[#allocation7 + $0x4] sm:$0xf] }
 0x169   :  { %v4621_v15 = vpack.c.bf16 %v1206_v12, %v1206_v12  ;;  %2265 = vmatpush.bf16.msrb.mxu3 %v3719_v60  ;;  %v3775_v60 = vor.u32 %v4149_v62, %v3774_v32  ;;  %v4134_v32 = vld [vmem:[#allocation12 + $0x38] sm:$0xf0] }
 0x16a   :  { %v4158_v62 = vld [vmem:[#allocation12 + $0xf8] sm:$0xf0] }
 0x16b   :  { %1685 = vmatmul.bf16.vlgmr.msrb.gmra.mxu1 %v4621_v15  ;;  %1763 = vmatmul.bf16.vlgmr.msra.gmra.mxu3 %v4621_v15  ;;  %v1218_v25 = vpop.f32.mrf.mxu3 }
 0x16c   :  { %2252 = vmatpush.bf16.msrb.mxu1 %v3907_v24  ;;  %v1219_v46 = vadd.f32 %v1218_v25, %v498_v2  ;;  %v3839_v24 = vor.u32 %v4163_v4, %v3836_v5  ;;  %v4167_v25 = vld [vmem:[#allocation12 + $0x140] sm:$0xf0]  ;;  %v3800_v2 = vld [vmem:[#allocation12 + $0xe4] sm:$0xf0]  ;;  %v3702_v5 = vld [vmem:[#allocation12 + $0x18] sm:$0xf] }
 0x16d   :  { %2266 = vmatpush.bf16.msrb.mxu3 %v3707_v16  ;;  %v4160_v16 = vld [vmem:[#allocation12 + $0x10c] sm:$0xf] }
 0x16e   :  { %v1207_v31 = vpop.f32.mrf.mxu2  ;;  %v1233_v33 = vpop.f32.mrf.mxu0  ;;  %v1232_v50 = vadd.f32 %v1231_v9, %v1219_v46  ;;  %v4146_v9 = vld [vmem:[#allocation12 + $0x98] sm:$0xf0]  ;;  %v4161_v46 = vld [vmem:[#allocation12 + $0x110] sm:$0xf0] }
 0x16f   :  { %v3763_v18 = vor.u32 %v4146_v9, %v3762_v58  ;;  %v3847_v31 = vor.u32 %v4167_v25, %v3846_v22  ;;  %v3738_v33 = vld [vmem:[#allocation12 + $0x60] sm:$0xf]  ;;  %v4131_v58 = vld [vmem:[#allocation12 + $0x20] sm:$0xf0]  ;;  %v3798_v9 = vld [vmem:[#allocation12 + $0xd8] sm:$0xf] }
 0x170   :  { %2253 = vmatpush.bf16.msrb.mxu1 %v3895_v27  ;;  %v3827_v27 = vor.u32 %v4160_v16, %v3824_v17  ;;  %v4128_v16 = vld [vmem:[#allocation12 + $0x8] sm:$0xf0]  ;;  %v3786_v17 = vld [vmem:[#allocation12 + $0xc0] sm:$0xf]  ;;  %v4150_v22 = vld [vmem:[#allocation12 + $0xb8] sm:$0xf0] }
 0x171   :  { %2267 = vmatpush.bf16.msrb.mxu3 %v3695_v28  ;;  %v4157_v28 = vld [vmem:[#allocation12 + $0xf4] sm:$0xf] }
 0x173   :  { %v1220_v41 = vpop.f32.mrf.mxu3 }
 0x174   :  { %2254 = vmatpush.bf16.msrb.mxu1 %v3883_v61  ;;  %v3815_v61 = vor.u32 %v4157_v28, %v3812_v29  ;;  %v3726_v41 = vld [vmem:[#allocation12 + $0x48] sm:$0xf]  ;;  %v3783_v29 = vor.u32 %v4150_v22, %v3782_v21 }
 0x175   :  { %2330 = vmatpush.bf16.msra.mxu3 %v3915_v34  ;;  %v4140_v34 = vld [vmem:[#allocation12 + $0x68] sm:$0xf0] }
 0x176   :  { %v1257_v44 = vpop.f32.mrf.mxu2  ;;  %v3739_v39 = vor.u32 %v4140_v34, %v3738_v33  ;;  %v3770_v33 = vld [vmem:[#allocation12 + $0x98] sm:$0xf]  ;;  %v4147_v34 = vld [vmem:[#allocation12 + $0xa0] sm:$0xf0] }
 0x177   :  { %v3771_v36 = vor.u32 %v4147_v34, %v3770_v33 }
 0x179   :  { %2331 = vmatpush.bf16.msra.mxu3 %v3903_v38  ;;  %v4154_v38 = vld [vmem:[#allocation12 + $0xdc] sm:$0xf] }
 0x17a   :  { %v3803_v48 = vor.u32 %v4154_v38, %v3800_v2  ;;  %v3884_v38 = vld [vmem:[#allocation12 + $0x18c] sm:$0xf0]  ;;  %v3758_v2 = vld [vmem:[#allocation12 + $0x80] sm:$0xf] }
 0x17b   :  { %1750 = vmatmul.bf16.vlgmr.msra.gmra.mxu1 %v4614_v8  ;;  %2268 = vmatmul.bf16.vlgmr.msrb.gmra.mxu3 %v4614_v8  ;;  %v1270_v52 = vpop.f32.mrf.mxu3 }
 0x17c   :  { %2273 = vmatpush.bf16.msra.mxu1 %v3875_v47  ;;  %v3938_v47 = vor.u32 %v4187_v42, %v3935_v43 }
 0x17d   :  { %2332 = vmatpush.bf16.msra.mxu3 %v3891_v45  ;;  %v3822_v45 = vld [vmem:[#allocation12 + $0x108] sm:$0xf] }
 0x17e   :  { %v1259_v57 = vpop.f32.mrf.mxu2 }
 0x17f   :  { %v1244_v51 = vpop.f32.mrf.mxu1  ;;  %v3923_v57 = vld [vmem:[#allocation7 + $0xc] sm:$0xf0] }
 0x180   :  { %v1245_v54 = vadd.f32 %v1244_v51, %v1232_v50  ;;  %2274 = vmatpush.bf16.msra.mxu1 %v3863_v53  ;;  %v3788_v50 = vld [vmem:[#allocation12 + $0xcc] sm:$0xf0]  ;;  %v3926_v63 = vor.u32 %v4184_v56, %v3923_v57  ;;  %v3722_v57 = vld [vmem:[#allocation12 + $0x38] sm:$0xf] }
 0x181   :  { %v3714_v51 = vld [vmem:[#allocation12 + $0x30] sm:$0xf]  ;;  %2403 = vmatpush.bf16.msrb.mxu3 %v3938_v47  ;;  %v3791_v0 = vor.u32 %v4151_v49, %v3788_v50  ;;  %v3866_v47 = vld [vmem:[#allocation12 + $0x158] sm:$0xf] }
 0x182   :  { %v1258_v59 = vadd.f32 %v1257_v44, %v1245_v54  ;;  %v4137_v44 = vld [vmem:[#allocation12 + $0x50] sm:$0xf0]  ;;  %v3823_v54 = vor.u32 %v4161_v46, %v3822_v45  ;;  %v3746_v45 = vld [vmem:[#allocation12 + $0x68] sm:$0xf] }
 0x183   :  { %v1272_v14 = vpop.f32.mrf.mxu3  ;;  %v3727_v53 = vor.u32 %v4137_v44, %v3726_v41  ;;  %v4174_v41 = vld [vmem:[#allocation12 + $0x178] sm:$0xf0]  ;;  %v4141_v46 = vld [vmem:[#allocation12 + $0x70] sm:$0xf0] }
 0x184   :  { %v1271_v3 = vadd.f32 %v1270_v52, %v1258_v59  ;;  %2275 = vmatpush.bf16.msra.mxu1 %v3851_v1  ;;  %v3933_v52 = vld [vmem:[#allocation7 + $0x18] sm:$0xf]  ;;  %v3810_v59 = vld [vmem:[#allocation12 + $0xf0] sm:$0xf]  ;;  %v3799_v14 = vor.u32 %v4155_v10, %v3798_v9  ;;  %v3747_v49 = vor.u32 %v4141_v46, %v3746_v45  ;;  %v4129_v9 = vld [vmem:[#allocation12 + $0x10] sm:$0xf0] }
 0x185   :  { %v3934_v1 = vor.u32 %v4188_v55, %v3933_v52  ;;  %v3811_v4 = vor.u32 %v4158_v62, %v3810_v59  ;;  %2404 = vmatpush.bf16.msrb.mxu3 %v3926_v63  ;;  %v4138_v52 = vld [vmem:[#allocation12 + $0x58] sm:$0xf0]  ;;  %v3842_v59 = vld [vmem:[#allocation12 + $0x128] sm:$0xf]  ;;  %v4165_v62 = vld [vmem:[#allocation12 + $0x130] sm:$0xf0] }
 0x186   :  { %v4630_v7 = vpack.c.bf16 %v1271_v3, %v1271_v3  ;;  %v3715_v3 = vor.u32 %v4134_v32, %v3714_v51  ;;  %v3734_v51 = vld [vmem:[#allocation12 + $0x50] sm:$0xf]  ;;  %v4135_v32 = vld [vmem:[#allocation12 + $0x40] sm:$0xf0]  ;;  %v3818_v10 = vld [vmem:[#allocation12 + $0xf8] sm:$0xf] }
 0x187   :  { %v1246_v12 = vpop.f32.mrf.mxu1  ;;  %v3735_v55 = vor.u32 %v4138_v52, %v3734_v51  ;;  %v3723_v63 = vor.u32 %v4135_v32, %v3722_v57  ;;  %v4697_v45 = vld [vmem:[#allocation15 + $0x240] sm:$0xff]  ;;  %v4713_v51 = vld [vmem:[#allocation15 + $0x128] sm:$0xff]  ;;  %v4717_v52 = vld [vmem:[#allocation15 + $0x210] sm:$0xff] }
 0x188   :  { %3682 = vmatmul.msk.bf16.vlgmr.msrb.gmra.mxu2 %vm1660_vm7, %v4630_v7  ;;  %3683 = vmatmul.msk.bf16.vlgmr.msra.gmra.mxu0 %vm1660_vm7, %v4630_v7  ;;  %v3703_v12 = vor.u32 %v4131_v58, %v3702_v5  ;;  %v4162_v5 = vld [vmem:[#allocation12 + $0x118] sm:$0xf0]  ;;  %v3698_v58 = vld [vmem:[#allocation12 + $0x8] sm:$0xf]  ;;  %v4731_v57 = vld [vmem:[#allocation15 + $0xf0] sm:$0xff] }
 0x189   :  { %2221 = vmatpush.bf16.msrb.mxu2 %v3775_v60  ;;  %2234 = vmatpush.bf16.msra.mxu0 %v3871_v6  ;;  %v3921_v60 = vld [vmem:[#allocation7] sm:$0xf]  ;;  %v4185_v6 = vld [vmem:[#allocation7 + $0x8] sm:$0xf0]  ;;  %5323 = vst [vmem:[#allocation22_spill] sm:$0xff] %v4731_v57  ;;  %v4733_v32 = vld [vmem:[#allocation15 + $0xf8] sm:$0xff] }
 0x18a   :  { %2276 = vmatpush.bf16.msra.mxu1 %v3839_v24  ;;  %v3922_v11 = vor.u32 %v4185_v6, %v3921_v60  ;;  %v3690_v24 = vld [vmem:[#allocation12] sm:$0xf]  ;;  %5324 = vst [vmem:[#allocation23_spill] sm:$0xff] %v4733_v32 }
 0x18b   :  { %3916 = vmatmul.msk.bf16.vlgmr.msrb.gmra.mxu1 %vm1660_vm7, %v4630_v7  ;;  %3918 = vmatmul.msk.bf16.vlgmr.msra.gmra.mxu3 %vm1660_vm7, %v4630_v7  ;;  %v3691_v25 = vor.u32 %v4128_v16, %v3690_v24  ;;  %v3699_v24 = vor.u32 %v4129_v9, %v3698_v58  ;;  %v4763_v58 = vld [vmem:[#allocation15 + $0xb0] sm:$0xff] }
 0x18c   :  { %5330 = vst [vmem:[#allocation29_spill] sm:$0xff] %v4763_v58 }
 0x18d   :  { %2222 = vmatpush.bf16.msrb.mxu2 %v3763_v18  ;;  %2235 = vmatpush.bf16.msra.mxu0 %v3859_v19  ;;  %v4152_v18 = vld [vmem:[#allocation12 + $0xc8] sm:$0xf0]  ;;  %v4181_v19 = vld [vmem:[#allocation12 + $0x1b4] sm:$0xf] }
 0x18e   :  { %2277 = vmatpush.bf16.msra.mxu1 %v3827_v27  ;;  %v3787_v27 = vor.u32 %v4152_v18, %v3786_v17  ;;  %v3911_v28 = vor.u32 %v4181_v19, %v3908_v20  ;;  %v3806_v17 = vld [vmem:[#allocation12 + $0xe0] sm:$0xf]  ;;  %v4156_v19 = vld [vmem:[#allocation12 + $0xe8] sm:$0xf0]  ;;  %v4186_v20 = vld [vmem:[#allocation7 + $0x10] sm:$0xf0] }
 0x18f   :  { %v3807_v21 = vor.u32 %v4156_v19, %v3806_v17  ;;  %v4783_v19 = vld [vmem:[#allocation15 + $0x78] sm:$0xff] }
 0x190   :  { %5333 = vst [vmem:[#allocation32_spill] sm:$0xff] %v4783_v19 }
 0x191   :  { %2223 = vmatpush.bf16.msrb.mxu2 %v3751_v30  ;;  %2236 = vmatpush.bf16.msra.mxu0 %v3847_v31  ;;  %v4178_v30 = vld [vmem:[#allocation12 + $0x19c] sm:$0xf]  ;;  %v3896_v31 = vld [vmem:[#allocation12 + $0x1a4] sm:$0xf0] }
 0x192   :  { %2278 = vmatpush.bf16.msra.mxu1 %v3815_v61  ;;  %v3899_v35 = vor.u32 %v4178_v30, %v3896_v31  ;;  %v4175_v61 = vld [vmem:[#allocation12 + $0x184] sm:$0xf] }
 0x193   :  { %v3887_v42 = vor.u32 %v4175_v61, %v3884_v38  ;;  %v4676_v38 = vld [vmem:[#allocation15 + $0x288] sm:$0xff] }
 0x195   :  { %2224 = vmatpush.bf16.msrb.mxu2 %v3739_v39  ;;  %2237 = vmatpush.bf16.msra.mxu0 %v3835_v40  ;;  %v4144_v39 = vld [vmem:[#allocation12 + $0x88] sm:$0xf0]  ;;  %v3878_v40 = vld [vmem:[#allocation12 + $0x170] sm:$0xf] }
 0x196   :  { %2279 = vmatpush.bf16.msra.mxu1 %v3803_v48  ;;  %v3759_v43 = vor.u32 %v4144_v39, %v3758_v2  ;;  %v3879_v44 = vor.u32 %v4174_v41, %v3878_v40  ;;  %v4171_v48 = vld [vmem:[#allocation12 + $0x160] sm:$0xf0]  ;;  %v4679_v2 = vld [vmem:[#allocation15 + $0x270] sm:$0xff]  ;;  %v4682_v39 = vld [vmem:[#allocation15 + $0x168] sm:$0xff] }
 0x197   :  { %v3867_v50 = vor.u32 %v4171_v48, %v3866_v47  ;;  %v4684_v40 = vld [vmem:[#allocation15 + $0x170] sm:$0xff]  ;;  %v4688_v41 = vld [vmem:[#allocation15 + $0x258] sm:$0xff]  ;;  %v4704_v48 = vld [vmem:[#allocation15 + $0x140] sm:$0xff] }
 0x198   :  { %1724 = vmatmul.bf16.vlgmr.msra.gmra.mxu2 %v4621_v15  ;;  %3684 = vmatmul.msk.bf16.vlgmr.msrb.gmra.mxu0 %vm1660_vm7, %v4630_v7  ;;  %v4702_v47 = vld [vmem:[#allocation15 + $0x138] sm:$0xff] }
 0x199   :  { %2225 = vmatpush.bf16.msrb.mxu2 %v3727_v53  ;;  %2238 = vmatpush.bf16.msra.mxu0 %v3823_v54  ;;  %v3854_v53 = vld [vmem:[#allocation12 + $0x140] sm:$0xf]  ;;  %v4168_v54 = vld [vmem:[#allocation12 + $0x148] sm:$0xf0] }
 0x19a   :  { %2280 = vmatpush.bf16.msra.mxu1 %v3791_v0  ;;  %v3855_v56 = vor.u32 %v4168_v54, %v3854_v53  ;;  %v3843_v0 = vor.u32 %v4165_v62, %v3842_v59  ;;  %v4720_v53 = vld [vmem:[#allocation15 + $0x108] sm:$0xff]  ;;  %v4722_v54 = vld [vmem:[#allocation15 + $0x110] sm:$0xff]  ;;  %v4737_v59 = vld [vmem:[#allocation15 + $0x1e0] sm:$0xff] }
 0x19b   :  { %3944 = vmatmul.msk.bf16.vlgmr.msrb.gmra.mxu3 %vm248_vm0, %v4566_v26  ;;  %5322 = vst [vmem:[#allocation21_spill] sm:$0xff] %v4722_v54 }
 0x19d   :  { %2226 = vmatpush.bf16.msrb.mxu2 %v3715_v3  ;;  %2239 = vmatpush.bf16.msra.mxu0 %v3811_v4  ;;  %v4132_v3 = vld [vmem:[#allocation12 + $0x28] sm:$0xf0]  ;;  %v3830_v4 = vld [vmem:[#allocation12 + $0x110] sm:$0xf] }
 0x19e   :  { %2390 = vmatpush.bf16.msrb.mxu1 %v3934_v1  ;;  %v3710_v1 = vld [vmem:[#allocation12 + $0x20] sm:$0xf]  ;;  %v3831_v6 = vor.u32 %v4162_v5, %v3830_v4 }
 0x19f   :  { %2281 = vmatmul.bf16.vlgmr.msra.gmra.mxu1 %v4621_v15  ;;  %v3711_v60 = vor.u32 %v4132_v3, %v3710_v1  ;;  %v1353_v1 = vperm.slane %v4611_v23, 1  ;;  %v4747_v3 = vld [vmem:[#allocation15 + $0x1c8] sm:$0xff]  ;;  %v4752_v5 = vld [vmem:[#allocation15 + $0xc0] sm:$0xff] }
 0x1a0   :  { %5327 = vst [vmem:[#allocation26_spill] sm:$0xff] %v4752_v5  ;;  %v4761_v23 = vld [vmem:[#allocation15 + $0xa8] sm:$0xff] }
 0x1a1   :  { %2227 = vmatpush.bf16.msrb.mxu2 %v3703_v12  ;;  %2240 = vmatpush.bf16.msra.mxu0 %v3799_v14  ;;  %v3941_v12 = vld [vmem:[#allocation7 + $0x20] sm:$0xf]  ;;  %v4189_v14 = vld [vmem:[#allocation7 + $0x28] sm:$0xf0]  ;;  %5329 = vst [vmem:[#allocation28_spill] sm:$0xff] %v4761_v23 }
 0x1a2   :  { %2391 = vmatpush.bf16.msrb.mxu1 %v3922_v11  ;;  %v4159_v11 = vld [vmem:[#allocation12 + $0x100] sm:$0xf0]  ;;  %v3942_v18 = vor.u32 %v4189_v14, %v3941_v12  ;;  %v4771_v12 = vld [vmem:[#allocation15 + $0x90] sm:$0xff]  ;;  %v4773_v14 = vld [vmem:[#allocation15 + $0x98] sm:$0xff] }
 0x1a3   :  { %v3819_v16 = vor.u32 %v4159_v11, %v3818_v10  ;;  %v4768_v10 = vld [vmem:[#allocation15 + $0x198] sm:$0xff]  ;;  %5331 = vst [vmem:[#allocation30_spill] sm:$0xff] %v4771_v12 }
 0x1a4   :  { %5332 = vst [vmem:[#allocation31_spill] sm:$0xff] %v4773_v14 }
 0x1a5   :  { %2228 = vmatpush.bf16.msrb.mxu2 %v3691_v25  ;;  %2241 = vmatpush.bf16.msra.mxu0 %v3787_v27  ;;  %v3794_v25 = vld [vmem:[#allocation12 + $0xc8] sm:$0xf]  ;;  %v4153_v27 = vld [vmem:[#allocation12 + $0xd0] sm:$0xf0] }
 0x1a6   :  { %2543 = vmatpush.msra.mxu1 %v4682_v39 }
 0x1a8   :  { %2229 = vmatmul.bf16.vlgmr.msrb.gmra.mxu2 %v4614_v8  ;;  %2242 = vmatmul.bf16.vlgmr.msra.gmra.mxu0 %v4621_v15 }
 0x1a9   :  { %2291 = vmatpush.bf16.msra.mxu2 %v3911_v28  ;;  %2299 = vmatpush.bf16.msrb.mxu0 %v3783_v29  ;;  %v3795_v28 = vor.u32 %v4153_v27, %v3794_v25  ;;  %v4792_v25 = vld [vmem:[#allocation15 + $0x60] sm:$0xff]  ;;  %v4794_v27 = vld [vmem:[#allocation15 + $0x68] sm:$0xff] }
 0x1aa   :  { %5335 = vst [vmem:[#allocation34_spill] sm:$0xff] %v4792_v25 }
 0x1ab   :  { %5336 = vst [vmem:[#allocation35_spill] sm:$0xff] %v4794_v27 }
 0x1ad   :  { %2292 = vmatpush.bf16.msra.mxu2 %v3899_v35  ;;  %2300 = vmatpush.bf16.msrb.mxu0 %v3771_v36  ;;  %v4662_v35 = vld [vmem:[#allocation15 + $0x2e8] sm:$0xff] }
 0x1af   :  { %3943 = vmatmul.msk.bf16.vlgmr.msrb.gmra.mxu1 %vm248_vm0, %v4566_v26 }
 0x1b1   :  { %2293 = vmatpush.bf16.msra.mxu2 %v3887_v42  ;;  %2301 = vmatpush.bf16.msrb.mxu0 %v3759_v43  ;;  %v4691_v43 = vld [vmem:[#allocation15 + $0x150] sm:$0xff] }
 0x1b2   :  { %2544 = vmatpush.msra.mxu1 %v4691_v43 }
 0x1b4   :  { %2545 = vmatpush.msra.mxu1 %v4702_v47 }
 0x1b5   :  { %2312 = vmatpush.bf16.msrb.mxu2 %v3879_v44  ;;  %2302 = vmatpush.bf16.msrb.mxu0 %v3747_v49  ;;  %v4693_v44 = vld [vmem:[#allocation15 + $0x158] sm:$0xff]  ;;  %v4708_v49 = vld [vmem:[#allocation15 + $0x228] sm:$0xff] }
 0x1b8   :  { %3917 = vmatmul.msk.bf16.vlgmr.msra.gmra.mxu2 %vm1660_vm7, %v4630_v7  ;;  %v3929_v7 = vld [vmem:[#allocation7 + $0x8] sm:$0xf] }
 0x1b9   :  { %2313 = vmatpush.bf16.msrb.mxu2 %v3867_v50  ;;  %2303 = vmatpush.bf16.msrb.mxu0 %v3735_v55  ;;  %v3930_v22 = vor.u32 %v4186_v20, %v3929_v7  ;;  %v4711_v50 = vld [vmem:[#allocation15 + $0x120] sm:$0xff]  ;;  %v4726_v55 = vld [vmem:[#allocation15 + $0x1f8] sm:$0xff] }
 0x1ba   :  { %2546 = vmatpush.msra.mxu1 %v4711_v50  ;;  %v4785_v7 = vld [vmem:[#allocation15 + $0x80] sm:$0xff]  ;;  %v4787_v20 = vld [vmem:[#allocation15 + $0x178] sm:$0xff] }
 0x1bb   :  { %5334 = vst [vmem:[#allocation33_spill] sm:$0xff] %v4785_v7 }
 0x1bc   :  { %2547 = vmatpush.msra.mxu1 %v4720_v53 }
 0x1bd   :  { %2314 = vmatpush.bf16.msrb.mxu2 %v3855_v56  ;;  %2304 = vmatpush.bf16.msrb.mxu0 %v3723_v63  ;;  %v4740_v63 = vld [vmem:[#allocation15 + $0xd8] sm:$0xff] }
 0x1be   :  { %2548 = vmatpush.msra.mxu1 %v4731_v57  ;;  %5325 = vst [vmem:[#allocation24_spill] sm:$0xff] %v4740_v63 }
 0x1c0   :  { %2549 = vmatpush.msra.mxu1 %v4740_v63  ;;  %v4954_v63 = vld [vmem:[#allocation15 + $0x278] sm:$0xff] }
 0x1c1   :  { %2315 = vmatpush.bf16.msrb.mxu2 %v3843_v0  ;;  %2305 = vmatpush.bf16.msrb.mxu0 %v3711_v60  ;;  %v4742_v0 = vld [vmem:[#allocation15 + $0xe0] sm:$0xff]  ;;  %v4754_v60 = vld [vmem:[#allocation15 + $0xc8] sm:$0xff] }
 0x1c2   :  { %5326 = vst [vmem:[#allocation25_spill] sm:$0xff] %v4742_v0  ;;  %2550 = vmatpush.msra.mxu1 %v4752_v5 }
 0x1c3   :  { %5328 = vst [vmem:[#allocation27_spill] sm:$0xff] %v4754_v60 }
 0x1c4   :  { %2551 = vmatpush.msra.mxu1 %v4761_v23  ;;  %v4920_v23 = vld [vmem:[#allocation15 + $0x58] sm:$0xff] }
 0x1c5   :  { %2316 = vmatpush.bf16.msrb.mxu2 %v3831_v6  ;;  %2306 = vmatpush.bf16.msrb.mxu0 %v3699_v24  ;;  %v4758_v6 = vld [vmem:[#allocation15 + $0x1b0] sm:$0xff] }
 0x1c6   :  { %2552 = vmatpush.msra.mxu1 %v4771_v12 }
 0x1c8   :  { %2307 = vmatmul.bf16.vlgmr.msrb.gmra.mxu0 %v4614_v8  ;;  %v4665_v8 = vld [vmem:[#allocation15 + $0x2d0] sm:$0xff]  ;;  %2553 = vmatpush.msra.mxu1 %v4783_v19 }
 0x1c9   :  { %2317 = vmatpush.bf16.msrb.mxu2 %v3819_v16  ;;  %2416 = vmatpush.bf16.msra.mxu0 %v3942_v18  ;;  %v4778_v16 = vld [vmem:[#allocation15 + $0x180] sm:$0xff] }
 0x1ca   :  { %2554 = vmatpush.msra.mxu1 %v4792_v25 }
 0x1cd   :  { %2318 = vmatpush.bf16.msrb.mxu2 %v3807_v21  ;;  %2417 = vmatpush.bf16.msra.mxu0 %v3930_v22 }
 0x1d1   :  { %2319 = vmatpush.bf16.msrb.mxu2 %v3795_v28  ;;  %v4654_v29 = vpop.f32.mrf.mxu0  ;;  %2603 = vmatpush.msrb.mxu0 %v4684_v40  ;;  %v4796_v28 = vld [vmem:[#allocation15 + $0x160] sm:$0xff] }
 0x1d2   :  { %v1674_v9 = vadd.f32 %v4654_v29, %v1353_v1  ;;  %v4816_v1 = vld [vmem:[#allocation15 + $0x130] sm:$0xff] }
 0x1d3   :  { %2604 = vmatpush.msrb.mxu0 %v4693_v44 }
 0x1d4   :  { %2320 = vmatmul.bf16.vlgmr.msrb.gmra.mxu2 %v4621_v15  ;;  %v4668_v15 = vld [vmem:[#allocation15 + $0x2b8] sm:$0xff] }
 0x1d5   :  { %2563 = vmatpush.msra.mxu2 %v4662_v35  ;;  %2605 = vmatpush.msrb.mxu0 %v4704_v48 }
 0x1d7   :  { %v4658_v30 = vpop.f32.mrf.mxu3  ;;  %2564 = vmatpush.msra.mxu2 %v4665_v8  ;;  %2606 = vmatpush.msrb.mxu0 %v4713_v51 }
 0x1d8   :  { %3945 = vmatmul.msk.bf16.vlgmr.msra.gmra.mxu0 %vm248_vm0, %v4566_v26  ;;  %v4673_v26 = vld [vmem:[#allocation15 + $0x2a0] sm:$0xff] }
 0x1d9   :  { %v1675_v31 = vpop.f32.mrf.mxu0  ;;  %2565 = vmatpush.msra.mxu2 %v4668_v15  ;;  %2607 = vmatpush.msrb.mxu0 %v4722_v54 }
 0x1da   :  { %v4801_v31 = vld [vmem:[#allocation15 + $0x48] sm:$0xff] }
 0x1db   :  { %2566 = vmatpush.msra.mxu2 %v4673_v26  ;;  %2608 = vmatpush.msrb.mxu0 %v4733_v32  ;;  %5337 = vst [vmem:[#allocation36_spill] sm:$0xff] %v4801_v31 }
 0x1dc   :  { %2555 = vmatpush.msra.mxu1 %v4801_v31  ;;  %v4851_v31 = vld [vmem:[#allocation15 + $0x360] sm:$0xff] }
 0x1dd   :  { %2567 = vmatpush.msra.mxu2 %v4676_v38  ;;  %2609 = vmatpush.msrb.mxu0 %v4742_v0 }
 0x1df   :  { %v1714_v33 = vpop.f32.mrf.mxu3  ;;  %2568 = vmatpush.msra.mxu2 %v4679_v2  ;;  %2610 = vmatpush.msrb.mxu0 %v4754_v60 }
 0x1e0   :  { %v4803_v33 = vld [vmem:[#allocation15 + $0x50] sm:$0xff] }
 0x1e1   :  { %2569 = vmatpush.msra.mxu2 %v4688_v41  ;;  %2611 = vmatpush.msrb.mxu0 %v4763_v58  ;;  %5338 = vst [vmem:[#allocation37_spill] sm:$0xff] %v4803_v33 }
 0x1e3   :  { %2570 = vmatpush.msra.mxu2 %v4697_v45  ;;  %2612 = vmatpush.msrb.mxu0 %v4773_v14  ;;  %v4873_v14 = vld [vmem:[#allocation15 + $0xb8] sm:$0xff] }
 0x1e5   :  { %2571 = vmatpush.msra.mxu2 %v4708_v49  ;;  %2613 = vmatpush.msrb.mxu0 %v4785_v7  ;;  %v4853_v7 = vld [vmem:[#allocation15 + $0x368] sm:$0xff] }
 0x1e6   :  { %5346 = vst [vmem:[#allocation45_spill] sm:$0xff] %v4853_v7 }
 0x1e7   :  { %2572 = vmatpush.msra.mxu2 %v4717_v52  ;;  %2614 = vmatpush.msrb.mxu0 %v4794_v27 }
 0x1e8   :  { %v4660_v34 = vpop.f32.mrf.mxu1 }
 0x1e9   :  { %2573 = vmatpush.msra.mxu2 %v4726_v55  ;;  %v1687_v24 = vadd.f32 %v4660_v34, %v1674_v9  ;;  %v4805_v34 = vld [vmem:[#allocation15 + $0x148] sm:$0xff]  ;;  %2615 = vmatpush.msrb.mxu0 %v4803_v33  ;;  %v4833_v33 = vld [vmem:[#allocation15 + $0x100] sm:$0xff] }
 0x1eb   :  { %2574 = vmatpush.msra.mxu2 %v4737_v59 }
 0x1ed   :  { %2575 = vmatpush.msra.mxu2 %v4747_v3 }
 0x1ee   :  { %v4670_v36 = vpop.f32.mrf.mxu3 }
 0x1ef   :  { %2576 = vmatpush.msra.mxu2 %v4758_v6 }
 0x1f0   :  { %v1688_v61 = vpop.f32.mrf.mxu1 }
 0x1f1   :  { %2577 = vmatpush.msra.mxu2 %v4768_v10 }
 0x1f3   :  { %2578 = vmatpush.msra.mxu2 %v4778_v16 }
 0x1f5   :  { %2663 = vmatpush.msrb.mxu2 %v4787_v20 }
 0x1f6   :  { %v1766_v42 = vpop.f32.mrf.mxu3 }
 0x1f7   :  { %2664 = vmatpush.msrb.mxu2 %v4796_v28  ;;  %v4812_v42 = vld [vmem:[#allocation15 + $0x30] sm:$0xff] }
 0x1f8   :  { %v4699_v46 = vpop.f32.mrf.mxu1  ;;  %5339 = vst [vmem:[#allocation38_spill] sm:$0xff] %v4812_v42  ;;  %2556 = vmatpush.msra.mxu1 %v4812_v42  ;;  %v4845_v42 = vld [vmem:[#allocation15 + $0xe8] sm:$0xff] }
 0x1f9   :  { %2665 = vmatpush.msrb.mxu2 %v4805_v34 }
 0x1fb   :  { %2666 = vmatpush.msrb.mxu2 %v4816_v1 }
 0x1fe   :  { %v4728_v56 = vpop.f32.mrf.mxu3 }
 0x200   :  { %v1753_v62 = vpop.f32.mrf.mxu1 }
 0x201   :  { %v4814_v62 = vld [vmem:[#allocation15 + $0x38] sm:$0xff] }
 0x202   :  { %5340 = vst [vmem:[#allocation39_spill] sm:$0xff] %v4814_v62  ;;  %2616 = vmatpush.msrb.mxu0 %v4814_v62  ;;  %v1354_v62 = vperm.slane %v4618_v13, 1  ;;  %v4856_v13 = vld [vmem:[#allocation15 + $0xd0] sm:$0xff] }
 0x205   :  { %v4749_v4 = vpop.f32.mrf.mxu0 }
 0x206   :  { %v2271_v11 = vpop.f32.mrf.mxu3 }
 0x208   :  { %v4780_v18 = vpop.f32.mrf.mxu1 }
 0x20b   :  { %v1699_v17 = vpop.f32.mrf.mxu2 }
 0x20c   :  { %v1700_v21 = vadd.f32 %v1699_v17, %v1687_v24  ;;  %v4821_v24 = vld [vmem:[#allocation15 + $0x18] sm:$0xff]  ;;  %v4823_v17 = vld [vmem:[#allocation15 + $0x20] sm:$0xff] }
 0x20d   :  { %v1740_v22 = vpop.f32.mrf.mxu0  ;;  %5341 = vst [vmem:[#allocation40_spill] sm:$0xff] %v4821_v24  ;;  %2557 = vmatpush.msra.mxu1 %v4821_v24  ;;  %2617 = vmatpush.msrb.mxu0 %v4823_v17  ;;  %v4841_v24 = vld [vmem:[#allocation15 + $0x378] sm:$0xff] }
 0x20e   :  { %v3685_v29 = vmul.f32 -1.442695, %v1700_v21  ;;  %v4809_v61 = vpop.f32.mrf.mxu3  ;;  %5342 = vst [vmem:[#allocation41_spill] sm:$0xff] %v4823_v17  ;;  %v4825_v21 = vld [vmem:[#allocation15 + $0x118] sm:$0xff]  ;;  %v4829_v22 = vld [vmem:[#allocation15] sm:$0xff]  ;;  %2593 = vmatpush.msra.mxu3 %v4841_v24 }
 0x20f   :  { %5343 = vst [vmem:[#allocation42_spill] sm:$0xff] %v4829_v22  ;;  %2667 = vmatpush.msrb.mxu2 %v4825_v21  ;;  %2558 = vmatpush.msra.mxu1 %v4829_v22  ;;  %v4843_v17 = vld [vmem:[#allocation15 + $0x380] sm:$0xff]  ;;  %v1355_v22 = vperm.slane %v4625_v37, 1 }
 0x210   :  { %4215 = vpow2.f32 %v3685_v29  ;;  %v2258_v11 = vpop.f32.mrf.mxu1  ;;  %v4831_v29 = vld [vmem:[#allocation15 + $0x8] sm:$0xff]  ;;  %5345 = vst [vmem:[#allocation44_spill] sm:$0xff] %v4843_v17  ;;  %2594 = vmatpush.msra.mxu3 %v4851_v31 }
 0x211   :  { %5344 = vst [vmem:[#allocation43_spill] sm:$0xff] %v4831_v29  ;;  %2618 = vmatpush.msrb.mxu0 %v4831_v29  ;;  %2668 = vmatpush.msrb.mxu2 %v4833_v33 }
 0x212   :  { %2653 = vmatpush.msrb.mxu1 %v4843_v17 }
 0x213   :  { %v1701_v9 = vpop.f32.mrf.mxu2  ;;  %2752 = vmatpush.msra.mxu0 %v4662_v35  ;;  %2669 = vmatpush.msrb.mxu2 %v4845_v42  ;;  %v4869_v35 = vld [vmem:[#allocation15 + $0x348] sm:$0xff] }
 0x214   :  { %2654 = vmatpush.msrb.mxu1 %v4853_v7  ;;  %2595 = vmatpush.msra.mxu3 %v4869_v35  ;;  %v1752_v7 = vadd.f32 %v4699_v46, %v1355_v22  ;;  %v4908_v22 = vld [vmem:[#allocation15 + $0x308] sm:$0xff] }
 0x215   :  { %v4835_v9 = vpop.f32.mrf.mxu0  ;;  %2753 = vmatpush.msra.mxu0 %v4665_v8  ;;  %2670 = vmatpush.msrb.mxu2 %v4856_v13  ;;  %v4880_v8 = vld [vmem:[#allocation15 + $0x338] sm:$0xff]  ;;  %5350 = vst [vmem:[#allocation49_spill] sm:$0xff] %v4908_v22 }
 0x216   :  { %v4216_v11 = vpop.eup %4215  ;;  %v2336_v29 = vpop.f32.mrf.mxu3  ;;  %5348 = vst [vmem:[#allocation47_spill] sm:$0xff] %v4880_v8 }
 0x217   :  { %v4847_v27 = vadd.f32 1.0, %v4216_v11  ;;  %v1713_v11 = vadd.f32 %v4658_v30, %v1354_v62  ;;  %v4871_v29 = vld [vmem:[#allocation15 + $0x350] sm:$0xff]  ;;  %2671 = vmatpush.msrb.mxu2 %v4873_v14  ;;  %v4882_v62 = vld [vmem:[#allocation15 + $0xa0] sm:$0xff]  ;;  %2754 = vmatpush.msra.mxu0 %v4668_v15 }
 0x218   :  { %5347 = vst [vmem:[#allocation46_spill] sm:$0xff] %v4871_v29  ;;  %2655 = vmatpush.msrb.mxu1 %v4871_v29  ;;  %v4878_v30 = vld [vmem:[#allocation15 + $0x330] sm:$0xff]  ;;  %v4896_v29 = vld [vmem:[#allocation15 + $0x88] sm:$0xff] }
 0x219   :  { %4217 = vrcp.f32 %v4847_v27  ;;  %2596 = vmatpush.msra.mxu3 %v4878_v30  ;;  %2672 = vmatpush.msrb.mxu2 %v4882_v62  ;;  %vm1798_vm9 = vweird.f32 %v4847_v27 }
 0x21a   :  { %2656 = vmatpush.msrb.mxu1 %v4880_v8  ;;  %2755 = vmatpush.msra.mxu0 %v4673_v26  ;;  %v1765_v26 = vadd.f32 %v4670_v36, %v1752_v7  ;;  %v4925_v7 = vld [vmem:[#allocation15 + $0x40] sm:$0xff] }
 0x21b   :  { %v1725_v17 = vpop.f32.mrf.mxu2  ;;  %2673 = vmatpush.msrb.mxu2 %v4896_v29 }
 0x21c   :  { %v4866_v25 = vpop.f32.mrf.mxu1  ;;  %v1726_v19 = vadd.f32 %v1725_v17, %v1713_v11  ;;  %v4892_v11 = vld [vmem:[#allocation15 + $0x318] sm:$0xff]  ;;  %2756 = vmatpush.msra.mxu0 %v4676_v38  ;;  %v1778_v36 = vadd.f32 %v4835_v9, %v1765_v26 }
 0x21d   :  { %v1779_v37 = vpop.f32.mrf.mxu0  ;;  %2597 = vmatpush.msra.mxu3 %v4892_v11  ;;  %v4922_v38 = vld [vmem:[#allocation15 + $0x2d8] sm:$0xff] }
 0x21e   :  { %v1739_v58 = vadd.f32 %v4749_v4, %v1726_v19  ;;  %v4894_v37 = vld [vmem:[#allocation15 + $0x320] sm:$0xff]  ;;  %v4903_v4 = vpop.f32.mrf.mxu3  ;;  %2757 = vmatpush.msra.mxu0 %v4679_v2  ;;  %v3687_v26 = vmul.f32 -1.442695, %v1778_v36  ;;  %v4940_v2 = vld [vmem:[#allocation13] sm:$0x3f]  ;;  %v4952_v36 = vld [vmem:[#allocation15 + $0x290] sm:$0xff] }
 0x21f   :  { %v4889_v17 = vpop.eup %4217  ;;  %5349 = vst [vmem:[#allocation48_spill] sm:$0xff] %v4894_v37  ;;  %2657 = vmatpush.msrb.mxu1 %v4894_v37  ;;  %v4906_v19 = vld [vmem:[#allocation15 + $0x300] sm:$0xff]  ;;  %v4916_v37 = vld [vmem:[#allocation15 + $0x2f0] sm:$0xff]  ;;  %v1914_v0 = vperm.slane %v4940_v2, 2  ;;  %v2349_v54 = vperm.slane %v4940_v2, 3 }
 0x220   :  { %v1794_v15 = vmul.f32 %v4889_v17, %v4847_v27  ;;  %v3686_v46 = vmul.f32 -1.442695, %v1739_v58  ;;  %2598 = vmatpush.msra.mxu3 %v4906_v19  ;;  %v4914_v58 = vld [vmem:[#allocation15 + $0x70] sm:$0xff]  ;;  %2758 = vmatpush.msra.mxu0 %v4688_v41  ;;  %5352 = vst [vmem:[#allocation51_spill] sm:$0xff] %v4940_v2  ;;  %vm1799_vm8 = vweird.f32 %v4889_v17 }
 0x221   :  { %2658 = vmatpush.msrb.mxu1 %v4908_v22  ;;  %2674 = vmatpush.msrb.mxu2 %v4914_v58  ;;  %v4935_v22 = vld [vmem:[#allocation15 + $0x2a8] sm:$0xff]  ;;  %5353 = vst [vmem:[#allocation52_spill] sm:$0xff] %v4952_v36  ;;  %vm1800_vm10 = vmor %vm1798_vm9, %vm1799_vm8 }
 0x222   :  { %4219 = vpow2.f32 %v3686_v46  ;;  %v1795_v8 = vsub.f32 1.0, %v1794_v15  ;;  %2623 = vmatpush.msrb.mxu3 %v4916_v37  ;;  %v4927_v15 = vld [vmem:[#allocation15 + $0x2c0] sm:$0xff]  ;;  %5351 = vst [vmem:[#allocation50_spill] sm:$0xff] %v4935_v22  ;;  %2759 = vmatpush.msra.mxu0 %v4697_v45 }
 0x223   :  { %v1727_v12 = vpop.f32.mrf.mxu2  ;;  %2675 = vmatpush.msrb.mxu2 %v4920_v23 }
 0x224   :  { %v2284_v60 = vpop.f32.mrf.mxu1  ;;  %2624 = vmatpush.msrb.mxu3 %v4922_v38  ;;  %v4933_v12 = vld [vmem:[#allocation15 + $0x28] sm:$0xff]  ;;  %2760 = vmatpush.msra.mxu0 %v4708_v49 }
 0x225   :  { %v2243_v46 = vpop.f32.mrf.mxu0  ;;  %v1796_v60 = vmul.f32 %v4889_v17, %v1795_v8  ;;  %2676 = vmatpush.msrb.mxu2 %v4925_v7  ;;  %v4948_v8 = vld [vmem:[#allocation15 + $0x10] sm:$0xff] }
 0x226   :  { %2625 = vmatpush.msrb.mxu3 %v4927_v15  ;;  %v2408_v41 = vpop.f32.mrf.mxu3  ;;  %2761 = vmatpush.msra.mxu0 %v4717_v52 }
 0x227   :  { %2677 = vmatpush.msrb.mxu2 %v4933_v12  ;;  %v1797_v32 = vadd.f32 %v4889_v17, %v1796_v60  ;;  %v1802_v41 = vand.u32 2147483647, %v4847_v27 }
 0x228   :  { %v4220_v9 = vpop.eup %4219  ;;  %2626 = vmatpush.msrb.mxu3 %v4935_v22  ;;  %v4964_v22 = vld [vmem:[#allocation15 + $0x260] sm:$0xff]  ;;  %2762 = vmatpush.msra.mxu0 %v4726_v55  ;;  %v4979_v55 = vld [vmem:[#allocation15 + $0x230] sm:$0xff] }
 0x229   :  { %v4944_v5 = vadd.f32 1.0, %v4220_v9  ;;  %v1804_v9 = vand.u32 2147483648, %v4847_v27  ;;  %2678 = vmatpush.msrb.mxu2 %v4948_v8  ;;  %vm1803_vm11 = vcmp.eq.f32.partialorder %v1802_v41, 8.507059e+37 }
 0x22a   :  { %2627 = vmatpush.msrb.mxu3 %v4952_v36  ;;  %v1801_v36 = vsel %vm1800_vm10, %v4889_v17, %v1797_v32  ;;  %2763 = vmatpush.msra.mxu0 %v4737_v59  ;;  %v4982_v17 = vld [vmem:[#allocation13 + $0x8] sm:$0x3f] }
 0x22b   :  { %4221 = vrcp.f32 %v4944_v5  ;;  %v2230_v45 = vpop.f32.mrf.mxu2  ;;  %5354 = vst [vmem:[#allocation53_spill] sm:$0xff] %v4982_v17  ;;  %vm1813_vm13 = vweird.f32 %v4944_v5 }
 0x22c   :  { %4223 = vpow2.f32 %v3687_v26  ;;  %v2231_v60 = vadd.f32 %v2230_v45, %v1914_v0  ;;  %v2393_v57 = vpop.f32.mrf.mxu1  ;;  %2628 = vmatpush.msrb.mxu3 %v4954_v63  ;;  %v1805_v0 = vor.u32 1.1754944e-38, %v1804_v9  ;;  %v4974_v45 = vld [vmem:[#allocation15 + $0x248] sm:$0xff]  ;;  %2764 = vmatpush.msra.mxu0 %v4747_v3  ;;  %v4990_v9 = vld [vmem:[#allocation15 + $0x218] sm:$0xff] }
 0x22d   :  { %v2245_v49 = vpop.f32.mrf.mxu0  ;;  %v2394_v26 = vadd.f32 %v2393_v57, %v2349_v54  ;;  %v1915_v54 = vperm.slane %v4982_v17, 2 }
 0x22e   :  { %v2244_v2 = vadd.f32 %v2243_v46, %v2231_v60  ;;  %2629 = vmatpush.msrb.mxu3 %v4964_v22  ;;  %v1806_v49 = vsel %vm1803_vm11, %v1805_v0, %v1801_v36  ;;  %2765 = vmatpush.msra.mxu0 %v4758_v6  ;;  %v4998_v0 = vld [vmem:[#allocation15 + $0x2e0] sm:$0xff] }
 0x22f   :  { %5355 = vst [vmem:[#allocation54_spill] sm:$0xff] %v4998_v0 }
 0x230   :  { %v2257_v27 = vadd.f32 %v4780_v18, %v2244_v2  ;;  %2630 = vmatpush.msrb.mxu3 %v4974_v45  ;;  %v4988_v2 = vld [vmem:[#allocation15 + $0x2f8] sm:$0xff]  ;;  %2766 = vmatpush.msra.mxu0 %v4768_v10 }
 0x231   :  { %v4222_v52 = vpop.eup %4221 }
 0x232   :  { %v4224_v46 = vpop.eup %4223  ;;  %v2338_v60 = vmul.f32 %v2257_v27, %v1806_v49  ;;  %v1809_v32 = vmul.f32 %v4222_v52, %v4944_v5  ;;  %2631 = vmatpush.msrb.mxu3 %v4979_v55  ;;  %vm1814_vm12 = vweird.f32 %v4222_v52  ;;  %v5000_v27 = vld [vmem:[#allocation15 + $0x200] sm:$0xff]  ;;  %v1819_v49 = vand.u32 2147483648, %v4944_v5  ;;  %2767 = vmatpush.msra.mxu0 %v4778_v16 }
 0x233   :  { %v2232_v57 = vpop.f32.mrf.mxu2  ;;  %v4993_v41 = vadd.f32 1.0, %v4224_v46  ;;  %v1817_v46 = vand.u32 2147483647, %v4944_v5  ;;  %vm5016_vm14 = vmor %vm1813_vm13, %vm1814_vm12  ;;  %v5039_v16 = vld [vmem:[#allocation15 + $0x1a0] sm:$0xff] }
 0x234   :  { %v4986_v59 = vadd.f32 %v2394_v26, %v2338_v60  ;;  %v1810_v18 = vsub.f32 1.0, %v1809_v32  ;;  %v2395_v36 = vpop.f32.mrf.mxu1  ;;  %2632 = vmatpush.msrb.mxu3 %v4990_v9  ;;  %v2270_v26 = vadd.f32 %v4728_v56, %v1915_v54  ;;  %v2350_v60 = vperm.slane %v4982_v17, 3  ;;  %v5009_v32 = vld [vmem:[#allocation15 + $0x2c8] sm:$0xff]  ;;  %v5031_v17 = vld [vmem:[#allocation15 + $0x1b8] sm:$0xff] }
 0x235   :  { %v5011_v57 = vld [vmem:[#allocation15 + $0x1e8] sm:$0xff]  ;;  %4225 = vrcp.f32 %v4993_v41  ;;  %v1820_v10 = vor.u32 1.1754944e-38, %v1819_v49  ;;  %vm1818_vm15 = vcmp.eq.f32.partialorder %v1817_v46, 8.507059e+37  ;;  %vm1828_vm1 = vweird.f32 %v4993_v41 }
 0x236   :  { %2559 = vmatmul.f32.vlgmr.msra.gmra.mxu1 %v4986_v59  ;;  %2619 = vmatmul.f32.vlgmr.msrb.gmra.mxu0 %v4986_v59  ;;  %v1811_v3 = vmul.f32 %v4222_v52, %v1810_v18  ;;  %v2283_v5 = vadd.f32 %v4866_v25, %v2270_v26  ;;  %v5025_v18 = vld [vmem:[#allocation15 + $0x2b0] sm:$0xff]  ;;  %v2407_v25 = vadd.f32 %v4903_v4, %v2350_v60  ;;  %v5035_v26 = vld [vmem:[#allocation15 + $0x298] sm:$0xff]  ;;  %v5048_v4 = vld [vmem:[#allocation15 + $0x188] sm:$0xff] }
 0x237   :  { %2683 = vmatpush.msra.mxu1 %v4988_v2  ;;  %2633 = vmatpush.msrb.mxu3 %v5000_v27  ;;  %v5053_v60 = vld [vmem:[#allocation15 + $0x268] sm:$0xff] }
 0x238   :  { %v1812_v6 = vadd.f32 %v4222_v52, %v1811_v3  ;;  %v5029_v3 = vld [vmem:[#allocation15 + $0x1d0] sm:$0xff]  ;;  %2852 = vmatpush.msrb.mxu0 %v4787_v20  ;;  %v5055_v56 = vld [vmem:[#allocation15 + $0x388] sm:$0xff] }
 0x239   :  { %2684 = vmatpush.msra.mxu1 %v4998_v0  ;;  %2634 = vmatpush.msrb.mxu3 %v5011_v57 }
 0x23a   :  { %v1816_v54 = vsel %vm5016_vm14, %v4222_v52, %v1812_v6  ;;  %2853 = vmatpush.msrb.mxu0 %v4796_v28  ;;  %v5042_v6 = vld [vmem:[#allocation15 + $0x280] sm:$0xff] }
 0x23b   :  { %v2295_v36 = vpop.f32.mrf.mxu2  ;;  %2685 = vmatpush.msra.mxu1 %v5009_v32  ;;  %2635 = vmatpush.msrb.mxu3 %v5029_v3  ;;  %v1821_v52 = vsel %vm1818_vm15, %v1820_v10, %v1816_v54  ;;  %v5045_v20 = vpop.eup %4225  ;;  %v5070_v10 = vld [vmem:[#allocation15 + $0x238] sm:$0xff] }
 0x23c   :  { %v2296_v0 = vadd.f32 %v2295_v36, %v2283_v5  ;;  %2854 = vmatpush.msrb.mxu0 %v4805_v34  ;;  %v1824_v28 = vmul.f32 %v5045_v20, %v4993_v41  ;;  %v5063_v5 = vld [vmem:[#allocation15 + $0x250] sm:$0xff]  ;;  %5359 = vst [vmem:[#allocation56_spill] sm:$0xff] %v5070_v10  ;;  %vm1829_vm0 = vweird.f32 %v5045_v20 }
 0x23d   :  { %2686 = vmatpush.msra.mxu1 %v5025_v18  ;;  %2636 = vmatpush.msrb.mxu3 %v5031_v17  ;;  %5358 = vst [vmem:[#allocation55_spill] sm:$0xff] %v5063_v5  ;;  %v5065_v34 = vld [vmem:[#allocation15 + $0x370] sm:$0xff]  ;;  %vm5123_vm2 = vmor %vm1828_vm1, %vm1829_vm0 }
 0x23e   :  { %v2339_v49 = vmul.f32 %v2296_v0, %v1821_v52  ;;  %2855 = vmatpush.msrb.mxu0 %v4816_v1  ;;  %v5072_v1 = vld [vmem:[#allocation15 + $0x358] sm:$0xff]  ;;  %v1825_v36 = vsub.f32 1.0, %v1824_v28  ;;  %v5079_v52 = vld [vmem:[#allocation15 + $0x340] sm:$0xff] }
 0x23f   :  { %2687 = vmatpush.msra.mxu1 %v5035_v26  ;;  %2637 = vmatpush.msrb.mxu3 %v5039_v16 }
 0x240   :  { %v5051_v46 = vadd.f32 %v2407_v25, %v2339_v49  ;;  %2856 = vmatpush.msrb.mxu0 %v4825_v21  ;;  %v5077_v25 = vld [vmem:[#allocation15 + $0x220] sm:$0xff]  ;;  %v5084_v49 = vld [vmem:[#allocation15 + $0x208] sm:$0xff]  ;;  %v1826_v28 = vmul.f32 %v5045_v20, %v1825_v36 }
 0x241   :  { %2688 = vmatpush.msra.mxu1 %v5042_v6  ;;  %2638 = vmatpush.msrb.mxu3 %v5048_v4  ;;  %5360 = vst [vmem:[#allocation57_spill] sm:$0xff] %v5077_v25 }
 0x242   :  { %2579 = vmatmul.f32.vlgmr.msra.gmra.mxu2 %v5051_v46  ;;  %2857 = vmatpush.msrb.mxu0 %v4833_v33  ;;  %5361 = vst [vmem:[#allocation58_spill] sm:$0xff] %v5084_v49  ;;  %v5093_v33 = vld [vmem:[#allocation15 + $0x1f0] sm:$0xff]  ;;  %v1827_v36 = vadd.f32 %v5045_v20, %v1826_v28  ;;  %v5119_v28 = vld [vmem:[#allocation15 + $0x1a8] sm:$0xff] }
 0x243   :  { %v2297_v54 = vpop.f32.mrf.mxu2  ;;  %2689 = vmatpush.msra.mxu1 %v5053_v60  ;;  %2713 = vmatpush.msra.mxu2 %v5055_v56  ;;  %5362 = vst [vmem:[#allocation59_spill] sm:$0xff] %v5093_v33 }
 0x244   :  { %v5086_v54 = vld [vmem:[#allocation15 + $0x328] sm:$0xff]  ;;  %2858 = vmatpush.msrb.mxu0 %v4845_v42  ;;  %v5100_v42 = vld [vmem:[#allocation13 + $0x10] sm:$0x3f] }
 0x245   :  { %v2308_v0 = vpop.f32.mrf.mxu0  ;;  %2690 = vmatpush.msra.mxu1 %v5063_v5  ;;  %2714 = vmatpush.msra.mxu2 %v5065_v34  ;;  %5363 = vst [vmem:[#allocation60_spill] sm:$0xff] %v5100_v42  ;;  %v5103_v5 = vld [vmem:[#allocation15 + $0x1d8] sm:$0xff] }
 0x246   :  { %2859 = vmatpush.msrb.mxu0 %v4856_v13  ;;  %5364 = vst [vmem:[#allocation61_spill] sm:$0xff] %v5103_v5  ;;  %v5110_v13 = vld [vmem:[#allocation15 + $0x1c0] sm:$0xff] }
 0x247   :  { %2691 = vmatpush.msra.mxu1 %v5070_v10  ;;  %2715 = vmatpush.msra.mxu2 %v5072_v1  ;;  %v5095_v10 = vld [vmem:[#allocation15 + $0x310] sm:$0xff] }
 0x248   :  { %2860 = vmatpush.msrb.mxu0 %v4873_v14  ;;  %v1832_v14 = vand.u32 2147483647, %v4993_v41 }
 0x249   :  { %2692 = vmatpush.msra.mxu1 %v5077_v25  ;;  %2716 = vmatpush.msra.mxu2 %v5079_v52  ;;  %v1916_v25 = vperm.slane %v5100_v42, 2 }
 0x24a   :  { %2679 = vmatmul.f32.vlgmr.msrb.gmra.mxu2 %v4986_v59  ;;  %2861 = vmatpush.msrb.mxu0 %v4882_v62  ;;  %vm1833_vm3 = vcmp.eq.f32.partialorder %v1832_v14, 8.507059e+37 }
 0x24b   :  { %2693 = vmatpush.msra.mxu1 %v5084_v49  ;;  %2717 = vmatpush.msra.mxu2 %v5086_v54  ;;  %v2309_v49 = vadd.f32 %v2308_v0, %v1916_v25 }
 0x24c   :  { %2862 = vmatpush.msrb.mxu0 %v4896_v29 }
 0x24d   :  { %v2310_v21 = vpop.f32.mrf.mxu0  ;;  %2694 = vmatpush.msra.mxu1 %v5093_v33  ;;  %2718 = vmatpush.msra.mxu2 %v5095_v10  ;;  %v2351_v33 = vperm.slane %v5100_v42, 3  ;;  %v5131_v42 = vld [vmem:[#allocation15 + $0x190] sm:$0xff] }
 0x24e   :  { %v1834_v21 = vand.u32 2147483648, %v4993_v41  ;;  %v1831_v41 = vsel %vm5123_vm2, %v5045_v20, %v1827_v36  ;;  %2863 = vmatpush.msrb.mxu0 %v4914_v58 }
 0x24f   :  { %2782 = vmatpush.msrb.mxu2 %v4841_v24  ;;  %2695 = vmatpush.msra.mxu1 %v5103_v5 }
 0x250   :  { %2864 = vmatpush.msrb.mxu0 %v4920_v23  ;;  %v5374_v23 = vld [vmem:[#allocation25_spill] sm:$0xff] }
 0x251   :  { %2783 = vmatpush.msrb.mxu2 %v4851_v31  ;;  %2696 = vmatpush.msra.mxu1 %v5110_v13  ;;  %v1835_v31 = vor.u32 1.1754944e-38, %v1834_v21 }
 0x252   :  { %2865 = vmatpush.msrb.mxu0 %v4925_v7  ;;  %v5384_v7 = vld [vmem:[#allocation35_spill] sm:$0xff] }
 0x253   :  { %2784 = vmatpush.msrb.mxu2 %v4869_v35  ;;  %2697 = vmatpush.msra.mxu1 %v5119_v28 }
 0x254   :  { %2866 = vmatpush.msrb.mxu0 %v4933_v12  ;;  %v5386_v12 = vld [vmem:[#allocation37_spill] sm:$0xff] }
 0x255   :  { %v2419_v25 = vpop.f32.mrf.mxu0  ;;  %2785 = vmatpush.msrb.mxu2 %v4878_v30  ;;  %2698 = vmatpush.msra.mxu1 %v5131_v42  ;;  %v5377_v30 = vld [vmem:[#allocation30_spill] sm:$0xff] }
 0x256   :  { %v2420_v5 = vadd.f32 %v2419_v25, %v2351_v33  ;;  %2867 = vmatpush.msrb.mxu0 %v4948_v8  ;;  %v5387_v8 = vld [vmem:[#allocation40_spill] sm:$0xff] }
 0x257   :  { %v2321_v24 = vpop.f32.mrf.mxu2  ;;  %2786 = vmatpush.msrb.mxu2 %v4892_v11  ;;  %v5378_v11 = vld [vmem:[#allocation29_spill] sm:$0xff]  ;;  %v5396_v33 = vld [vmem:[#allocation48_spill] sm:$0xff] }
 0x258   :  { %v2322_v0 = vadd.f32 %v2321_v24, %v2309_v49  ;;  %v1836_v49 = vsel %vm1833_vm3, %v1835_v31, %v1831_v41 }
 0x259   :  { %2787 = vmatpush.msrb.mxu2 %v4906_v19  ;;  %v5381_v19 = vld [vmem:[#allocation34_spill] sm:$0xff] }
 0x25a   :  { %v2335_v29 = vadd.f32 %v4809_v61, %v2322_v0 }
 0x25c   :  { %v2340_v20 = vmul.f32 %v2335_v29, %v1836_v49  ;;  %v5398_v49 = vld [vmem:[#allocation54_spill] sm:$0xff] }
 0x25d   :  { %v2421_v58 = vpop.f32.mrf.mxu0 }
 0x25e   :  { %v5142_v35 = vadd.f32 %v2420_v5, %v2340_v20  ;;  %v5393_v5 = vld [vmem:[#allocation45_spill] sm:$0xff]  ;;  %v5403_v58 = vld [vmem:[#allocation59_spill] sm:$0xff] }
 0x25f   :  { %v2323_v61 = vpop.f32.mrf.mxu2 }
 0x260   :  { %3946 = vmatmul.msk.f32.vlgmr.msra.gmra.mxu3 %vm1660_vm7, %v5142_v35  ;;  %3947 = vmatmul.msk.f32.vlgmr.msrb.gmra.mxu1 %vm1660_vm7, %v5142_v35  ;;  %v5402_v61 = vld [vmem:[#allocation58_spill] sm:$0xff] }
 0x261   :  { %3948 = vmatmul.msk.f32.vlgmr.msra.gmra.mxu2 %vm1660_vm7, %v5142_v35  ;;  %2732 = vmatpush.msra.mxu3 %v4682_v39  ;;  %v5367_v39 = vld [vmem:[#allocation50_spill] sm:$0xff] }
 0x262   :  { %2792 = vmatpush.msrb.mxu1 %v4684_v40  ;;  %2812 = vmatpush.msra.mxu2 %v4916_v37  ;;  %v5368_v40 = vld [vmem:[#allocation22_spill] sm:$0xff]  ;;  %v5379_v37 = vld [vmem:[#allocation32_spill] sm:$0xff] }
 0x263   :  { %2733 = vmatpush.msra.mxu3 %v4691_v43  ;;  %v5369_v43 = vld [vmem:[#allocation21_spill] sm:$0xff] }
 0x264   :  { %2793 = vmatpush.msrb.mxu1 %v4693_v44  ;;  %2813 = vmatpush.msra.mxu2 %v4922_v38  ;;  %v5370_v44 = vld [vmem:[#allocation52_spill] sm:$0xff] }
 0x265   :  { %2734 = vmatpush.msra.mxu3 %v4702_v47  ;;  %v5371_v47 = vld [vmem:[#allocation24_spill] sm:$0xff] }
 0x266   :  { %2794 = vmatpush.msrb.mxu1 %v4704_v48  ;;  %2814 = vmatpush.msra.mxu2 %v4927_v15  ;;  %v5372_v48 = vld [vmem:[#allocation23_spill] sm:$0xff]  ;;  %v5383_v38 = vld [vmem:[#allocation36_spill] sm:$0xff]  ;;  %v5385_v15 = vld [vmem:[#allocation38_spill] sm:$0xff] }
 0x267   :  { %2735 = vmatpush.msra.mxu3 %v4711_v50  ;;  %v5373_v50 = vld [vmem:[#allocation26_spill] sm:$0xff] }
 0x268   :  { %2639 = vmatmul.f32.vlgmr.msrb.gmra.mxu3 %v5051_v46  ;;  %2699 = vmatmul.f32.vlgmr.msra.gmra.mxu1 %v5051_v46 }
 0x269   :  { %2736 = vmatpush.msra.mxu3 %v4720_v53  ;;  %2795 = vmatpush.msrb.mxu1 %v4713_v51  ;;  %v5375_v51 = vld [vmem:[#allocation28_spill] sm:$0xff]  ;;  %v5376_v53 = vld [vmem:[#allocation27_spill] sm:$0xff] }
 0x26a   :  { %2815 = vmatpush.msra.mxu2 %v5367_v39  ;;  %v5404_v39 = vld [vmem:[#allocation61_spill] sm:$0xff] }
 0x26b   :  { %2737 = vmatpush.msra.mxu3 %v5368_v40  ;;  %2796 = vmatpush.msrb.mxu1 %v5369_v43 }
 0x26c   :  { %2816 = vmatpush.msra.mxu2 %v5370_v44 }
 0x26d   :  { %2738 = vmatpush.msra.mxu3 %v5371_v47  ;;  %2797 = vmatpush.msrb.mxu1 %v5372_v48 }
 0x26e   :  { %2817 = vmatpush.msra.mxu2 %v4954_v63  ;;  %v5380_v63 = vld [vmem:[#allocation31_spill] sm:$0xff] }
 0x26f   :  { %2739 = vmatpush.msra.mxu3 %v5373_v50  ;;  %2798 = vmatpush.msrb.mxu1 %v5374_v23 }
 0x270   :  { %2818 = vmatpush.msra.mxu2 %v4964_v22  ;;  %v5382_v22 = vld [vmem:[#allocation33_spill] sm:$0xff] }
 0x271   :  { %2740 = vmatpush.msra.mxu3 %v5375_v51  ;;  %2799 = vmatpush.msrb.mxu1 %v5376_v53 }
 0x272   :  { %2819 = vmatpush.msra.mxu2 %v4974_v45  ;;  %v5388_v45 = vld [vmem:[#allocation39_spill] sm:$0xff] }
 0x273   :  { %2741 = vmatpush.msra.mxu3 %v5377_v30  ;;  %2800 = vmatpush.msrb.mxu1 %v5378_v11 }
 0x274   :  { %2820 = vmatpush.msra.mxu2 %v4979_v55  ;;  %v5389_v55 = vld [vmem:[#allocation42_spill] sm:$0xff] }
 0x275   :  { %2742 = vmatpush.msra.mxu3 %v5379_v37  ;;  %2801 = vmatpush.msrb.mxu1 %v5380_v63 }
 0x276   :  { %2821 = vmatpush.msra.mxu2 %v4990_v9  ;;  %v5390_v9 = vld [vmem:[#allocation41_spill] sm:$0xff] }
 0x277   :  { %2743 = vmatpush.msra.mxu3 %v5381_v19  ;;  %2802 = vmatpush.msrb.mxu1 %v5382_v22  ;;  %v5405_v22 = vld [vmem:[#allocation51_spill] sm:$0xff] }
 0x278   :  { %2822 = vmatpush.msra.mxu2 %v5000_v27  ;;  %v5391_v27 = vld [vmem:[#allocation44_spill] sm:$0xff] }
 0x279   :  { %2744 = vmatpush.msra.mxu3 %v5383_v38  ;;  %2803 = vmatpush.msrb.mxu1 %v5384_v7  ;;  %v2945_v38 = vperm.slane %v5405_v22, 4 }
 0x27a   :  { %2823 = vmatpush.msra.mxu2 %v5011_v57  ;;  %v5392_v57 = vld [vmem:[#allocation43_spill] sm:$0xff] }
 0x27b   :  { %2745 = vmatpush.msra.mxu3 %v5385_v15  ;;  %2804 = vmatpush.msrb.mxu1 %v5386_v12 }
 0x27c   :  { %2824 = vmatpush.msra.mxu2 %v5029_v3  ;;  %v5394_v3 = vld [vmem:[#allocation46_spill] sm:$0xff] }
 0x27d   :  { %2746 = vmatpush.msra.mxu3 %v5387_v8  ;;  %2805 = vmatpush.msrb.mxu1 %v5388_v45  ;;  %v2951_v8 = vperm.slane %v5405_v22, 5 }
 0x27e   :  { %2825 = vmatpush.msra.mxu2 %v5031_v17  ;;  %v5395_v17 = vld [vmem:[#allocation47_spill] sm:$0xff] }
 0x27f   :  { %2747 = vmatpush.msra.mxu3 %v5389_v55  ;;  %2806 = vmatpush.msrb.mxu1 %v5390_v9 }
 0x280   :  { %2826 = vmatpush.msra.mxu2 %v5039_v16  ;;  %v5397_v16 = vld [vmem:[#allocation49_spill] sm:$0xff] }
 0x281   :  { %2842 = vmatpush.msrb.mxu3 %v5391_v27  ;;  %2807 = vmatpush.msrb.mxu1 %v5392_v57 }
 0x282   :  { %2827 = vmatpush.msra.mxu2 %v5048_v4 }
 0x283   :  { %2843 = vmatpush.msrb.mxu3 %v5393_v5  ;;  %2902 = vmatpush.msra.mxu1 %v5055_v56 }
 0x285   :  { %2844 = vmatpush.msrb.mxu3 %v5394_v3  ;;  %2903 = vmatpush.msra.mxu1 %v5065_v34 }
 0x287   :  { %2845 = vmatpush.msrb.mxu3 %v5395_v17  ;;  %2904 = vmatpush.msra.mxu1 %v5072_v1 }
 0x289   :  { %2846 = vmatpush.msrb.mxu3 %v5396_v33  ;;  %2905 = vmatpush.msra.mxu1 %v5079_v52  ;;  %v5406_v33 = vld [vmem:[#allocation53_spill] sm:$0xff] }
 0x28b   :  { %2847 = vmatpush.msrb.mxu3 %v5397_v16  ;;  %2906 = vmatpush.msra.mxu1 %v5086_v54  ;;  %v2946_v16 = vperm.slane %v5406_v33, 4 }
 0x28d   :  { %2907 = vmatpush.msra.mxu1 %v5095_v10 }
 0x2b3   :  { %v2560_v56 = vpop.f32.mrf.mxu1  ;;  %v2620_v10 = vpop.f32.mrf.mxu0 }
 0x2c5   :  { %v2580_v4 = vpop.f32.mrf.mxu2 }
 0x2c6   :  { %v2581_v14 = vadd.f32 %v2580_v4, %v2560_v56 }
 0x2cd   :  { %v2680_v21 = vpop.f32.mrf.mxu2 }
 0x2dd   :  { %v2660_v36 = vpop.f32.mrf.mxu1 }
 0x2e3   :  { %v2600_v34 = vpop.f32.mrf.mxu3 }
 0x2e4   :  { %v2601_v24 = vadd.f32 %v2600_v34, %v2581_v14  ;;  %v2720_v41 = vpop.f32.mrf.mxu2  ;;  %v2952_v14 = vperm.slane %v5406_v33, 5 }
 0x2e5   :  { %v2700_v62 = vpop.f32.mrf.mxu1 }
 0x2e6   :  { %v5216_v1 = vsub.f32 %v4986_v59, %v2601_v24  ;;  %v2701_v0 = vadd.f32 %v2700_v62, %v2680_v21 }
 0x2e8   :  { %v2726_v52 = vmul.f32 %v5216_v1, %v5216_v1  ;;  %v2721_v25 = vadd.f32 %v2720_v41, %v2701_v0 }
 0x2ea   :  { %v5221_v54 = vsub.f32 %v5142_v35, %v2721_v25  ;;  %2748 = vmatmul.f32.vlgmr.msra.gmra.mxu3 %v2726_v52  ;;  %2808 = vmatmul.f32.vlgmr.msrb.gmra.mxu1 %v2726_v52 }
 0x2eb   :  { %2872 = vmatpush.msra.mxu3 %v4988_v2  ;;  %v2640_v31 = vpop.f32.mrf.mxu3 }
 0x2ec   :  { %v2728_v29 = vmul.f32 %v5221_v54, %v5221_v54  ;;  %v2641_v59 = vadd.f32 %v2640_v31, %v2620_v10  ;;  %v5407_v31 = vld [vmem:[#allocation60_spill] sm:$0xff] }
 0x2ed   :  { %2873 = vmatpush.msra.mxu3 %v5398_v49 }
 0x2ee   :  { %v2661_v20 = vadd.f32 %v2660_v36, %v2641_v59  ;;  %3949 = vmatmul.msk.f32.vlgmr.msrb.gmra.mxu2 %vm1660_vm7, %v2728_v29 }
 0x2ef   :  { %2874 = vmatpush.msra.mxu3 %v5009_v32  ;;  %v5399_v32 = vld [vmem:[#allocation55_spill] sm:$0xff] }
 0x2f0   :  { %v5230_v35 = vsub.f32 %v5051_v46, %v2661_v20  ;;  %v5400_v46 = vld [vmem:[#allocation56_spill] sm:$0xff]  ;;  %v2953_v20 = vperm.slane %v5407_v31, 5 }
 0x2f1   :  { %2875 = vmatpush.msra.mxu3 %v5025_v18  ;;  %v5401_v18 = vld [vmem:[#allocation57_spill] sm:$0xff] }
 0x2f2   :  { %v2727_v2 = vmul.f32 %v5230_v35, %v5230_v35  ;;  %3950 = vmatmul.msk.f32.vlgmr.msrb.gmra.mxu3 %vm1660_vm7, %v2728_v29  ;;  %3951 = vmatmul.msk.f32.vlgmr.msra.gmra.mxu1 %vm1660_vm7, %v2728_v29  ;;  %v2947_v29 = vperm.slane %v5407_v31, 4 }
 0x2f3   :  { %2876 = vmatpush.msra.mxu3 %v5035_v26 }
 0x2f4   :  { %2768 = vmatmul.f32.vlgmr.msra.gmra.mxu0 %v2727_v2 }
 0x2f5   :  { %2877 = vmatpush.msra.mxu3 %v5042_v6 }
 0x2f6   :  { %2828 = vmatmul.f32.vlgmr.msra.gmra.mxu2 %v2727_v2 }
 0x2f7   :  { %2878 = vmatpush.msra.mxu3 %v5053_v60 }
 0x2f9   :  { %2879 = vmatpush.msra.mxu3 %v5399_v32 }
 0x2fb   :  { %2880 = vmatpush.msra.mxu3 %v5400_v46 }
 0x2fc   :  { %2868 = vmatmul.f32.vlgmr.msrb.gmra.mxu0 %v2726_v52 }
 0x2fd   :  { %2881 = vmatpush.msra.mxu3 %v5401_v18 }
 0x2ff   :  { %2882 = vmatpush.msra.mxu3 %v5402_v61 }
 0x301   :  { %2883 = vmatpush.msra.mxu3 %v5403_v58 }
 0x303   :  { %2884 = vmatpush.msra.mxu3 %v5404_v39 }
 0x305   :  { %2885 = vmatpush.msra.mxu3 %v5110_v13 }
 0x307   :  { %2886 = vmatpush.msra.mxu3 %v5119_v28 }
 0x309   :  { %2887 = vmatpush.msra.mxu3 %v5131_v42 }
 0x30a   :  { %2888 = vmatmul.f32.vlgmr.msra.gmra.mxu3 %v2727_v2 }
 0x367   :  { %v2809_v47 = vpop.f32.mrf.mxu1 }
 0x368   :  { %v2810_v48 = vadd.f32 1e-05, %v2809_v47 }
 0x36d   :  { %v2749_v26 = vpop.f32.mrf.mxu3 }
 0x36e   :  { %v2750_v6 = vadd.f32 1e-05, %v2749_v26 }
 0x36f   :  { %v2909_v4 = vpop.f32.mrf.mxu1 }
 0x371   :  { %v2769_v60 = vpop.f32.mrf.mxu0  ;;  %v2789_v40 = vpop.f32.mrf.mxu2 }
 0x372   :  { %v2770_v43 = vadd.f32 %v2769_v60, %v2750_v6 }
 0x374   :  { %v2790_v44 = vadd.f32 %v2789_v40, %v2770_v43 }
 0x375   :  { %v2849_v51 = vpop.f32.mrf.mxu3 }
 0x376   :  { %4227 = vrsqrt.f32 %v2790_v44  ;;  %vm2918_vm5 = vweird.f32 %v2790_v44 }
 0x379   :  { %v2829_v50 = vpop.f32.mrf.mxu2  ;;  %v2869_v55 = vpop.f32.mrf.mxu0 }
 0x37a   :  { %v2830_v23 = vadd.f32 %v2829_v50, %v2810_v48  ;;  %v2870_v5 = vadd.f32 1e-05, %v2869_v55 }
 0x37c   :  { %v4228_v53 = vpop.eup %4227  ;;  %v2850_v30 = vadd.f32 %v2849_v51, %v2830_v23 }
 0x37d   :  { %v2913_v13 = vmul.f32 %v4228_v53, %v2790_v44  ;;  %vm2919_vm4 = vweird.f32 %v4228_v53 }
 0x37e   :  { %4229 = vrsqrt.f32 %v2850_v30  ;;  %vm2920_vm6 = vmor %vm2918_vm5, %vm2919_vm4  ;;  %vm2928_vm9 = vweird.f32 %v2850_v30 }
 0x37f   :  { %v2914_v28 = vmul.f32 %v4228_v53, %v2913_v13 }
 0x381   :  { %v2915_v11 = vmul.f32 0.5, %v2914_v28 }
 0x383   :  { %v2916_v42 = vsub.f32 1.5, %v2915_v11 }
 0x384   :  { %v4230_v37 = vpop.eup %4229 }
 0x385   :  { %v2917_v63 = vmul.f32 %v4228_v53, %v2916_v42  ;;  %v2923_v19 = vmul.f32 %v4230_v37, %v2850_v30  ;;  %vm2929_vm8 = vweird.f32 %v4230_v37 }
 0x386   :  { %vm2930_vm10 = vmor %vm2928_vm9, %vm2929_vm8 }
 0x387   :  { %v2921_v7 = vsel %vm2920_vm6, %v4228_v53, %v2917_v63  ;;  %v2924_v15 = vmul.f32 %v4230_v37, %v2923_v19 }
 0x388   :  { %v2942_v12 = vmul.f32 %v2921_v7, %v5216_v1 }
 0x389   :  { %v2925_v45 = vmul.f32 0.5, %v2924_v15 }
 0x38a   :  { %v2948_v9 = vmul.f32 %v2945_v38, %v2942_v12 }
 0x38b   :  { %v2926_v27 = vsub.f32 1.5, %v2925_v45 }
 0x38c   :  { %v2954_v57 = vadd.f32 %v2951_v8, %v2948_v9 }
 0x38d   :  { %v2927_v3 = vmul.f32 %v4230_v37, %v2926_v27  ;;  %v2889_v17 = vpop.f32.mrf.mxu3 }
 0x38e   :  { %2957 = vst [vmem:[%s5277_s9] sm:$0xff] %v2954_v57  ;;  %v2890_v56 = vadd.f32 %v2889_v17, %v2870_v5 }
 0x38f   :  { %v2931_v36 = vsel %vm2930_vm10, %v4230_v37, %v2927_v3 }
 0x390   :  { %v2943_v21 = vmul.f32 %v2931_v36, %v5230_v35  ;;  %v2910_v34 = vadd.f32 %v2909_v4, %v2890_v56 }
 0x392   :  { %v2949_v24 = vmul.f32 %v2946_v16, %v2943_v21  ;;  %4231 = vrsqrt.f32 %v2910_v34  ;;  %vm2938_vm12 = vweird.f32 %v2910_v34 }
 0x394   :  { %v2955_v62 = vadd.f32 %v2952_v14, %v2949_v24 }
 0x396   :  { %2958 = vst [vmem:[%s5277_s9 + $0x8] sm:$0xff] %v2955_v62 }
 0x398   :  { %v4232_v1 = vpop.eup %4231 }
 0x399   :  { %v2933_v0 = vmul.f32 %v4232_v1, %v2910_v34  ;;  %vm2939_vm11 = vweird.f32 %v4232_v1 }
 0x39a   :  { %vm2940_vm13 = vmor %vm2938_vm12, %vm2939_vm11 }
 0x39b   :  { %v2934_v41 = vmul.f32 %v4232_v1, %v2933_v0 }
 0x39d   :  { %v2935_v52 = vmul.f32 0.5, %v2934_v41 }
 0x39f   :  { %v2936_v25 = vsub.f32 1.5, %v2935_v52 }
 0x3a1   :  { %v2937_v10 = vmul.f32 %v4232_v1, %v2936_v25 }
 0x3a3   :  { %v2941_v59 = vsel %vm2940_vm13, %v4232_v1, %v2937_v10 }
 0x3a4   :  { %v2944_v49 = vmul.f32 %v2941_v59, %v5221_v54 }
 0x3a6   :  { %v2950_v35 = vmul.f32 %v2947_v29, %v2944_v49 }
 0x3a8   :  { %v2956_v2 = vadd.f32 %v2953_v20, %v2950_v35 }
 0x3aa   :  { %2959 = vst.msk [vmem:[%s5277_s9 + $0x10] sm:$0xff] %vm1660_vm7, %v2956_v2 }
 0x3ab   :  { %2964 = vsyncpa [#allocation3], 1 }
 0x3ac   :  { %2965 = vsyncpa [#allocation5], 1 }
 0x3ad   :  { %2966 = vsyncpa [#allocation8], 1 }
 0x3ae   :  { %2967 = vsyncpa [#allocation11], 1 }
 0x3af   :  { %2968 = vsyncpa [#allocation14], 1 }

</bundles_post_ra>
